<compile_context>
chip_gen: v5e
topology: v5e:2x2
jax: 0.10.0
libtpu: 0.0.40
codegen_flags: <defaults>
</compile_context>

<pallas_src>
import jax
import jax.numpy as jnp
from jax import lax
from jax.experimental import pallas as pl
from jax.experimental.pallas import tpu as pltpu


# ----------------------------------------------------------------------------- #
# Kernel
# ----------------------------------------------------------------------------- #
def _make_residual_block_kernel(Nb, H, W, C):
    """Kernel body for a fixed (Nb, H, W, C) block."""
    M = Nb * H * W

    def kernel(x_ref, w0_ref, b0_ref, w1_ref, b1_ref, out_ref, xp_ref):
        # x_ref : (Nb, H, W, C)      f32 NHWC input block
        # w*_ref: (9*C, C)           bf16 weight slab, row index = (kh*3+kw)*C + cin
        # b*_ref: (1, C)             f32 bias
        # out_ref: (Nb, H, W, C)     f32 output block
        # xp_ref: (Nb, H+2, W+2, C)  f32 shared zero-padded scratch (both convs)
        f32 = jnp.float32

        # Zero only the 1-pixel border of the shared padded scratch; the interior
        # is always overwritten below.  Done every step (cheap) so the kernel is
        # megacore-safe when the "parallel" batch axis is split across cores.
        xp_ref[:, 0:1, :, :] = jnp.zeros((Nb, 1, W + 2, C), f32)
        xp_ref[:, H + 1:H + 2, :, :] = jnp.zeros((Nb, 1, W + 2, C), f32)
        xp_ref[:, :, 0:1, :] = jnp.zeros((Nb, H + 2, 1, C), f32)
        xp_ref[:, :, W + 1:W + 2, :] = jnp.zeros((Nb, H + 2, 1, C), f32)

        def conv3x3(w_ref, b_ref):
            # im2col: build the (M, 9C) patch slab and do ONE MXU matmul.
            xp = xp_ref[...]                                    # (Nb, H+2, W+2, C)
            cols = [xp[:, kh:kh + H, kw:kw + W, :]
                    for kh in range(3) for kw in range(3)]
            slab = jnp.concatenate(cols, axis=-1)               # (Nb, H, W, 9C)
            slab = slab.reshape(M, 9 * C).astype(jnp.bfloat16)  # bf16 MXU operand
            acc = jnp.dot(slab, w_ref[...],                     # (9C, C) bf16
                          preferred_element_type=f32)           # f32 accumulation
            return acc + b_ref[...]                             # (M, C) f32

        # ---- conv0(relu(x)) -------------------------------------------------
        xp_ref[:, 1:H + 1, 1:W + 1, :] = jnp.maximum(x_ref[...], 0.0)
        y = jnp.maximum(conv3x3(w0_ref, b0_ref), 0.0)           # (M, C) f32

        # ---- conv1(relu(conv0(...))) ----------------------------------------
        xp_ref[:, 1:H + 1, 1:W + 1, :] = y.reshape(Nb, H, W, C)
        out = conv3x3(w1_ref, b1_ref) + x_ref[...].reshape(M, C)  # + residual (pre-relu x)

        out_ref[...] = out.reshape(Nb, H, W, C).astype(out_ref.dtype)

    return kernel


# ----------------------------------------------------------------------------- #
# Block-size / VMEM heuristics
# ----------------------------------------------------------------------------- #
def _padded_bytes(shape, bytes_per_el):
    """Layout-aware VMEM footprint: last two dims tiled to (8, 128)."""
    lead = 1
    for d in shape[:-2]:
        lead *= d
    s, l = shape[-2], shape[-1]
    return lead * (-(-s // 8) * 8) * (-(-l // 128) * 128) * bytes_per_el


def _block_vmem_bytes(nb, H, W, C):
    M = nb * H * W
    est = 0
    est += 2 * _padded_bytes((nb, H, W, C), 4)       # input block (double-buffered)
    est += 2 * _padded_bytes((nb, H, W, C), 4)       # output block (double-buffered)
    est += _padded_bytes((nb, H + 2, W + 2, C), 4)   # shared padded scratch
    est += 2 * _padded_bytes((M, 9 * C), 4)          # im2col slab temporaries
    est += 2 * _padded_bytes((M, C), 4)              # accumulators / y
    return est


def _pick_block_batch(N, H, W, C, vmem_budget_bytes=6 * 1024 * 1024):
    """Largest batch block fitting the budget; prefer >= 2 grid steps (v7x TCs)."""
    divisors = [d for d in range(1, N + 1) if N % d == 0]
    fit = [d for d in divisors if _block_vmem_bytes(d, H, W, C) <= vmem_budget_bytes]
    if not fit:
        fit = [1]
    pref = [d for d in fit if N // d >= 2]
    return max(pref) if pref else max(fit)


# ----------------------------------------------------------------------------- #
# Public wrapper (PyTorch NCHW interface)
# ----------------------------------------------------------------------------- #
def residual_block_pallas(x_nchw, w0, b0, w1, b1, *, block_batch=None):
    """ResidualBlock forward.

    Args:
      x_nchw: (N, C, H, W) float32.
      w0, w1: (C, C, 3, 3) conv weights, PyTorch OIHW.
      b0, b1: (C,) biases.
    Returns:
      (N, C, H, W) float32.
    """
    N, C, H, W = x_nchw.shape

    # NCHW -> NHWC (channels on the lane axis).
    x_nhwc = jnp.transpose(x_nchw, (0, 2, 3, 1))

    # OIHW -> HWIO -> (9*Cin, Cout) weight slab; bf16 for the MXU fast path.
    w0_k = jnp.transpose(w0, (2, 3, 1, 0)).reshape(9 * C, C).astype(jnp.bfloat16)
    w1_k = jnp.transpose(w1, (2, 3, 1, 0)).reshape(9 * C, C).astype(jnp.bfloat16)
    b0_k = b0.reshape(1, C).astype(jnp.float32)
    b1_k = b1.reshape(1, C).astype(jnp.float32)

    Nb = _pick_block_batch(N, H, W, C) if block_batch is None else block_batch
    assert N % Nb == 0, (N, Nb)
    grid = (N // Nb,)

    est = _block_vmem_bytes(Nb, H, W, C)
    vmem_limit = int(min(32 * 1024 * 1024, max(16 * 1024 * 1024, 4 * est)))

    kernel = _make_residual_block_kernel(Nb, H, W, C)

    out_nhwc = pl.pallas_call(
        kernel,
        out_shape=jax.ShapeDtypeStruct((N, H, W, C), x_nchw.dtype),
        grid_spec=pltpu.PrefetchScalarGridSpec(
            num_scalar_prefetch=0,
            grid=grid,
            in_specs=[
                pl.BlockSpec((Nb, H, W, C), lambda n: (n, 0, 0, 0)),
                pl.BlockSpec((9 * C, C), lambda n: (0, 0)),
                pl.BlockSpec((1, C), lambda n: (0, 0)),
                pl.BlockSpec((9 * C, C), lambda n: (0, 0)),
                pl.BlockSpec((1, C), lambda n: (0, 0)),
            ],
            out_specs=pl.BlockSpec((Nb, H, W, C), lambda n: (n, 0, 0, 0)),
            scratch_shapes=[pltpu.VMEM((Nb, H + 2, W + 2, C), jnp.float32)],
        ),
        compiler_params=pltpu.CompilerParams(
            dimension_semantics=("parallel",),
            vmem_limit_bytes=vmem_limit),
    )(x_nhwc, w0_k, b0_k, w1_k, b1_k)

    return jnp.transpose(out_nhwc, (0, 3, 1, 2))


# ----------------------------------------------------------------------------- #
# References
# ----------------------------------------------------------------------------- #
def residual_block_ref(x_nchw, w0, b0, w1, b1):
    """Exact f32 reference mirroring the PyTorch forward."""
    dn = ("NCHW", "OIHW", "NCHW")
    r = jnp.maximum(x_nchw, 0.0)
    y = lax.conv_general_dilated(r, w0, (1, 1), "SAME", dimension_numbers=dn,
                                 precision=lax.Precision.HIGHEST)
    y = y + b0[None, :, None, None]
    y = jnp.maximum(y, 0.0)
    y = lax.conv_general_dilated(y, w1, (1, 1), "SAME", dimension_numbers=dn,
                                 precision=lax.Precision.HIGHEST)
    y = y + b1[None, :, None, None]
    return y + x_nchw


def residual_block_ref_bf16(x_nchw, w0, b0, w1, b1):
    """Reference with the kernel's bf16 operand rounding (f32 accumulation)."""
    dn = ("NCHW", "OIHW", "NCHW")

    def conv(x, w):
        xb = x.astype(jnp.bfloat16).astype(jnp.float32)
        wb = w.astype(jnp.bfloat16).astype(jnp.float32)
        return lax.conv_general_dilated(xb, wb, (1, 1), "SAME",
                                        dimension_numbers=dn,
                                        precision=lax.Precision.HIGHEST)

    r = jnp.maximum(x_nchw, 0.0)
    y = conv(r, w0) + b0[None, :, None, None]
    y = jnp.maximum(y, 0.0)
    y = conv(y, w1) + b1[None, :, None, None]
    return y + x_nchw


# ----------------------------------------------------------------------------- #
# Self-test
# ----------------------------------------------------------------------------- #
if __name__ == "__main__":
    N, C, H, W = 2, 4, 16, 16

    key = jax.random.PRNGKey(0)
    kx, k0, kb0, k1, kb1 = jax.random.split(key, 5)

    x = jax.random.normal(kx, (N, C, H, W), dtype=jnp.float32)

    # Deterministic synthetic params (PyTorch Conv2d-like scale: 1/sqrt(fan_in)).
    fan_in = C * 3 * 3
    bound = 1.0 / (fan_in ** 0.5)
    w0 = jax.random.uniform(k0, (C, C, 3, 3), jnp.float32, -bound, bound)
    b0 = jax.random.uniform(kb0, (C,), jnp.float32, -bound, bound)
    w1 = jax.random.uniform(k1, (C, C, 3, 3), jnp.float32, -bound, bound)
    b1 = jax.random.uniform(kb1, (C,), jnp.float32, -bound, bound)

    out = jax.block_until_ready(residual_block_pallas(x, w0, b0, w1, b1))
    assert out.shape == (N, C, H, W), out.shape

    # Tight check vs a reference with identical bf16 operand rounding.
    ref_bf16 = residual_block_ref_bf16(x, w0, b0, w1, b1)
    err_bf16 = float(jnp.max(jnp.abs(out - ref_bf16)))
    assert jnp.allclose(out, ref_bf16, atol=2e-3, rtol=2e-3), err_bf16

    # Loose sanity check vs the exact f32 PyTorch-equivalent reference
    # (bf16 MXU operands + f32 accumulation => ~1e-3-level absolute error).
    ref_f32 = residual_block_ref(x, w0, b0, w1, b1)
    err_f32 = float(jnp.max(jnp.abs(out - ref_f32)))
    assert jnp.allclose(out, ref_f32, atol=5e-2, rtol=5e-2), err_f32

    print("KERNEL_OK")
</pallas_src>

<mosaic_0001>
module attributes {stable_mosaic.version = 11 : i64} {
  func.func @kernel(%arg0: i32, %arg1: memref<1x16x16x4xf32, #tpu.memory_space<vmem>>, %arg2: memref<36x4xbf16, #tpu.memory_space<vmem>>, %arg3: memref<1x4xf32, #tpu.memory_space<vmem>>, %arg4: memref<36x4xbf16, #tpu.memory_space<vmem>>, %arg5: memref<1x4xf32, #tpu.memory_space<vmem>>, %arg6: memref<1x16x16x4xf32, #tpu.memory_space<vmem>>, %arg7: memref<1x18x18x4xf32, #tpu.memory_space<vmem>>) attributes {dimension_semantics = [#tpu.dimension_semantics<parallel>], iteration_bounds = array<i64: 2>, scalar_prefetch = 0 : i64, scratch_operands = 1 : i64, tpu.core_type = #tpu.core_type<tc>, window_params = [{transform_indices = @transform_0, window_bounds = array<i64: 1, 16, 16, 4>}, {pipeline_mode = #tpu.pipeline_mode<synchronous>, transform_indices = @transform_1, window_bounds = array<i64: 36, 4>}, {pipeline_mode = #tpu.pipeline_mode<synchronous>, transform_indices = @transform_2, window_bounds = array<i64: 1, 4>}, {pipeline_mode = #tpu.pipeline_mode<synchronous>, transform_indices = @transform_3, window_bounds = array<i64: 36, 4>}, {pipeline_mode = #tpu.pipeline_mode<synchronous>, transform_indices = @transform_4, window_bounds = array<i64: 1, 4>}, {transform_indices = @transform_5, window_bounds = array<i64: 1, 16, 16, 4>}]} {
    %cst = arith.constant 0.000000e+00 : f32
    %0 = vector.broadcast %cst : f32 to vector<1x1x18x4xf32>
    %c0 = arith.constant 0 : index
    %c0_0 = arith.constant 0 : index
    %c0_1 = arith.constant 0 : index
    %c0_2 = arith.constant 0 : index
    %1 = vector.load %arg7[%c0, %c0_0, %c0_1, %c0_2] : memref<1x18x18x4xf32, #tpu.memory_space<vmem>>, vector<1x1x18x4xf32>
    tpu.vector_store %arg7[%c0, %c0_0, %c0_1, %c0_2], %0 {strides = array<i32>} : memref<1x18x18x4xf32, #tpu.memory_space<vmem>>, vector<1x1x18x4xf32>,
    %cst_3 = arith.constant 0.000000e+00 : f32
    %2 = vector.broadcast %cst_3 : f32 to vector<1x1x18x4xf32>
    %c0_4 = arith.constant 0 : index
    %c17 = arith.constant 17 : index
    %c0_5 = arith.constant 0 : index
    %c0_6 = arith.constant 0 : index
    %3 = vector.load %arg7[%c0_4, %c17, %c0_5, %c0_6] : memref<1x18x18x4xf32, #tpu.memory_space<vmem>>, vector<1x1x18x4xf32>
    tpu.vector_store %arg7[%c0_4, %c17, %c0_5, %c0_6], %2 {strides = array<i32>} : memref<1x18x18x4xf32, #tpu.memory_space<vmem>>, vector<1x1x18x4xf32>,
    %cst_7 = arith.constant 0.000000e+00 : f32
    %4 = vector.broadcast %cst_7 : f32 to vector<1x18x1x4xf32>
    %c0_8 = arith.constant 0 : index
    %c0_9 = arith.constant 0 : index
    %c0_10 = arith.constant 0 : index
    %c0_11 = arith.constant 0 : index
    %5 = vector.load %arg7[%c0_8, %c0_9, %c0_10, %c0_11] : memref<1x18x18x4xf32, #tpu.memory_space<vmem>>, vector<1x18x1x4xf32>
    tpu.vector_store %arg7[%c0_8, %c0_9, %c0_10, %c0_11], %4 {strides = array<i32>} : memref<1x18x18x4xf32, #tpu.memory_space<vmem>>, vector<1x18x1x4xf32>,
    %cst_12 = arith.constant 0.000000e+00 : f32
    %6 = vector.broadcast %cst_12 : f32 to vector<1x18x1x4xf32>
    %c0_13 = arith.constant 0 : index
    %c0_14 = arith.constant 0 : index
    %c17_15 = arith.constant 17 : index
    %c0_16 = arith.constant 0 : index
    %7 = vector.load %arg7[%c0_13, %c0_14, %c17_15, %c0_16] : memref<1x18x18x4xf32, #tpu.memory_space<vmem>>, vector<1x18x1x4xf32>
    tpu.vector_store %arg7[%c0_13, %c0_14, %c17_15, %c0_16], %6 {strides = array<i32>} : memref<1x18x18x4xf32, #tpu.memory_space<vmem>>, vector<1x18x1x4xf32>,
    %c0_17 = arith.constant 0 : index
    %c0_18 = arith.constant 0 : index
    %c0_19 = arith.constant 0 : index
    %c0_20 = arith.constant 0 : index
    %8 = vector.load %arg1[%c0_17, %c0_18, %c0_19, %c0_20] : memref<1x16x16x4xf32, #tpu.memory_space<vmem>>, vector<1x16x16x4xf32>
    %cst_21 = arith.constant 0.000000e+00 : f32
    %9 = vector.broadcast %cst_21 : f32 to vector<1x16x16x4xf32>
    %10 = arith.maximumf %8, %9 : vector<1x16x16x4xf32>
    %c0_22 = arith.constant 0 : index
    %c1 = arith.constant 1 : index
    %c1_23 = arith.constant 1 : index
    %c0_24 = arith.constant 0 : index
    %11 = vector.load %arg7[%c0_22, %c1, %c1_23, %c0_24] : memref<1x18x18x4xf32, #tpu.memory_space<vmem>>, vector<1x16x16x4xf32>
    tpu.vector_store %arg7[%c0_22, %c1, %c1_23, %c0_24], %10 {strides = array<i32>} : memref<1x18x18x4xf32, #tpu.memory_space<vmem>>, vector<1x16x16x4xf32>,
    %c0_25 = arith.constant 0 : index
    %c0_26 = arith.constant 0 : index
    %c0_27 = arith.constant 0 : index
    %c0_28 = arith.constant 0 : index
    %12 = vector.load %arg7[%c0_25, %c0_26, %c0_27, %c0_28] : memref<1x18x18x4xf32, #tpu.memory_space<vmem>>, vector<1x18x18x4xf32>
    %13 = vector.extract_strided_slice %12 {offsets = [0, 0, 0, 0], sizes = [1, 16, 16, 4], strides = [1, 1, 1, 1]} : vector<1x18x18x4xf32> to vector<1x16x16x4xf32>
    %14 = vector.extract_strided_slice %12 {offsets = [0, 0, 1, 0], sizes = [1, 16, 16, 4], strides = [1, 1, 1, 1]} : vector<1x18x18x4xf32> to vector<1x16x16x4xf32>
    %15 = vector.extract_strided_slice %12 {offsets = [0, 0, 2, 0], sizes = [1, 16, 16, 4], strides = [1, 1, 1, 1]} : vector<1x18x18x4xf32> to vector<1x16x16x4xf32>
    %16 = vector.extract_strided_slice %12 {offsets = [0, 1, 0, 0], sizes = [1, 16, 16, 4], strides = [1, 1, 1, 1]} : vector<1x18x18x4xf32> to vector<1x16x16x4xf32>
    %17 = vector.extract_strided_slice %12 {offsets = [0, 1, 1, 0], sizes = [1, 16, 16, 4], strides = [1, 1, 1, 1]} : vector<1x18x18x4xf32> to vector<1x16x16x4xf32>
    %18 = vector.extract_strided_slice %12 {offsets = [0, 1, 2, 0], sizes = [1, 16, 16, 4], strides = [1, 1, 1, 1]} : vector<1x18x18x4xf32> to vector<1x16x16x4xf32>
    %19 = vector.extract_strided_slice %12 {offsets = [0, 2, 0, 0], sizes = [1, 16, 16, 4], strides = [1, 1, 1, 1]} : vector<1x18x18x4xf32> to vector<1x16x16x4xf32>
    %20 = vector.extract_strided_slice %12 {offsets = [0, 2, 1, 0], sizes = [1, 16, 16, 4], strides = [1, 1, 1, 1]} : vector<1x18x18x4xf32> to vector<1x16x16x4xf32>
    %21 = vector.extract_strided_slice %12 {offsets = [0, 2, 2, 0], sizes = [1, 16, 16, 4], strides = [1, 1, 1, 1]} : vector<1x18x18x4xf32> to vector<1x16x16x4xf32>
    %22 = tpu.concatenate %13, %14, %15, %16, %17, %18, %19, %20, %21 in 3 : vector<1x16x16x4xf32>, vector<1x16x16x4xf32>, vector<1x16x16x4xf32>, vector<1x16x16x4xf32>, vector<1x16x16x4xf32>, vector<1x16x16x4xf32>, vector<1x16x16x4xf32>, vector<1x16x16x4xf32>, vector<1x16x16x4xf32> -> vector<1x16x16x36xf32>
    %23 = vector.shape_cast %22 : vector<1x16x16x36xf32> to vector<256x36xf32>
    %24 = arith.truncf %23 : vector<256x36xf32> to vector<256x36xbf16>
    %c0_29 = arith.constant 0 : index
    %c0_30 = arith.constant 0 : index
    %25 = vector.load %arg2[%c0_29, %c0_30] : memref<36x4xbf16, #tpu.memory_space<vmem>>, vector<36x4xbf16>
    %cst_31 = arith.constant dense<0.000000e+00> : vector<256x4xf32>
    %26 = tpu.matmul %24, %25, %cst_31 {dimension_numbers = #tpu.dot_dimension_numbers<[1], [0], [0], [1], [0, 0, 1, 1], [], []>} : vector<256x36xbf16>, vector<36x4xbf16>, vector<256x4xf32> -> vector<256x4xf32>
    %c0_32 = arith.constant 0 : index
    %c0_33 = arith.constant 0 : index
    %27 = vector.load %arg3[%c0_32, %c0_33] : memref<1x4xf32, #tpu.memory_space<vmem>>, vector<1x4xf32>
    %28 = vector.broadcast %27 : vector<1x4xf32> to vector<256x4xf32>
    %29 = arith.addf %26, %28 : vector<256x4xf32>
    %cst_34 = arith.constant 0.000000e+00 : f32
    %30 = vector.broadcast %cst_34 : f32 to vector<256x4xf32>
    %31 = arith.maximumf %29, %30 : vector<256x4xf32>
    %32 = vector.shape_cast %31 : vector<256x4xf32> to vector<1x16x16x4xf32>
    %c0_35 = arith.constant 0 : index
    %c1_36 = arith.constant 1 : index
    %c1_37 = arith.constant 1 : index
    %c0_38 = arith.constant 0 : index
    %33 = vector.load %arg7[%c0_35, %c1_36, %c1_37, %c0_38] : memref<1x18x18x4xf32, #tpu.memory_space<vmem>>, vector<1x16x16x4xf32>
    tpu.vector_store %arg7[%c0_35, %c1_36, %c1_37, %c0_38], %32 {strides = array<i32>} : memref<1x18x18x4xf32, #tpu.memory_space<vmem>>, vector<1x16x16x4xf32>,
    %c0_39 = arith.constant 0 : index
    %c0_40 = arith.constant 0 : index
    %c0_41 = arith.constant 0 : index
    %c0_42 = arith.constant 0 : index
    %34 = vector.load %arg7[%c0_39, %c0_40, %c0_41, %c0_42] : memref<1x18x18x4xf32, #tpu.memory_space<vmem>>, vector<1x18x18x4xf32>
    %35 = vector.extract_strided_slice %34 {offsets = [0, 0, 0, 0], sizes = [1, 16, 16, 4], strides = [1, 1, 1, 1]} : vector<1x18x18x4xf32> to vector<1x16x16x4xf32>
    %36 = vector.extract_strided_slice %34 {offsets = [0, 0, 1, 0], sizes = [1, 16, 16, 4], strides = [1, 1, 1, 1]} : vector<1x18x18x4xf32> to vector<1x16x16x4xf32>
    %37 = vector.extract_strided_slice %34 {offsets = [0, 0, 2, 0], sizes = [1, 16, 16, 4], strides = [1, 1, 1, 1]} : vector<1x18x18x4xf32> to vector<1x16x16x4xf32>
    %38 = vector.extract_strided_slice %34 {offsets = [0, 1, 0, 0], sizes = [1, 16, 16, 4], strides = [1, 1, 1, 1]} : vector<1x18x18x4xf32> to vector<1x16x16x4xf32>
    %39 = vector.extract_strided_slice %34 {offsets = [0, 1, 1, 0], sizes = [1, 16, 16, 4], strides = [1, 1, 1, 1]} : vector<1x18x18x4xf32> to vector<1x16x16x4xf32>
    %40 = vector.extract_strided_slice %34 {offsets = [0, 1, 2, 0], sizes = [1, 16, 16, 4], strides = [1, 1, 1, 1]} : vector<1x18x18x4xf32> to vector<1x16x16x4xf32>
    %41 = vector.extract_strided_slice %34 {offsets = [0, 2, 0, 0], sizes = [1, 16, 16, 4], strides = [1, 1, 1, 1]} : vector<1x18x18x4xf32> to vector<1x16x16x4xf32>
    %42 = vector.extract_strided_slice %34 {offsets = [0, 2, 1, 0], sizes = [1, 16, 16, 4], strides = [1, 1, 1, 1]} : vector<1x18x18x4xf32> to vector<1x16x16x4xf32>
    %43 = vector.extract_strided_slice %34 {offsets = [0, 2, 2, 0], sizes = [1, 16, 16, 4], strides = [1, 1, 1, 1]} : vector<1x18x18x4xf32> to vector<1x16x16x4xf32>
    %44 = tpu.concatenate %35, %36, %37, %38, %39, %40, %41, %42, %43 in 3 : vector<1x16x16x4xf32>, vector<1x16x16x4xf32>, vector<1x16x16x4xf32>, vector<1x16x16x4xf32>, vector<1x16x16x4xf32>, vector<1x16x16x4xf32>, vector<1x16x16x4xf32>, vector<1x16x16x4xf32>, vector<1x16x16x4xf32> -> vector<1x16x16x36xf32>
    %45 = vector.shape_cast %44 : vector<1x16x16x36xf32> to vector<256x36xf32>
    %46 = arith.truncf %45 : vector<256x36xf32> to vector<256x36xbf16>
    %c0_43 = arith.constant 0 : index
    %c0_44 = arith.constant 0 : index
    %47 = vector.load %arg4[%c0_43, %c0_44] : memref<36x4xbf16, #tpu.memory_space<vmem>>, vector<36x4xbf16>
    %cst_45 = arith.constant dense<0.000000e+00> : vector<256x4xf32>
    %48 = tpu.matmul %46, %47, %cst_45 {dimension_numbers = #tpu.dot_dimension_numbers<[1], [0], [0], [1], [0, 0, 1, 1], [], []>} : vector<256x36xbf16>, vector<36x4xbf16>, vector<256x4xf32> -> vector<256x4xf32>
    %c0_46 = arith.constant 0 : index
    %c0_47 = arith.constant 0 : index
    %49 = vector.load %arg5[%c0_46, %c0_47] : memref<1x4xf32, #tpu.memory_space<vmem>>, vector<1x4xf32>
    %50 = vector.broadcast %49 : vector<1x4xf32> to vector<256x4xf32>
    %51 = arith.addf %48, %50 : vector<256x4xf32>
    %c0_48 = arith.constant 0 : index
    %c0_49 = arith.constant 0 : index
    %c0_50 = arith.constant 0 : index
    %c0_51 = arith.constant 0 : index
    %52 = vector.load %arg1[%c0_48, %c0_49, %c0_50, %c0_51] : memref<1x16x16x4xf32, #tpu.memory_space<vmem>>, vector<1x16x16x4xf32>
    %53 = vector.shape_cast %52 : vector<1x16x16x4xf32> to vector<256x4xf32>
    %54 = arith.addf %51, %53 : vector<256x4xf32>
    %55 = vector.shape_cast %54 : vector<256x4xf32> to vector<1x16x16x4xf32>
    %c0_52 = arith.constant 0 : index
    %c0_53 = arith.constant 0 : index
    %c0_54 = arith.constant 0 : index
    %c0_55 = arith.constant 0 : index
    %56 = vector.load %arg6[%c0_52, %c0_53, %c0_54, %c0_55] : memref<1x16x16x4xf32, #tpu.memory_space<vmem>>, vector<1x16x16x4xf32>
    tpu.vector_store %arg6[%c0_52, %c0_53, %c0_54, %c0_55], %55 {strides = array<i32>} : memref<1x16x16x4xf32, #tpu.memory_space<vmem>>, vector<1x16x16x4xf32>,
    return
  }
  func.func @transform_0(%arg0: i32) -> (i32, i32, i32, i32) {
    %c0_i32 = arith.constant 0 : i32
    %c0_i32_0 = arith.constant 0 : i32
    %c0_i32_1 = arith.constant 0 : i32
    %c0_i32_2 = arith.constant 0 : i32
    return %arg0, %c0_i32, %c0_i32_0, %c0_i32_1 : i32, i32, i32, i32
  }
  func.func @transform_1(%arg0: i32) -> (i32, i32) {
    %c0_i32 = arith.constant 0 : i32
    %c0_i32_0 = arith.constant 0 : i32
    %c0_i32_1 = arith.constant 0 : i32
    return %c0_i32, %c0_i32_0 : i32, i32
  }
  func.func @transform_2(%arg0: i32) -> (i32, i32) {
    %c0_i32 = arith.constant 0 : i32
    %c0_i32_0 = arith.constant 0 : i32
    %c0_i32_1 = arith.constant 0 : i32
    return %c0_i32, %c0_i32_0 : i32, i32
  }
  func.func @transform_3(%arg0: i32) -> (i32, i32) {
    %c0_i32 = arith.constant 0 : i32
    %c0_i32_0 = arith.constant 0 : i32
    %c0_i32_1 = arith.constant 0 : i32
    return %c0_i32, %c0_i32_0 : i32, i32
  }
  func.func @transform_4(%arg0: i32) -> (i32, i32) {
    %c0_i32 = arith.constant 0 : i32
    %c0_i32_0 = arith.constant 0 : i32
    %c0_i32_1 = arith.constant 0 : i32
    return %c0_i32, %c0_i32_0 : i32, i32
  }
  func.func @transform_5(%arg0: i32) -> (i32, i32, i32, i32) {
    %c0_i32 = arith.constant 0 : i32
    %c0_i32_0 = arith.constant 0 : i32
    %c0_i32_1 = arith.constant 0 : i32
    %c0_i32_2 = arith.constant 0 : i32
    return %arg0, %c0_i32, %c0_i32_0, %c0_i32_1 : i32, i32, i32, i32
  }
}

</mosaic_0001>

<bundles_post_ra>
// kernel: tpu_custom_call.1
= control target key start
LH: loop header
LB: loop body
LE: loop exit
PB: predicated region body
PF: predicated region fallthrough
CT: control target
= control target key end

     0   :  { %s5058_s18 = smov 0   ;;  %s8173_s0 = inlined_call_operand.vmem [shape: f32[2,16,16,4], index: 0, kind: input, shape index: {}]   ;;  %s8174_s1 = inlined_call_operand.vmem [shape: bf16[36,4], index: 1, kind: input, shape index: {}]   ;;  %s8175_s2 = inlined_call_operand.vmem [shape: f32[1,4], index: 2, kind: input, shape index: {}]   ;;  %s8176_s3 = inlined_call_operand.vmem [shape: bf16[36,4], index: 3, kind: input, shape index: {}]   ;;  %s8177_s4 = inlined_call_operand.vmem [shape: f32[1,4], index: 4, kind: input, shape index: {}]   ;;  %s8178_s5 = inlined_call_operand.vmem [shape: f32[2,16,16,4], index: 5, kind: output, shape index: {}]  }
   0x1 LB: > { %s3579_s19 = sadd.s32 4294967295, %s5017_s18   ;;  %p3583_p0 = scmp.ge.s32.totalorder %s5017_s18, 1  ;;  %s5017_s18 = sphi %s5058_s18, %s15_s18  }
   0x2   : > { %p187_p1 = scmp.lt.s32.totalorder %s5017_s18, 3 }
   0x4   : > { %p188_p2 = pnand %p3583_p0, %p187_p1 }
   0x6   : > { %191 = sbr.rel (%p188_p2) target bundleno = 1301 (0x515), region = 40 }
   0xb   : > { %vm226_vm0 = vcmask 31744   ;;  %vm229_vm1 = vcmask 25600   ;;  %v5019_v0 = vmov 0.0   ;;  %vm235_vm2 = vcmask 24576   ;;  %s5020_s20 = smov 4   ;;  %p215_p3 = scmp.lt.s32.totalorder %s3579_s19, 1 }
   0xc   : > { %227 = vst.msk [vmem:[#allocation2] sm:$0xff] %vm226_vm0, %v5019_v0  ;;  %vm471_vm3 = vcmask 1046528   ;;  %vm648_vm4 = vcmask 1045504   ;;  %s5021_s25 = smov 8   ;;  %s5022_s26 = smov 12   ;;  %vm1779_vm5 = vcmask 1041408  }
   0xd   : > { %228 = vst.msk [vmem:[#allocation2 + $0x8] sm:$0xff] %vm226_vm0, %v5019_v0  ;;  %s8535_s19 = smov (!%p215_p3, %s3579_s19), 1  ;;  %s5023_s27 = smov 16   ;;  %vm1492_vm6 = vcmask 97280   ;;  %vm1459_vm7 = vcmask 64512   ;;  %vm1525_vm8 = vcmask 130048  }
   0xe   : > { %230 = vst.msk [vmem:[#allocation2 + $0x10] sm:$0x3] %vm229_vm1, %v5019_v0  ;;  %s3638_s21 = sshll.u32 %s8535_s19, 8  ;;  %s5024_s28 = smov 20   ;;  %vm1591_vm9 = vcmask 195584   ;;  %vm1558_vm10 = vcmask 162816  }
   0xf   : > { %234 = vst.msk [vmem:[#allocation2 + $0x1a8] sm:$0x3] %vm229_vm1, %v5019_v0  ;;  %s5152_s24 = scalar_lea.vmem %s8173_s0, %s3638_s21  ;;  %s5025_s29 = smov 24   ;;  %vm1624_vm11 = vcmask 228352   ;;  %vm1657_vm12 = vcmask 261120   ;;  %vm1730_vm13 = vcmask 293888  }
  0x10   : > { %236 = vst.msk [vmem:[#allocation2] sm:$0x1] %vm235_vm2, %v5019_v0  ;;  %v278_v10 = vld [vmem:[%s5152_s24 + $0x30] sm:$0xff]  ;;  %v279_v11 = vld [vmem:[%s5152_s24 + $0x38] sm:$0xff]  ;;  %v272_v16 = vld [vmem:[%s5152_s24] sm:$0xff]  ;;  %s5026_s30 = smov 28  }
  0x11   : > { %254 = vst.msk [vmem:[#allocation2 + $0x11] sm:$0x1] %vm235_vm2, %v5019_v0  ;;  %v310_v12 = vmax.f32 %v278_v10, 0.0  ;;  %v274_v13 = vld [vmem:[%s5152_s24 + $0x10] sm:$0xff]  ;;  %v311_v14 = vmax.f32 %v279_v11, 0.0  ;;  %v275_v15 = vld [vmem:[%s5152_s24 + $0x18] sm:$0xff] }
  0x12   : > { %232 = vst.msk [vmem:[#allocation2 + $0x198] sm:$0xff] %vm226_vm0, %v5019_v0  ;;  %v306_v17 = vmax.f32 %v274_v13, 0.0  ;;  %v273_v18 = vld [vmem:[%s5152_s24 + $0x8] sm:$0xff]  ;;  %v307_v19 = vmax.f32 %v275_v15, 0.0  ;;  %v280_v20 = vld [vmem:[%s5152_s24 + $0x40] sm:$0xff]  ;;  %v304_v21 = vmax.f32 %v272_v16, 0.0 }
  0x13   : > { %233 = vst.msk [vmem:[#allocation2 + $0x1a0] sm:$0xff] %vm226_vm0, %v5019_v0  ;;  %v281_v22 = vld [vmem:[%s5152_s24 + $0x48] sm:$0xff]  ;;  %v276_v23 = vld [vmem:[%s5152_s24 + $0x20] sm:$0xff]  ;;  %v305_v24 = vmax.f32 %v273_v18, 0.0  ;;  %v282_v26 = vld [vmem:[%s5152_s24 + $0x50] sm:$0xff]  ;;  %v312_v28 = vmax.f32 %v280_v20, 0.0 }
  0x14   : > { %v5080_v1 = vld [vmem:[#allocation2 + $0x8] sm:$0xff]  ;;  %237 = vst.msk [vmem:[#allocation2 + $0x18] sm:$0x1] %vm235_vm2, %v5019_v0  ;;  %v283_v27 = vld [vmem:[%s5152_s24 + $0x58] sm:$0xff]  ;;  %v286_v29 = vld [vmem:[%s5152_s24 + $0x70] sm:$0xff]  ;;  %v313_v31 = vmax.f32 %v281_v22, 0.0 }
  0x15   : > { %238 = vst.msk [vmem:[#allocation2 + $0x30] sm:$0x1] %vm235_vm2, %v5019_v0  ;;  %v473_v2 = vrot.slane %v5080_v1, 1  ;;  %v277_v25 = vld [vmem:[%s5152_s24 + $0x28] sm:$0xff]  ;;  %v5191_v30 = vld [vmem:[%s5152_s24 + $0x78] sm:$0xff]  ;;  %v5195_v32 = vld [vmem:[%s5152_s24 + $0x60] sm:$0xff] }
  0x16   : > { %239 = vst.msk [vmem:[#allocation2 + $0x48] sm:$0x1] %vm235_vm2, %v5019_v0  ;;  %v5198_v33 = vld [vmem:[%s5152_s24 + $0x68] sm:$0xff]  ;;  %v308_v34 = vmax.f32 %v276_v23, 0.0  ;;  %v309_v35 = vmax.f32 %v277_v25, 0.0  ;;  %v314_v36 = vmax.f32 %v282_v26, 0.0 }
  0x17   : > { %v5089_v3 = vld [vmem:[#allocation2] sm:$0xff]  ;;  %240 = vst.msk [vmem:[#allocation2 + $0x60] sm:$0x1] %vm235_vm2, %v5019_v0  ;;  %v315_v37 = vmax.f32 %v283_v27, 0.0  ;;  %v318_v38 = vmax.f32 %v286_v29, 0.0  ;;  %v319_v39 = vmax.f32 %v5191_v30, 0.0 }
  0x18   : > { %v5093_v4 = vld [vmem:[#allocation2 + $0x10] sm:$0x3]  ;;  %v472_v5 = vrot.slane %v5089_v3, 1  ;;  %241 = vst.msk [vmem:[#allocation2 + $0x78] sm:$0x1] %vm235_vm2, %v5019_v0  ;;  %v5204_v40 = vld [vmem:[%s5152_s24 + $0x80] sm:$0xff] }
  0x19   : > { %v475_v6 = vrot.slane %v5093_v4, 1  ;;  %242 = vst.msk [vmem:[#allocation2 + $0x90] sm:$0x1] %vm235_vm2, %v5019_v0  ;;  %v5207_v41 = vld [vmem:[%s5152_s24 + $0x88] sm:$0xff]  ;;  %v5210_v42 = vld [vmem:[%s5152_s24 + $0xa0] sm:$0xff]  ;;  %v316_v44 = vmax.f32 %v5195_v32, 0.0 }
  0x1a   : > { %v474_v7 = vsel %vm471_vm3, %v472_v5, %v473_v2  ;;  %243 = vst.msk [vmem:[#allocation2 + $0xa8] sm:$0x1] %vm235_vm2, %v5019_v0  ;;  %v317_v45 = vmax.f32 %v5198_v33, 0.0  ;;  %v5218_v46 = vld [vmem:[%s5152_s24 + $0xa8] sm:$0xff]  ;;  %v5221_v47 = vld [vmem:[%s5152_s24 + $0x90] sm:$0xff]  ;;  %v5230_v51 = vld [vmem:[%s5152_s24 + $0x98] sm:$0xff] }
  0x1b   : > { %v476_v8 = vsel %vm471_vm3, %v473_v2, %v475_v6  ;;  %244 = vst.msk [vmem:[#allocation2 + $0xc0] sm:$0x1] %vm235_vm2, %v5019_v0  ;;  %v320_v54 = vmax.f32 %v5204_v40, 0.0  ;;  %v321_v55 = vmax.f32 %v5207_v41, 0.0  ;;  %v5238_v56 = vld [vmem:[%s5152_s24 + $0xb0] sm:$0xff]  ;;  %v324_v58 = vmax.f32 %v5210_v42, 0.0 }
  0x1c   : > { %v3667_v9 = vpack.i.bf16 %v476_v8, %v474_v7  ;;  %245 = vst.msk [vmem:[#allocation2 + $0xd8] sm:$0x1] %vm235_vm2, %v5019_v0  ;;  %v325_v59 = vmax.f32 %v5218_v46, 0.0  ;;  %v322_v60 = vmax.f32 %v5221_v47, 0.0  ;;  %v5247_v61 = vld [vmem:[%s5152_s24 + $0xb8] sm:$0xff]  ;;  %v323_v6 = vmax.f32 %v5230_v51, 0.0 }
  0x1d   : > { %246 = vst.msk [vmem:[#allocation2 + $0xf0] sm:$0x1] %vm235_vm2, %v5019_v0  ;;  %v326_v11 = vmax.f32 %v5238_v56, 0.0  ;;  %v327_v16 = vmax.f32 %v5247_v61, 0.0  ;;  %v5286_v22 = vld [vmem:[%s5152_s24 + $0xd8] sm:$0xff]  ;;  %v5305_v33 = vld [vmem:[%s5152_s24 + $0xc0] sm:$0xff] }
  0x1e   : > { %3668 = vrot.lane.b32.xlu0 %v3667_v9, %s5020_s20  ;;  %247 = vst.msk [vmem:[#allocation2 + $0x108] sm:$0x1] %vm235_vm2, %v5019_v0  ;;  %v300_v42 = vld [vmem:[%s5152_s24 + $0xe0] sm:$0xff]  ;;  %v301_v47 = vld [vmem:[%s5152_s24 + $0xe8] sm:$0xff]  ;;  %s5027_s6 = smov 32  }
  0x1f   : > { %248 = vst.msk [vmem:[#allocation2 + $0x120] sm:$0x1] %vm235_vm2, %v5019_v0 }
  0x20   : > { %249 = vst.msk [vmem:[#allocation2 + $0x138] sm:$0x1] %vm235_vm2, %v5019_v0 }
  0x21   : > { %250 = vst.msk [vmem:[#allocation2 + $0x150] sm:$0x1] %vm235_vm2, %v5019_v0 }
  0x22   : > { %251 = vst.msk [vmem:[#allocation2 + $0x168] sm:$0x1] %vm235_vm2, %v5019_v0 }
  0x23   : > { %252 = vst.msk [vmem:[#allocation2 + $0x180] sm:$0x1] %vm235_vm2, %v5019_v0 }
  0x24   : > { %255 = vst.msk [vmem:[#allocation2 + $0x29] sm:$0x1] %vm235_vm2, %v5019_v0 }
  0x25   : > { %256 = vst.msk [vmem:[#allocation2 + $0x41] sm:$0x1] %vm235_vm2, %v5019_v0 }
  0x26   : > { %257 = vst.msk [vmem:[#allocation2 + $0x59] sm:$0x1] %vm235_vm2, %v5019_v0 }
  0x27   : > { %258 = vst.msk [vmem:[#allocation2 + $0x71] sm:$0x1] %vm235_vm2, %v5019_v0 }
  0x28   : > { %259 = vst.msk [vmem:[#allocation2 + $0x89] sm:$0x1] %vm235_vm2, %v5019_v0 }
  0x29   : > { %260 = vst.msk [vmem:[#allocation2 + $0xa1] sm:$0x1] %vm235_vm2, %v5019_v0 }
  0x2a   : > { %261 = vst.msk [vmem:[#allocation2 + $0xb9] sm:$0x1] %vm235_vm2, %v5019_v0 }
  0x2b   : > { %262 = vst.msk [vmem:[#allocation2 + $0xd1] sm:$0x1] %vm235_vm2, %v5019_v0 }
  0x2c   : > { %263 = vst.msk [vmem:[#allocation2 + $0xe9] sm:$0x1] %vm235_vm2, %v5019_v0 }
  0x2d   : > { %264 = vst.msk [vmem:[#allocation2 + $0x101] sm:$0x1] %vm235_vm2, %v5019_v0 }
  0x2e   : > { %265 = vst.msk [vmem:[#allocation2 + $0x119] sm:$0x1] %vm235_vm2, %v5019_v0 }
  0x2f   : > { %266 = vst.msk [vmem:[#allocation2 + $0x131] sm:$0x1] %vm235_vm2, %v5019_v0 }
  0x30   : > { %267 = vst.msk [vmem:[#allocation2 + $0x149] sm:$0x1] %vm235_vm2, %v5019_v0 }
  0x31   : > { %268 = vst.msk [vmem:[#allocation2 + $0x161] sm:$0x1] %vm235_vm2, %v5019_v0 }
  0x32   : > { %269 = vst.msk [vmem:[#allocation2 + $0x179] sm:$0x1] %vm235_vm2, %v5019_v0 }
  0x33   : > { %270 = vst.msk [vmem:[#allocation2 + $0x191] sm:$0x1] %vm235_vm2, %v5019_v0 }
  0x34   : > { %271 = vst.msk [vmem:[#allocation2 + $0x1a9] sm:$0x1] %vm235_vm2, %v5019_v0 }
  0x35   : > { %343 = vst.msk [vmem:[#allocation2 + $0x61] sm:$0xff] %vm226_vm0, %v310_v12  ;;  %v5267_v12 = vld [vmem:[%s5152_s24 + $0xd0] sm:$0xff] }
  0x36   : > { %344 = vst.msk [vmem:[#allocation2 + $0x69] sm:$0xff] %vm226_vm0, %v311_v14  ;;  %v330_v27 = vmax.f32 %v5267_v12, 0.0 }
  0x37   : > { %253 = vst.msk [vmem:[#allocation2 + $0x198] sm:$0x1] %vm235_vm2, %v5019_v0 }
  0x38   : > { %339 = vst.msk [vmem:[#allocation2 + $0x31] sm:$0xff] %vm226_vm0, %v306_v17 }
  0x39   : > { %340 = vst.msk [vmem:[#allocation2 + $0x39] sm:$0xff] %vm226_vm0, %v307_v19 }
  0x3a   : > { %337 = vst.msk [vmem:[#allocation2 + $0x19] sm:$0xff] %vm226_vm0, %v304_v21 }
  0x3b   : > { %338 = vst.msk [vmem:[#allocation2 + $0x21] sm:$0xff] %vm226_vm0, %v305_v24 }
  0x3c   : > { %v5212_v43 = vld [vmem:[#allocation2 + $0x60] sm:$0xff]  ;;  %345 = vst.msk [vmem:[#allocation2 + $0x79] sm:$0xff] %vm226_vm0, %v312_v28 }
  0x3d   : > { %v5223_v48 = vld [vmem:[#allocation2 + $0x68] sm:$0xff]  ;;  %v5225_v49 = vld [vmem:[#allocation2 + $0x70] sm:$0x3]  ;;  %v492_v50 = vrot.slane %v5212_v43, 1  ;;  %346 = vst.msk [vmem:[#allocation2 + $0x81] sm:$0xff] %vm226_vm0, %v313_v31 }
  0x3e   : > { %v493_v52 = vrot.slane %v5223_v48, 1  ;;  %v495_v53 = vrot.slane %v5225_v49, 1  ;;  %341 = vst.msk [vmem:[#allocation2 + $0x49] sm:$0xff] %vm226_vm0, %v308_v34 }
  0x3f   : > { %v5240_v57 = vld [vmem:[#allocation2 + $0x30] sm:$0xff]  ;;  %342 = vst.msk [vmem:[#allocation2 + $0x51] sm:$0xff] %vm226_vm0, %v309_v35 }
  0x40   : > { %v494_v62 = vsel %vm471_vm3, %v492_v50, %v493_v52  ;;  %v496_v63 = vsel %vm471_vm3, %v493_v52, %v495_v53  ;;  %v5251_v0 = vld [vmem:[#allocation2 + $0x38] sm:$0xff]  ;;  %v5253_v2 = vld [vmem:[#allocation2 + $0x40] sm:$0x3]  ;;  %v482_v5 = vrot.slane %v5240_v57, 1  ;;  %347 = vst.msk [vmem:[#allocation2 + $0x91] sm:$0xff] %vm226_vm0, %v314_v36  ;;  %v5326_v50 = vld [vmem:[%s5152_s24 + $0xc8] sm:$0xff] }
  0x41   : > { %v5258_v7 = vpack.i.bf16 %v496_v63, %v494_v62  ;;  %v483_v8 = vrot.slane %v5251_v0, 1  ;;  %v485_v9 = vrot.slane %v5253_v2, 1  ;;  %v5262_v10 = vld [vmem:[#allocation2 + $0x18] sm:$0xff]  ;;  %348 = vst.msk [vmem:[#allocation2 + $0x99] sm:$0xff] %vm226_vm0, %v315_v37  ;;  %v328_v63 = vmax.f32 %v5305_v33, 0.0 }
  0x42   : > { %v5269_v13 = vld [vmem:[#allocation2 + $0x20] sm:$0xff]  ;;  %v5271_v14 = vld [vmem:[#allocation2 + $0x28] sm:$0x3]  ;;  %v477_v15 = vrot.slane %v5262_v10, 1  ;;  %351 = vst.msk [vmem:[#allocation2 + $0xc1] sm:$0xff] %vm226_vm0, %v318_v38  ;;  %v331_v38 = vmax.f32 %v5286_v22, 0.0 }
  0x43   : > { %8305 = vst [vmem:[#allocation3_spill] sm:$0xff] %v5258_v7  ;;  %3688 = vrot.lane.b32.xlu2 %v5258_v7, %s5020_s20  ;;  %v484_v17 = vsel %vm471_vm3, %v482_v5, %v483_v8  ;;  %v486_v18 = vsel %vm471_vm3, %v483_v8, %v485_v9  ;;  %v478_v19 = vrot.slane %v5269_v13, 1  ;;  %v480_v20 = vrot.slane %v5271_v14, 1  ;;  %v5282_v21 = vld [vmem:[#allocation2 + $0x78] sm:$0xff] }
  0x44   : > { %352 = vst.msk [vmem:[#allocation2 + $0xc9] sm:$0xff] %vm226_vm0, %v319_v39  ;;  %v5288_v23 = vpack.i.bf16 %v486_v18, %v484_v17  ;;  %v5290_v24 = vld [vmem:[#allocation2 + $0x80] sm:$0xff]  ;;  %v5292_v25 = vld [vmem:[#allocation2 + $0x88] sm:$0x3]  ;;  %v497_v26 = vrot.slane %v5282_v21, 1  ;;  %v332_v33 = vmax.f32 %v300_v42, 0.0 }
  0x45   : > { %349 = vst.msk [vmem:[#allocation2 + $0xa9] sm:$0xff] %vm226_vm0, %v316_v44  ;;  %v479_v28 = vsel %vm471_vm3, %v477_v15, %v478_v19  ;;  %v481_v29 = vsel %vm471_vm3, %v478_v19, %v480_v20  ;;  %v498_v30 = vrot.slane %v5290_v24, 1  ;;  %v500_v31 = vrot.slane %v5292_v25, 1  ;;  %v5301_v32 = vld [vmem:[#allocation2 + $0x48] sm:$0xff] }
  0x46   : > { %8306 = vst [vmem:[#allocation4_spill] sm:$0xff] %v5288_v23  ;;  %3678 = vrot.lane.b32.xlu1 %v5288_v23, %s5020_s20  ;;  %v5309_v34 = vpack.i.bf16 %v481_v29, %v479_v28  ;;  %v5311_v35 = vld [vmem:[#allocation2 + $0x50] sm:$0xff]  ;;  %v5313_v36 = vld [vmem:[#allocation2 + $0x58] sm:$0x3]  ;;  %v487_v37 = vrot.slane %v5301_v32, 1  ;;  %v329_v20 = vmax.f32 %v5326_v50, 0.0 }
  0x47   : > { %350 = vst.msk [vmem:[#allocation2 + $0xb1] sm:$0xff] %vm226_vm0, %v317_v45  ;;  %v499_v39 = vsel %vm471_vm3, %v497_v26, %v498_v30  ;;  %v501_v40 = vsel %vm471_vm3, %v498_v30, %v500_v31  ;;  %v488_v41 = vrot.slane %v5311_v35, 1  ;;  %v490_v44 = vrot.slane %v5313_v36, 1  ;;  %v5322_v45 = vld [vmem:[#allocation2 + $0x90] sm:$0xff] }
  0x48   : > { %8307 = vst [vmem:[#allocation5_spill] sm:$0xff] %v5309_v34  ;;  %3673 = vrot.lane.b32.xlu0 %v5309_v34, %s5020_s20  ;;  %v5330_v52 = vpack.i.bf16 %v501_v40, %v499_v39  ;;  %v5332_v53 = vld [vmem:[#allocation2 + $0x98] sm:$0xff]  ;;  %v502_v62 = vrot.slane %v5322_v45, 1  ;;  %v333_v50 = vmax.f32 %v301_v47, 0.0 }
  0x49   : > { %353 = vst.msk [vmem:[#allocation2 + $0xd9] sm:$0xff] %vm226_vm0, %v320_v54  ;;  %v5334_v54 = vld [vmem:[#allocation2 + $0xa0] sm:$0x3]  ;;  %v491_v5 = vsel %vm471_vm3, %v488_v41, %v490_v44  ;;  %v503_v8 = vrot.slane %v5332_v53, 1 }
  0x4a   : > { %354 = vst.msk [vmem:[#allocation2 + $0xe1] sm:$0xff] %vm226_vm0, %v321_v55  ;;  %v489_v55 = vsel %vm471_vm3, %v487_v37, %v488_v41  ;;  %v505_v9 = vrot.slane %v5334_v54, 1  ;;  %v5345_v15 = vld [vmem:[#allocation2 + $0xc0] sm:$0xff] }
  0x4b   : > { %8308 = vst [vmem:[#allocation6_spill] sm:$0xff] %v5330_v52  ;;  %v5351_v17 = vpack.i.bf16 %v491_v5, %v489_v55  ;;  %v5355_v18 = vld [vmem:[#allocation2 + $0xd0] sm:$0x3]  ;;  %v512_v19 = vrot.slane %v5345_v15, 1  ;;  %3693 = vrot.lane.b32.xlu2 %v5330_v52, %s5020_s20  ;;  %v504_v46 = vsel %vm471_vm3, %v502_v62, %v503_v8 }
  0x4c   : > { %357 = vst.msk [vmem:[#allocation2 + $0x109] sm:$0xff] %vm226_vm0, %v324_v58  ;;  %v5353_v58 = vld [vmem:[#allocation2 + $0xc8] sm:$0xff]  ;;  %v515_v26 = vrot.slane %v5355_v18, 1 }
  0x4d   : > { %358 = vst.msk [vmem:[#allocation2 + $0x111] sm:$0xff] %vm226_vm0, %v325_v59  ;;  %v506_v59 = vsel %vm471_vm3, %v503_v8, %v505_v9  ;;  %v513_v22 = vrot.slane %v5353_v58, 1  ;;  %v5368_v28 = vld [vmem:[#allocation2 + $0xa8] sm:$0xff] }
  0x4e   : > { %8309 = vst [vmem:[#allocation7_spill] sm:$0xff] %v5351_v17  ;;  %v5376_v29 = vld [vmem:[#allocation2 + $0xb0] sm:$0xff]  ;;  %v5378_v30 = vld [vmem:[#allocation2 + $0xb8] sm:$0x3]  ;;  %v507_v31 = vrot.slane %v5368_v28, 1  ;;  %3683 = vrot.lane.b32.xlu1 %v5351_v17, %s5020_s20 }
  0x4f   : > { %355 = vst.msk [vmem:[#allocation2 + $0xf1] sm:$0xff] %vm226_vm0, %v322_v60  ;;  %v5374_v60 = vpack.i.bf16 %v506_v59, %v504_v46  ;;  %v514_v37 = vsel %vm471_vm3, %v512_v19, %v513_v22  ;;  %v516_v51 = vsel %vm471_vm3, %v513_v22, %v515_v26  ;;  %v510_v39 = vrot.slane %v5378_v30, 1 }
  0x50   : > { %356 = vst.msk [vmem:[#allocation2 + $0xf9] sm:$0xff] %vm226_vm0, %v323_v6  ;;  %v508_v6 = vrot.slane %v5376_v29, 1  ;;  %v5388_v40 = vld [vmem:[#allocation2 + $0xd8] sm:$0xff]  ;;  %v5395_v56 = vpack.i.bf16 %v516_v51, %v514_v37 }
  0x51   : > { %8310 = vst [vmem:[#allocation8_spill] sm:$0xff] %v5374_v60  ;;  %v5399_v41 = vld [vmem:[#allocation2 + $0xe8] sm:$0x3]  ;;  %v517_v44 = vrot.slane %v5388_v40, 1  ;;  %3698 = vrot.lane.b32.xlu0 %v5374_v60, %s5020_s20 }
  0x52   : > { %359 = vst.msk [vmem:[#allocation2 + $0x121] sm:$0xff] %vm226_vm0, %v326_v11  ;;  %v5397_v11 = vld [vmem:[#allocation2 + $0xe0] sm:$0xff]  ;;  %v509_v61 = vsel %vm471_vm3, %v507_v31, %v508_v6  ;;  %v520_v55 = vrot.slane %v5399_v41, 1 }
  0x53   : > { %360 = vst.msk [vmem:[#allocation2 + $0x129] sm:$0xff] %vm226_vm0, %v327_v16  ;;  %v511_v16 = vsel %vm471_vm3, %v508_v6, %v510_v39  ;;  %v518_v62 = vrot.slane %v5397_v11, 1  ;;  %v5409_v5 = vld [vmem:[#allocation2 + $0x108] sm:$0xff]  ;;  %3708 = vrot.lane.b32.xlu2 %v5395_v56, %s5020_s20 }
  0x54   : > { %8311 = vst [vmem:[#allocation9_spill] sm:$0xff] %v5395_v56  ;;  %v5414_v8 = vld [vmem:[#allocation2 + $0x110] sm:$0xff]  ;;  %v5416_v12 = vld [vmem:[#allocation2 + $0x118] sm:$0x3]  ;;  %v5427_v59 = vpack.i.bf16 %v511_v16, %v509_v61 }
  0x55   : > { %363 = vst.msk [vmem:[#allocation2 + $0x151] sm:$0xff] %vm226_vm0, %v330_v27  ;;  %v527_v27 = vrot.slane %v5409_v5, 1  ;;  %v519_v9 = vsel %vm471_vm3, %v517_v44, %v518_v62  ;;  %v521_v42 = vsel %vm471_vm3, %v518_v62, %v520_v55  ;;  %v528_v19 = vrot.slane %v5414_v8, 1 }
  0x56   : > { %364 = vst.msk [vmem:[#allocation2 + $0x159] sm:$0xff] %vm226_vm0, %v331_v38  ;;  %v530_v46 = vrot.slane %v5416_v12, 1  ;;  %v5424_v38 = vld [vmem:[#allocation2 + $0xf0] sm:$0xff]  ;;  %3703 = vrot.lane.b32.xlu1 %v5427_v59, %s5020_s20 }
  0x57   : > { %361 = vst.msk [vmem:[#allocation2 + $0x139] sm:$0xff] %vm226_vm0, %v328_v63  ;;  %v5429_v22 = vld [vmem:[#allocation2 + $0xf8] sm:$0xff]  ;;  %v5431_v26 = vld [vmem:[#allocation2 + $0x100] sm:$0x3]  ;;  %v522_v63 = vrot.slane %v5424_v38, 1  ;;  %v529_v51 = vsel %vm471_vm3, %v527_v27, %v528_v19 }
  0x58   : > { %362 = vst.msk [vmem:[#allocation2 + $0x141] sm:$0xff] %vm226_vm0, %v329_v20  ;;  %v523_v47 = vrot.slane %v5429_v22, 1  ;;  %v525_v31 = vrot.slane %v5431_v26, 1  ;;  %v5442_v20 = vpack.i.bf16 %v521_v42, %v519_v9  ;;  %v531_v6 = vsel %vm471_vm3, %v528_v19, %v530_v46 }
  0x59   : > { %8312 = vst [vmem:[#allocation10_spill] sm:$0xff] %v5427_v59  ;;  %v5439_v37 = vld [vmem:[#allocation2 + $0x120] sm:$0xff]  ;;  %v5461_v27 = vpack.i.bf16 %v531_v6, %v529_v51 }
  0x5a   : > { %365 = vst.msk [vmem:[#allocation2 + $0x169] sm:$0xff] %vm226_vm0, %v332_v33  ;;  %v5446_v33 = vld [vmem:[#allocation2 + $0x128] sm:$0xff]  ;;  %v5448_v39 = vld [vmem:[#allocation2 + $0x130] sm:$0x3]  ;;  %v532_v44 = vrot.slane %v5439_v37, 1  ;;  %v524_v9 = vsel %vm471_vm3, %v522_v63, %v523_v47  ;;  %v526_v42 = vsel %vm471_vm3, %v523_v47, %v525_v31  ;;  %3713 = vrot.lane.b32.xlu0 %v5442_v20, %s5020_s20 }
  0x5b   : > { %366 = vst.msk [vmem:[#allocation2 + $0x171] sm:$0xff] %vm226_vm0, %v333_v50  ;;  %v533_v61 = vrot.slane %v5446_v33, 1  ;;  %v535_v16 = vrot.slane %v5448_v39, 1  ;;  %v5478_v47 = vpack.i.bf16 %v526_v42, %v524_v9  ;;  %3723 = vrot.lane.b32.xlu2 %v5461_v27, %s5020_s20 }
  0x5c   : > { %8313 = vst [vmem:[#allocation11_spill] sm:$0xff] %v5442_v20  ;;  %v5453_v62 = vld [vmem:[#allocation2 + $0x150] sm:$0xff] }
  0x5d   : > { %v5457_v50 = vld [vmem:[#allocation2 + $0x158] sm:$0xff]  ;;  %v5459_v55 = vld [vmem:[#allocation2 + $0x160] sm:$0x3]  ;;  %8315 = vst [vmem:[#allocation13_spill] sm:$0xff] %v5461_v27  ;;  %v542_v19 = vrot.slane %v5453_v62, 1  ;;  %v534_v51 = vsel %vm471_vm3, %v532_v44, %v533_v61  ;;  %v536_v63 = vsel %vm471_vm3, %v533_v61, %v535_v16 }
  0x5e   : > { %8314 = vst [vmem:[#allocation12_spill] sm:$0xff] %v5459_v55  ;;  %v543_v46 = vrot.slane %v5457_v50, 1  ;;  %v545_v56 = vrot.slane %v5459_v55, 1  ;;  %v5470_v59 = vld [vmem:[#allocation2 + $0x138] sm:$0xff]  ;;  %v5491_v44 = vpack.i.bf16 %v536_v63, %v534_v51  ;;  %3718 = vrot.lane.b32.xlu1 %v5478_v47, %s5020_s20 }
  0x5f   : > { %v5472_v52 = vld [vmem:[#allocation2 + $0x140] sm:$0xff]  ;;  %v5474_v60 = vld [vmem:[#allocation2 + $0x148] sm:$0x3]  ;;  %v537_v7 = vrot.slane %v5470_v59, 1 }
  0x60   : > { %v538_v23 = vrot.slane %v5472_v52, 1  ;;  %v540_v17 = vrot.slane %v5474_v60, 1  ;;  %v544_v61 = vsel %vm471_vm3, %v542_v19, %v543_v46  ;;  %v546_v16 = vsel %vm471_vm3, %v543_v46, %v545_v56 }
  0x61   : > { %v5480_v31 = vld [vmem:[#allocation2 + $0x168] sm:$0xff]  ;;  %v5500_v27 = vpack.i.bf16 %v546_v16, %v544_v61  ;;  %v654_v56 = vrot.slane %v5262_v10, 2  ;;  %v655_v19 = vrot.slane %v5269_v13, 2  ;;  %v657_v46 = vrot.slane %v5271_v14, 2 }
  0x62   : > { %v5482_v6 = vld [vmem:[#allocation2 + $0x170] sm:$0xff]  ;;  %v5484_v20 = vld [vmem:[#allocation2 + $0x178] sm:$0x3]  ;;  %v547_v9 = vrot.slane %v5480_v31, 1  ;;  %v539_v55 = vsel %vm471_vm3, %v537_v7, %v538_v23  ;;  %v541_v51 = vsel %vm471_vm3, %v538_v23, %v540_v17  ;;  %3728 = vrot.lane.b32.xlu0 %v5491_v44, %s5020_s20  ;;  %v652_v7 = vrot.slane %v5093_v4, 2 }
  0x63   : > { %8316 = vst [vmem:[#allocation14_spill] sm:$0xff] %v5484_v20  ;;  %v548_v42 = vrot.slane %v5482_v6, 1  ;;  %v550_v34 = vrot.slane %v5484_v20, 1  ;;  %v5511_v61 = vpack.i.bf16 %v541_v51, %v539_v55  ;;  %3738 = vrot.lane.b32.xlu2 %v5500_v27, %s5020_s20  ;;  %v649_v23 = vrot.slane %v5089_v3, 2 }
  0x64   : > { %v650_v17 = vrot.slane %v5080_v1, 2  ;;  %v656_v14 = vsel %vm648_vm4, %v654_v56, %v655_v19  ;;  %v660_v55 = vrot.slane %v5251_v0, 2  ;;  %v670_v51 = vrot.slane %v5223_v48, 2 }
  0x65   : > { %v549_v63 = vsel %vm471_vm3, %v547_v9, %v548_v42  ;;  %v551_v20 = vsel %vm471_vm3, %v548_v42, %v550_v34  ;;  %v658_v9 = vsel %vm648_vm4, %v655_v19, %v657_v46  ;;  %v659_v34 = vrot.slane %v5240_v57, 2 }
  0x66   : > { %v5518_v16 = vpack.i.bf16 %v551_v20, %v549_v63  ;;  %v662_v42 = vrot.slane %v5253_v2, 2  ;;  %3733 = vrot.lane.b32.xlu1 %v5511_v61, %s5020_s20  ;;  %v651_v4 = vsel %vm648_vm4, %v649_v23, %v650_v17  ;;  %v653_v3 = vsel %vm648_vm4, %v650_v17, %v652_v7 }
  0x67   : > { %v5529_v1 = vpack.i.bf16 %v658_v9, %v656_v14  ;;  %v669_v20 = vrot.slane %v5212_v43, 2  ;;  %v672_v56 = vrot.slane %v5225_v49, 2  ;;  %v661_v2 = vsel %vm648_vm4, %v659_v34, %v660_v55 }
  0x68   : > { %v663_v19 = vsel %vm648_vm4, %v660_v55, %v662_v42  ;;  %v3747_v46 = vpack.i.bf16 %v653_v3, %v651_v4  ;;  %v664_v63 = vrot.slane %v5301_v32, 2  ;;  %v665_v7 = vrot.slane %v5311_v35, 2 }
  0x69   : > { %v667_v23 = vrot.slane %v5313_v36, 2  ;;  %v5543_v17 = vpack.i.bf16 %v663_v19, %v661_v2  ;;  %v671_v14 = vsel %vm648_vm4, %v669_v20, %v670_v51  ;;  %v673_v49 = vsel %vm648_vm4, %v670_v51, %v672_v56 }
  0x6a   : > { %3743 = vrot.lane.b32.xlu0 %v5518_v16, %s5020_s20  ;;  %v674_v9 = vrot.slane %v5282_v21, 2  ;;  %v675_v34 = vrot.slane %v5290_v24, 2  ;;  %v677_v55 = vrot.slane %v5292_v25, 2  ;;  %v666_v42 = vsel %vm648_vm4, %v664_v63, %v665_v7 }
  0x6b   : > { %3753 = vrot.lane.b32.xlu2 %v5529_v1, %s5021_s25  ;;  %v668_v4 = vsel %vm648_vm4, %v665_v7, %v667_v23  ;;  %v5553_v3 = vpack.i.bf16 %v673_v49, %v671_v14  ;;  %v684_v36 = vrot.slane %v5368_v28, 2  ;;  %v685_v20 = vrot.slane %v5376_v29, 2 }
  0x6c   : > { %v687_v51 = vrot.slane %v5378_v30, 2  ;;  %v676_v56 = vsel %vm648_vm4, %v674_v9, %v675_v34  ;;  %v678_v25 = vsel %vm648_vm4, %v675_v34, %v677_v55  ;;  %v5562_v2 = vpack.i.bf16 %v668_v4, %v666_v42 }
  0x6d   : > { %v679_v19 = vrot.slane %v5322_v45, 2  ;;  %v682_v63 = vrot.slane %v5334_v54, 2  ;;  %v5569_v7 = vpack.i.bf16 %v678_v25, %v676_v56  ;;  %v686_v23 = vsel %vm648_vm4, %v684_v36, %v685_v20 }
  0x6e   : > { %3748 = vrot.lane.b32.xlu1 %v3747_v46, %s5021_s25  ;;  %v680_v46 = vrot.slane %v5332_v53, 2  ;;  %v688_v30 = vsel %vm648_vm4, %v685_v20, %v687_v51  ;;  %v689_v14 = vrot.slane %v5345_v15, 2  ;;  %v690_v49 = vrot.slane %v5353_v58, 2 }
  0x6f   : > { %v692_v9 = vrot.slane %v5355_v18, 2  ;;  %v5580_v54 = vpack.i.bf16 %v688_v30, %v686_v23  ;;  %v699_v42 = vrot.slane %v5424_v38, 2  ;;  %v700_v4 = vrot.slane %v5429_v22, 2 }
  0x70   : > { %v681_v34 = vsel %vm648_vm4, %v679_v19, %v680_v46  ;;  %v683_v55 = vsel %vm648_vm4, %v680_v46, %v682_v63  ;;  %v702_v36 = vrot.slane %v5431_v26, 2  ;;  %v691_v18 = vsel %vm648_vm4, %v689_v14, %v690_v49 }
  0x71   : > { %v693_v20 = vsel %vm648_vm4, %v690_v49, %v692_v9  ;;  %v5589_v51 = vpack.i.bf16 %v683_v55, %v681_v34  ;;  %v694_v56 = vrot.slane %v5388_v40, 2  ;;  %v695_v25 = vrot.slane %v5397_v11, 2 }
  0x72   : > { %3758 = vrot.lane.b32.xlu0 %v5543_v17, %s5021_s25  ;;  %v697_v19 = vrot.slane %v5399_v41, 2  ;;  %v5596_v46 = vpack.i.bf16 %v693_v20, %v691_v18  ;;  %v701_v63 = vsel %vm648_vm4, %v699_v42, %v700_v4  ;;  %v703_v26 = vsel %vm648_vm4, %v700_v4, %v702_v36 }
  0x73   : > { %3768 = vrot.lane.b32.xlu2 %v5553_v3, %s5021_s25  ;;  %v704_v23 = vrot.slane %v5409_v5, 2  ;;  %v705_v30 = vrot.slane %v5414_v8, 2  ;;  %v707_v14 = vrot.slane %v5416_v12, 2  ;;  %v696_v49 = vsel %vm648_vm4, %v694_v56, %v695_v25 }
  0x74   : > { %v698_v9 = vsel %vm648_vm4, %v695_v25, %v697_v19  ;;  %v5607_v41 = vpack.i.bf16 %v703_v26, %v701_v63  ;;  %v714_v34 = vrot.slane %v5470_v59, 2  ;;  %v715_v55 = vrot.slane %v5472_v52, 2 }
  0x75   : > { %v717_v42 = vrot.slane %v5474_v60, 2  ;;  %v706_v12 = vsel %vm648_vm4, %v704_v23, %v705_v30  ;;  %v708_v4 = vsel %vm648_vm4, %v705_v30, %v707_v14  ;;  %v5616_v36 = vpack.i.bf16 %v698_v9, %v696_v49  ;;  %v8317_v23 = vld [vmem:[#allocation12_spill] sm:$0xff] }
  0x76   : > { %3763 = vrot.lane.b32.xlu1 %v5562_v2, %s5021_s25  ;;  %v709_v18 = vrot.slane %v5439_v37, 2  ;;  %v710_v20 = vrot.slane %v5446_v33, 2  ;;  %v712_v56 = vrot.slane %v5448_v39, 2  ;;  %v5623_v25 = vpack.i.bf16 %v708_v4, %v706_v12  ;;  %v8318_v4 = vld [vmem:[#allocation14_spill] sm:$0xff] }
  0x77   : > { %v716_v19 = vsel %vm648_vm4, %v714_v34, %v715_v55  ;;  %v718_v60 = vsel %vm648_vm4, %v715_v55, %v717_v42  ;;  %v719_v63 = vrot.slane %v5453_v62, 2  ;;  %v720_v26 = vrot.slane %v5457_v50, 2 }
  0x78   : > { %v722_v30 = vrot.slane %v8317_v23, 2  ;;  %v711_v14 = vsel %vm648_vm4, %v709_v18, %v710_v20  ;;  %v713_v49 = vsel %vm648_vm4, %v710_v20, %v712_v56  ;;  %v5634_v39 = vpack.i.bf16 %v718_v60, %v716_v19  ;;  %v303_v23 = vld [vmem:[%s5152_s24 + $0xf8] sm:$0xff] }
  0x79   : > { %v721_v9 = vsel %vm648_vm4, %v719_v63, %v720_v26  ;;  %v5640_v55 = vpack.i.bf16 %v713_v49, %v711_v14  ;;  %v724_v42 = vrot.slane %v5480_v31, 2  ;;  %v725_v12 = vrot.slane %v5482_v6, 2 }
  0x7a   : > { %3773 = vrot.lane.b32.xlu0 %v5569_v7, %s5021_s25  ;;  %v723_v34 = vsel %vm648_vm4, %v720_v26, %v722_v30  ;;  %v727_v18 = vrot.slane %v8318_v4, 2  ;;  %v3827_v60 = vpack.i.bf16 %v5269_v13, %v5262_v10  ;;  %v302_v26 = vld [vmem:[%s5152_s24 + $0xf0] sm:$0xff]  ;;  %v335_v14 = vmax.f32 %v303_v23, 0.0 }
  0x7b   : > { %3783 = vrot.lane.b32.xlu2 %v5580_v54, %s5021_s25  ;;  %v5647_v20 = vpack.i.bf16 %v723_v34, %v721_v9  ;;  %v726_v56 = vsel %vm648_vm4, %v724_v42, %v725_v12  ;;  %v334_v30 = vmax.f32 %v302_v26, 0.0  ;;  %v5664_v49 = vpack.i.bf16 %v5251_v0, %v5240_v57  ;;  %v8326_v9 = vld [vmem:[#allocation3_spill] sm:$0xff] }
  0x7c   : > { %v728_v19 = vsel %vm648_vm4, %v725_v12, %v727_v18  ;;  %368 = vst.msk [vmem:[#allocation2 + $0x189] sm:$0xff] %vm226_vm0, %v335_v14  ;;  %v5672_v10 = vpack.i.bf16 %v5223_v48, %v5212_v43  ;;  %v5678_v13 = vpack.i.bf16 %v5311_v35, %v5301_v32  ;;  %v5684_v57 = vpack.i.bf16 %v5290_v24, %v5282_v21  ;;  %v8329_v12 = vld [vmem:[#allocation8_spill] sm:$0xff]  ;;  %v8331_v18 = vld [vmem:[#allocation6_spill] sm:$0xff]  ;;  %v8335_v26 = vld [vmem:[#allocation11_spill] sm:$0xff] }
  0x7d   : > { %v5657_v63 = vpack.i.bf16 %v728_v19, %v726_v56  ;;  %367 = vst.msk [vmem:[#allocation2 + $0x181] sm:$0xff] %vm226_vm0, %v334_v30  ;;  %v5692_v43 = vpack.i.bf16 %v5376_v29, %v5368_v28  ;;  %v5698_v48 = vpack.i.bf16 %v5332_v53, %v5322_v45  ;;  %v5704_v21 = vpack.i.bf16 %v5353_v58, %v5345_v15  ;;  %v8332_v56 = vld [vmem:[#allocation10_spill] sm:$0xff]  ;;  %v8337_v30 = vld [vmem:[#allocation9_spill] sm:$0xff] }
  0x7e   : > { %3778 = vrot.lane.b32.xlu1 %v5589_v51, %s5021_s25  ;;  %v5712_v32 = vpack.i.bf16 %v5429_v22, %v5424_v38  ;;  %v5718_v35 = vpack.i.bf16 %v5397_v11, %v5388_v40  ;;  %v5724_v45 = vpack.i.bf16 %v5414_v8, %v5409_v5  ;;  %v5732_v15 = vpack.i.bf16 %v5472_v52, %v5470_v59 }
  0x7f   : > { %v5740_v28 = vpack.i.bf16 %v5446_v33, %v5439_v37  ;;  %v5746_v29 = vpack.i.bf16 %v5457_v50, %v5453_v62  ;;  %v5768_v59 = vpack.i.bf16 %v5482_v6, %v5480_v31  ;;  %v8321_v37 = vld [vmem:[#allocation5_spill] sm:$0xff]  ;;  %v8324_v50 = vld [vmem:[#allocation7_spill] sm:$0xff]  ;;  %v8325_v6 = vld [vmem:[#allocation4_spill] sm:$0xff] }
  0x82   : > { %3788 = vrot.lane.b32.xlu0 %v5596_v46, %s5021_s25 }
  0x83   : > { %3798 = vrot.lane.b32.xlu2 %v5607_v41, %s5021_s25 }
  0x84   : > { %v5748_v40 = vld [vmem:[#allocation2 + $0x180] sm:$0xff]  ;;  %v5750_v52 = vld [vmem:[#allocation2 + $0x188] sm:$0xff] }
  0x85   : > { %v5758_v5 = vpack.i.bf16 %v5750_v52, %v5748_v40 }
  0x86   : > { %3793 = vrot.lane.b32.xlu1 %v5616_v36, %s5021_s25 }
  0x8a   : > { %3803 = vrot.lane.b32.xlu0 %v5623_v25, %s5021_s25 }
  0x8b   : > { %3813 = vrot.lane.b32.xlu2 %v5634_v39, %s5021_s25 }
  0x8e   : > { %3808 = vrot.lane.b32.xlu1 %v5640_v55, %s5021_s25 }
  0x90   : > { %v5736_v58 = vpop.permute.xlu0 %3668 }
  0x92   : > { %3818 = vrot.lane.b32.xlu0 %v5647_v20, %s5021_s25 }
  0x93   : > { %3828 = vrot.lane.b32.xlu2 %v3827_v60, %s5022_s26 }
  0x96   : > { %3823 = vrot.lane.b32.xlu1 %v5657_v63, %s5021_s25 }
  0x9a   : > { %3833 = vrot.lane.b32.xlu0 %v5664_v49, %s5022_s26 }
  0x9b   : > { %3843 = vrot.lane.b32.xlu2 %v5672_v10, %s5022_s26 }
  0x9d   : > { %v5686_v0 = vpop.permute.xlu2 %3688 }
  0x9e   : > { %3838 = vrot.lane.b32.xlu1 %v5678_v13, %s5022_s26 }
  0xa2   : > { %3848 = vrot.lane.b32.xlu0 %v5684_v57, %s5022_s26 }
  0xa3   : > { %3858 = vrot.lane.b32.xlu2 %v5692_v43, %s5022_s26 }
  0xa5   : > { %v5706_v24 = vpop.permute.xlu2 %3693 }
  0xa6   : > { %3853 = vrot.lane.b32.xlu1 %v5698_v48, %s5022_s26 }
  0xaa   : > { %3863 = vrot.lane.b32.xlu0 %v5704_v21, %s5022_s26 }
  0xab   : > { %3873 = vrot.lane.b32.xlu2 %v5712_v32, %s5022_s26 }
  0xad   : > { %v5726_v53 = vpop.permute.xlu2 %3708 }
  0xae   : > { %3868 = vrot.lane.b32.xlu1 %v5718_v35, %s5022_s26 }
  0xb2   : > { %3878 = vrot.lane.b32.xlu0 %v5724_v45, %s5022_s26 }
  0xb3   : > { %3888 = vrot.lane.b32.xlu2 %v5732_v15, %s5022_s26 }
  0xb5   : > { %v5752_v11 = vpop.permute.xlu2 %3723 }
  0xb6   : > { %8319 = vst [vmem:[#allocation12_spill] sm:$0xff] %v5752_v11  ;;  %3883 = vrot.lane.b32.xlu1 %v5740_v28, %s5022_s26 }
  0xb8   : > { %v5762_v8 = vpop.permute.xlu1 %3678 }
  0xba   : > { %3893 = vrot.lane.b32.xlu0 %v5746_v29, %s5022_s26  ;;  %v5764_v38 = vpop.permute.xlu0 %3673 }
  0xbb   : > { %3903 = vrot.lane.b32.xlu2 %v5758_v5, %s5022_s26 }
  0xbd   : > { %v5772_v22 = vpop.permute.xlu2 %3738 }
  0xbe   : > { %8320 = vst [vmem:[#allocation14_spill] sm:$0xff] %v5772_v22  ;;  %3898 = vrot.lane.b32.xlu1 %v5768_v59, %s5022_s26 }
  0xc0   : > { %v5778_v33 = vpop.permute.xlu1 %3683 }
  0xc1   : > { %8322 = vst [vmem:[#allocation5_spill] sm:$0xff] %v5778_v33 }
  0xc2   : > { %3908 = vrot.lane.b32.xlu0 %v8321_v37, %s5023_s27 }
  0xc3   : > { %v5780_v62 = vpop.permute.xlu0 %3698  ;;  %3918 = vrot.lane.b32.xlu2 %v8324_v50, %s5023_s27 }
  0xc4   : > { %8323 = vst [vmem:[#allocation15_spill] sm:$0xff] %v5780_v62  ;;  %v924_v62 = vrot.slane %v5748_v40, 1 }
  0xc5   : > { %v5784_v31 = vpop.permute.xlu2 %3753 }
  0xc6   : > { %3913 = vrot.lane.b32.xlu1 %v8325_v6, %s5023_s27 }
  0xc8   : > { %v5790_v34 = vpop.permute.xlu1 %3703 }
  0xc9   : > { %8327 = vst [vmem:[#allocation7_spill] sm:$0xff] %v5790_v34  ;;  %v419_v34 = vld [vmem:[#allocation2 + $0x190] sm:$0x3] }
  0xca   : > { %3923 = vrot.lane.b32.xlu0 %v8326_v9, %s5023_s27  ;;  %v927_v22 = vrot.slane %v419_v34, 1 }
  0xcb   : > { %3933 = vrot.lane.b32.xlu2 %v8329_v12, %s5023_s27 }
  0xcc   : > { %v5792_v42 = vpop.permute.xlu0 %3713 }
  0xcd   : > { %8328 = vst [vmem:[#allocation4_spill] sm:$0xff] %v5792_v42  ;;  %v5796_v4 = vpop.permute.xlu2 %3768 }
  0xce   : > { %8330 = vst [vmem:[#allocation3_spill] sm:$0xff] %v5796_v4  ;;  %3928 = vrot.lane.b32.xlu1 %v8331_v18, %s5023_s27  ;;  %v8341_v4 = vld [vmem:[#allocation13_spill] sm:$0xff] }
  0xd0   : > { %v5802_v19 = vpop.permute.xlu1 %3718 }
  0xd1   : > { %8333 = vst [vmem:[#allocation8_spill] sm:$0xff] %v5802_v19 }
  0xd2   : > { %3938 = vrot.lane.b32.xlu0 %v8332_v56, %s5023_s27 }
  0xd3   : > { %3948 = vrot.lane.b32.xlu2 %v8335_v26, %s5023_s27 }
  0xd4   : > { %v5804_v60 = vpop.permute.xlu0 %3728 }
  0xd5   : > { %8334 = vst [vmem:[#allocation6_spill] sm:$0xff] %v5804_v60  ;;  %v5808_v23 = vpop.permute.xlu2 %3783 }
  0xd6   : > { %8336 = vst [vmem:[#allocation10_spill] sm:$0xff] %v5808_v23  ;;  %3943 = vrot.lane.b32.xlu1 %v8337_v30, %s5023_s27  ;;  %v925_v23 = vrot.slane %v5750_v52, 1 }
  0xd8   : > { %v5814_v14 = vpop.permute.xlu1 %3733  ;;  %v928_v19 = vsel %vm471_vm3, %v925_v23, %v927_v22 }
  0xd9   : > { %8338 = vst [vmem:[#allocation11_spill] sm:$0xff] %v5814_v14 }
  0xda   : > { %3953 = vrot.lane.b32.xlu0 %v5478_v47, %s5023_s27 }
  0xdb   : > { %3963 = vrot.lane.b32.xlu2 %v5491_v44, %s5023_s27 }
  0xdc   : > { %v5816_v37 = vpop.permute.xlu0 %3743 }
  0xdd   : > { %8339 = vst [vmem:[#allocation9_spill] sm:$0xff] %v5816_v37  ;;  %v5820_v60 = vpop.permute.xlu2 %3798  ;;  %v926_v37 = vsel %vm471_vm3, %v924_v62, %v925_v23 }
  0xde   : > { %8340 = vst [vmem:[#allocation16_spill] sm:$0xff] %v5820_v60  ;;  %3958 = vrot.lane.b32.xlu1 %v8341_v4, %s5023_s27  ;;  %v5836_v60 = vpack.i.bf16 %v928_v19, %v926_v37 }
  0xe0   : > { %v5828_v14 = vpop.permute.xlu1 %3748 }
  0xe2   : > { %3968 = vrot.lane.b32.xlu0 %v5511_v61, %s5023_s27 }
  0xe3   : > { %3978 = vrot.lane.b32.xlu2 %v5518_v16, %s5023_s27 }
  0xe4   : > { %v5832_v42 = vpop.permute.xlu0 %3758 }
  0xe5   : > { %8342 = vst [vmem:[#allocation13_spill] sm:$0xff] %v5832_v42  ;;  %v5838_v33 = vpop.permute.xlu2 %3813 }
  0xe6   : > { %8343 = vst [vmem:[#allocation17_spill] sm:$0xff] %v5838_v33  ;;  %3973 = vrot.lane.b32.xlu1 %v5500_v27, %s5023_s27 }
  0xe8   : > { %v5844_v11 = vpop.permute.xlu1 %3763 }
  0xe9   : > { %8344 = vst [vmem:[#allocation18_spill] sm:$0xff] %v5844_v11 }
  0xea   : > { %3983 = vrot.lane.b32.xlu0 %v5836_v60, %s5023_s27 }
  0xeb   : > { %3993 = vrot.lane.b32.xlu2 %v5543_v17, %s5024_s28 }
  0xec   : > { %v5846_v62 = vpop.permute.xlu0 %3773 }
  0xed   : > { %8345 = vst [vmem:[#allocation19_spill] sm:$0xff] %v5846_v62  ;;  %v5850_v22 = vpop.permute.xlu2 %3828 }
  0xee   : > { %3988 = vrot.lane.b32.xlu1 %v5529_v1, %s5024_s28 }
  0xf0   : > { %v5856_v19 = vpop.permute.xlu1 %3778 }
  0xf1   : > { %8346 = vst [vmem:[#allocation20_spill] sm:$0xff] %v5856_v19 }
  0xf2   : > { %3998 = vrot.lane.b32.xlu0 %v5562_v2, %s5024_s28 }
  0xf3   : > { %4008 = vrot.lane.b32.xlu2 %v5569_v7, %s5024_s28 }
  0xf4   : > { %v5858_v23 = vpop.permute.xlu0 %3788 }
  0xf5   : > { %8347 = vst [vmem:[#allocation21_spill] sm:$0xff] %v5858_v23  ;;  %v5862_v37 = vpop.permute.xlu2 %3843 }
  0xf6   : > { %8348 = vst [vmem:[#allocation22_spill] sm:$0xff] %v5862_v37  ;;  %4003 = vrot.lane.b32.xlu1 %v5553_v3, %s5024_s28 }
  0xf8   : > { %v5868_v33 = vpop.permute.xlu1 %3793 }
  0xf9   : > { %8349 = vst [vmem:[#allocation23_spill] sm:$0xff] %v5868_v33  ;;  %v1028_v33 = vrot.slane %v419_v34, 2 }
  0xfa   : > { %4013 = vrot.lane.b32.xlu0 %v5589_v51, %s5024_s28 }
  0xfb   : > { %4023 = vrot.lane.b32.xlu2 %v5596_v46, %s5024_s28 }
  0xfc   : > { %v5870_v1 = vpop.permute.xlu0 %3803 }
  0xfd   : > { %8350 = vst [vmem:[#allocation24_spill] sm:$0xff] %v5870_v1  ;;  %v5874_v19 = vpop.permute.xlu2 %3858 }
  0xfe   : > { %8351 = vst [vmem:[#allocation25_spill] sm:$0xff] %v5874_v19  ;;  %4018 = vrot.lane.b32.xlu1 %v5580_v54, %s5024_s28 }
 0x100   : > { %v5880_v62 = vpop.permute.xlu1 %3808 }
 0x101   : > { %8352 = vst [vmem:[#allocation26_spill] sm:$0xff] %v5880_v62  ;;  %v1026_v62 = vrot.slane %v5750_v52, 2 }
 0x102   : > { %4028 = vrot.lane.b32.xlu0 %v5616_v36, %s5024_s28 }
 0x103   : > { %4038 = vrot.lane.b32.xlu2 %v5623_v25, %s5024_s28  ;;  %v1029_v23 = vsel %vm648_vm4, %v1026_v62, %v1028_v33 }
 0x104   : > { %v5882_v37 = vpop.permute.xlu0 %3818 }
 0x105   : > { %8353 = vst [vmem:[#allocation27_spill] sm:$0xff] %v5882_v37  ;;  %v5886_v11 = vpop.permute.xlu2 %3873  ;;  %v1025_v37 = vrot.slane %v5748_v40, 2 }
 0x106   : > { %8354 = vst [vmem:[#allocation28_spill] sm:$0xff] %v5886_v11  ;;  %4033 = vrot.lane.b32.xlu1 %v5607_v41, %s5024_s28 }
 0x107   : > { %v1027_v11 = vsel %vm648_vm4, %v1025_v37, %v1026_v62 }
 0x108   : > { %v5892_v19 = vpop.permute.xlu1 %3823  ;;  %v5912_v40 = vpack.i.bf16 %v1029_v23, %v1027_v11  ;;  %v5966_v23 = vld [vmem:[#allocation2 + $0x1a0] sm:$0xff] }
 0x109   : > { %8355 = vst [vmem:[#allocation29_spill] sm:$0xff] %v5892_v19 }
 0x10a   : > { %4043 = vrot.lane.b32.xlu0 %v5640_v55, %s5024_s28 }
 0x10b   : > { %4053 = vrot.lane.b32.xlu2 %v5647_v20, %s5024_s28 }
 0x10c   : > { %v5894_v1 = vpop.permute.xlu0 %3833 }
 0x10d   : > { %8356 = vst [vmem:[#allocation30_spill] sm:$0xff] %v5894_v1  ;;  %v5900_v42 = vpop.permute.xlu2 %3888 }
 0x10e   : > { %8357 = vst [vmem:[#allocation31_spill] sm:$0xff] %v5900_v42  ;;  %4048 = vrot.lane.b32.xlu1 %v5634_v39, %s5024_s28  ;;  %v3831_v42 = vunpack.i.h.bf16 %v5850_v22 }
 0x110   : > { %v5908_v19 = vpop.permute.xlu1 %3838 }
 0x112   : > { %4058 = vrot.lane.b32.xlu0 %v5657_v63, %s5024_s28 }
 0x113   : > { %4068 = vrot.lane.b32.xlu2 %v5664_v49, %s5025_s29 }
 0x114   : > { %v5910_v1 = vpop.permute.xlu0 %3848 }
 0x115   : > { %v5916_v52 = vpop.permute.xlu2 %3903 }
 0x116   : > { %8358 = vst [vmem:[#allocation32_spill] sm:$0xff] %v5916_v52  ;;  %4063 = vrot.lane.b32.xlu1 %v5912_v40, %s5024_s28 }
 0x118   : > { %v5922_v33 = vpop.permute.xlu1 %3853 }
 0x119   : > { %8359 = vst [vmem:[#allocation33_spill] sm:$0xff] %v5922_v33  ;;  %v3750_v33 = vunpack.i.l.bf16 %v5828_v14 }
 0x11a   : > { %4073 = vrot.lane.b32.xlu0 %v5678_v13, %s5025_s29 }
 0x11b   : > { %4083 = vrot.lane.b32.xlu2 %v5684_v57, %s5025_s29 }
 0x11c   : > { %v5924_v34 = vpop.permute.xlu0 %3863 }
 0x11d   : > { %8360 = vst [vmem:[#allocation34_spill] sm:$0xff] %v5924_v34  ;;  %v5928_v11 = vpop.permute.xlu2 %3918 }
 0x11e   : > { %4078 = vrot.lane.b32.xlu1 %v5672_v10, %s5025_s29 }
 0x120   : > { %v5934_v49 = vpop.permute.xlu1 %3868 }
 0x122   : > { %4088 = vrot.lane.b32.xlu0 %v5698_v48, %s5025_s29 }
 0x123   : > { %4098 = vrot.lane.b32.xlu2 %v5704_v21, %s5025_s29 }
 0x124   : > { %v5936_v62 = vpop.permute.xlu0 %3878 }
 0x125   : > { %v5940_v13 = vpop.permute.xlu2 %3933 }
 0x126   : > { %8361 = vst [vmem:[#allocation35_spill] sm:$0xff] %v5940_v13  ;;  %4093 = vrot.lane.b32.xlu1 %v5692_v43, %s5025_s29 }
 0x128   : > { %v5946_v57 = vpop.permute.xlu1 %3883 }
 0x12a   : > { %4103 = vrot.lane.b32.xlu0 %v5718_v35, %s5025_s29  ;;  %v5964_v35 = vld [vmem:[#allocation2 + $0x198] sm:$0xff] }
 0x12b   : > { %4113 = vrot.lane.b32.xlu2 %v5724_v45, %s5025_s29 }
 0x12c   : > { %v5948_v10 = vpop.permute.xlu0 %3893 }
 0x12d   : > { %8362 = vst [vmem:[#allocation36_spill] sm:$0xff] %v5948_v10  ;;  %v5952_v48 = vpop.permute.xlu2 %3948  ;;  %v3670_v10 = vunpack.i.l.bf16 %v5736_v58 }
 0x12e   : > { %4108 = vrot.lane.b32.xlu1 %v5712_v32, %s5025_s29  ;;  %v4142_v32 = vpack.i.bf16 %v5966_v23, %v5964_v35 }
 0x130   : > { %v5958_v21 = vpop.permute.xlu1 %3898 }
 0x131   : > { %8363 = vst [vmem:[#allocation37_spill] sm:$0xff] %v5958_v21 }
 0x132   : > { %4118 = vrot.lane.b32.xlu0 %v5740_v28, %s5025_s29 }
 0x133   : > { %4128 = vrot.lane.b32.xlu2 %v5746_v29, %s5025_s29 }
 0x134   : > { %v5960_v43 = vpop.permute.xlu0 %3908 }
 0x135   : > { %v5970_v45 = vpop.permute.xlu2 %3963 }
 0x136   : > { %4123 = vrot.lane.b32.xlu1 %v5732_v15, %s5025_s29 }
 0x138   : > { %v5976_v28 = vpop.permute.xlu1 %3913 }
 0x13a   : > { %4133 = vrot.lane.b32.xlu0 %v5768_v59, %s5025_s29 }
 0x13b   : > { %4143 = vrot.lane.b32.xlu2 %v4142_v32, %s5025_s29  ;;  %v1226_v32 = vrot.slane %v5966_v23, 1 }
 0x13c   : > { %v5978_v37 = vpop.permute.xlu0 %3923 }
 0x13d   : > { %v5987_v29 = vpop.permute.xlu2 %3978 }
 0x13e   : > { %4138 = vrot.lane.b32.xlu1 %v5758_v5, %s5025_s29  ;;  %8364 = vst [vmem:[#allocation38_spill] sm:$0xff] %v5987_v29 }
 0x140   : > { %v5985_v15 = vpop.permute.xlu1 %3928 }
 0x142   : > { %4148 = vrot.lane.b32.xlu0 %v8325_v6, %s5026_s30 }
 0x143   : > { %4158 = vrot.lane.b32.xlu2 %v8326_v9, %s5026_s30 }
 0x144   : > { %v5989_v52 = vpop.permute.xlu0 %3938 }
 0x145   : > { %8365 = vst [vmem:[#allocation39_spill] sm:$0xff] %v5989_v52  ;;  %v5999_v59 = vpop.permute.xlu2 %3993 }
 0x146   : > { %4153 = vrot.lane.b32.xlu1 %v8324_v50, %s5026_s30 }
 0x148   : > { %v5997_v5 = vpop.permute.xlu1 %3943 }
 0x149   : > { %8366 = vst [vmem:[#allocation40_spill] sm:$0xff] %v5997_v5 }
 0x14a   : > { %4163 = vrot.lane.b32.xlu0 %v8331_v18, %s5026_s30 }
 0x14b   : > { %4173 = vrot.lane.b32.xlu2 %v8332_v56, %s5026_s30 }
 0x14c   : > { %v6001_v6 = vpop.permute.xlu0 %3953 }
 0x14d   : > { %v6015_v18 = vpop.permute.xlu2 %4008 }
 0x14e   : > { %4168 = vrot.lane.b32.xlu1 %v8329_v12, %s5026_s30 }
 0x150   : > { %v6009_v9 = vpop.permute.xlu1 %3958 }
 0x152   : > { %4178 = vrot.lane.b32.xlu0 %v8337_v30, %s5026_s30  ;;  %v422_v30 = vld [vmem:[#allocation2 + $0x1a8] sm:$0x3] }
 0x153   : > { %4188 = vrot.lane.b32.xlu2 %v5478_v47, %s5026_s30  ;;  %v1225_v47 = vrot.slane %v5964_v35, 1  ;;  %v1228_v5 = vrot.slane %v422_v30, 1 }
 0x154   : > { %v6011_v50 = vpop.permute.xlu0 %3968 }
 0x155   : > { %8367 = vst [vmem:[#allocation41_spill] sm:$0xff] %v6011_v50  ;;  %v6029_v29 = vpop.permute.xlu2 %4023  ;;  %v4950_v50 = vld [vmem:[#allocation2 + $0x68] sm:$0xff] }
 0x156   : > { %4183 = vrot.lane.b32.xlu1 %v8335_v26, %s5026_s30  ;;  %8370 = vst [vmem:[#allocation44_spill] sm:$0xff] %v6029_v29  ;;  %v1227_v26 = vsel %vm471_vm3, %v1225_v47, %v1226_v32 }
 0x158   : > { %v6021_v56 = vpop.permute.xlu1 %3973 }
 0x159   : > { %8368 = vst [vmem:[#allocation42_spill] sm:$0xff] %v6021_v56 }
 0x15a   : > { %4193 = vrot.lane.b32.xlu0 %v8341_v4, %s5026_s30 }
 0x15b   : > { %4203 = vrot.lane.b32.xlu2 %v5511_v61, %s5026_s30 }
 0x15c   : > { %v6023_v12 = vpop.permute.xlu0 %3983 }
 0x15d   : > { %8369 = vst [vmem:[#allocation43_spill] sm:$0xff] %v6023_v12  ;;  %v1229_v12 = vsel %vm471_vm3, %v1226_v32, %v1228_v5  ;;  %v6045_v29 = vpop.permute.xlu2 %4038  ;;  %v1326_v5 = vrot.slane %v5964_v35, 2  ;;  %v1329_v32 = vrot.slane %v422_v30, 2 }
 0x15e   : > { %4198 = vrot.lane.b32.xlu1 %v5491_v44, %s5026_s30  ;;  %v4222_v21 = vpack.i.bf16 %v1229_v12, %v1227_v26 }
 0x160   : > { %v6035_v4 = vpop.permute.xlu1 %3988 }
 0x162   : > { %4208 = vrot.lane.b32.xlu0 %v5500_v27, %s5026_s30 }
 0x163   : > { %4218 = vrot.lane.b32.xlu2 %v5836_v60, %s5026_s30  ;;  %v1327_v60 = vrot.slane %v5966_v23, 2 }
 0x164   : > { %v6039_v61 = vpop.permute.xlu0 %3998 }
 0x166   : > { %4213 = vrot.lane.b32.xlu1 %v5518_v16, %s5026_s30 }
 0x168   : > { %v6048_v27 = vpop.permute.xlu1 %4003 }
 0x16a   : > { %4223 = vrot.lane.b32.xlu0 %v4222_v21, %s5026_s30  ;;  %v6062_v21 = vpop.permute.xlu2 %4053 }
 0x16b   : > { %4233 = vrot.lane.b32.xlu2 %v5562_v2, %s5027_s6  ;;  %8373 = vst [vmem:[#allocation47_spill] sm:$0xff] %v6062_v21  ;;  %v1328_v2 = vsel %vm648_vm4, %v1326_v5, %v1327_v60 }
 0x16c   : > { %v6050_v44 = vpop.permute.xlu0 %4013 }
 0x16d   : > { %8371 = vst [vmem:[#allocation45_spill] sm:$0xff] %v6050_v44 }
 0x16e   : > { %4228 = vrot.lane.b32.xlu1 %v5543_v17, %s5027_s6  ;;  %v1330_v17 = vsel %vm648_vm4, %v1327_v60, %v1329_v32 }
 0x16f   : > { %v4302_v23 = vpack.i.bf16 %v1330_v17, %v1328_v2 }
 0x170   : > { %v6060_v16 = vpop.permute.xlu1 %4018 }
 0x171   : > { %8372 = vst [vmem:[#allocation46_spill] sm:$0xff] %v6060_v16 }
 0x172   : > { %4238 = vrot.lane.b32.xlu0 %v5553_v3, %s5027_s6  ;;  %v6080_v30 = vpop.permute.xlu2 %4068 }
 0x173   : > { %4248 = vrot.lane.b32.xlu2 %v5589_v51, %s5027_s6 }
 0x174   : > { %v6064_v12 = vpop.permute.xlu0 %4028 }
 0x176   : > { %4243 = vrot.lane.b32.xlu1 %v5569_v7, %s5027_s6 }
 0x178   : > { %v6074_v3 = vpop.permute.xlu1 %4033 }
 0x17a   : > { %4253 = vrot.lane.b32.xlu0 %v5580_v54, %s5027_s6  ;;  %v6092_v54 = vpop.permute.xlu2 %4083 }
 0x17b   : > { %4263 = vrot.lane.b32.xlu2 %v5616_v36, %s5027_s6 }
 0x17c   : > { %v6076_v35 = vpop.permute.xlu0 %4043 }
 0x17d   : > { %8374 = vst [vmem:[#allocation48_spill] sm:$0xff] %v6076_v35 }
 0x17e   : > { %4258 = vrot.lane.b32.xlu1 %v5596_v46, %s5027_s6 }
 0x180   : > { %v6086_v51 = vpop.permute.xlu1 %4048 }
 0x181   : > { %8375 = vst [vmem:[#allocation49_spill] sm:$0xff] %v6086_v51  ;;  %v3710_v51 = vunpack.i.l.bf16 %v5726_v53 }
 0x182   : > { %4268 = vrot.lane.b32.xlu0 %v5607_v41, %s5027_s6  ;;  %v6106_v41 = vpop.permute.xlu2 %4098 }
 0x183   : > { %4278 = vrot.lane.b32.xlu2 %v5640_v55, %s5027_s6  ;;  %8378 = vst [vmem:[#allocation52_spill] sm:$0xff] %v6106_v41 }
 0x184   : > { %v6088_v7 = vpop.permute.xlu0 %4058 }
 0x185   : > { %8376 = vst [vmem:[#allocation50_spill] sm:$0xff] %v6088_v7 }
 0x186   : > { %4273 = vrot.lane.b32.xlu1 %v5623_v25, %s5027_s6 }
 0x188   : > { %v6098_v36 = vpop.permute.xlu1 %4063 }
 0x189   : > { %8377 = vst [vmem:[#allocation51_spill] sm:$0xff] %v6098_v36 }
 0x18a   : > { %4283 = vrot.lane.b32.xlu0 %v5634_v39, %s5027_s6  ;;  %v6117_v47 = vpop.permute.xlu2 %4113 }
 0x18b   : > { %4293 = vrot.lane.b32.xlu2 %v5657_v63, %s5027_s6 }
 0x18c   : > { %v6100_v46 = vpop.permute.xlu0 %4073 }
 0x18e   : > { %4288 = vrot.lane.b32.xlu1 %v5647_v20, %s5027_s6 }
 0x190   : > { %v6110_v55 = vpop.permute.xlu1 %4078 }
 0x192   : > { %4298 = vrot.lane.b32.xlu0 %v5912_v40, %s5027_s6  ;;  %v6125_v60 = vpop.permute.xlu2 %4128 }
 0x193   : > { %8382 = vst [vmem:[#allocation56_spill] sm:$0xff] %v6125_v60  ;;  %v3690_v60 = vunpack.i.l.bf16 %v5686_v0 }
 0x194   : > { %v6112_v25 = vpop.permute.xlu0 %4088 }
 0x195   : > { %8379 = vst [vmem:[#allocation53_spill] sm:$0xff] %v6112_v25 }
 0x196   : > { %4303 = vrot.lane.b32.xlu1 %v4302_v23, %s5027_s6  ;;  %v1710_v23 = vld [vmem:[%s8174_s1 + $0x10] sm:$0x3] }
 0x197   : > { %v1724_v36 = vunpack.c.l.b16 %v1710_v23 }
 0x198   : > { %v6115_v39 = vpop.permute.xlu1 %4093 }
 0x199   : > { %8380 = vst [vmem:[#allocation54_spill] sm:$0xff] %v6115_v39  ;;  %v1727_v34 = vpack.c.b16 %v1724_v36, %v1724_v36  ;;  %v3640_v36 = vld [vmem:[%s8174_s1] sm:$0xff]  ;;  %v4949_v39 = vld [vmem:[#allocation2 + $0x8] sm:$0xff] }
 0x19a   : > { %v6131_v32 = vpop.permute.xlu2 %4143 }
 0x19b   : > { %8385 = vst [vmem:[#allocation59_spill] sm:$0xff] %v6131_v32  ;;  %v3641_v32 = vld [vmem:[%s8174_s1 + $0x8] sm:$0xff] }
 0x19c   : > { %v6119_v26 = vpop.permute.xlu0 %4103 }
 0x19d   : > { %8381 = vst [vmem:[#allocation55_spill] sm:$0xff] %v6119_v26 }
 0x1a0   : > { %v6121_v63 = vpop.permute.xlu1 %4108 }
 0x1a2   : > { %v6140_v7 = vpop.permute.xlu2 %4158 }
 0x1a4   : > { %v6123_v20 = vpop.permute.xlu0 %4118 }
 0x1a8   : > { %v6127_v5 = vpop.permute.xlu1 %4123 }
 0x1a9   : > { %8383 = vst [vmem:[#allocation57_spill] sm:$0xff] %v6127_v5 }
 0x1aa   : > { %v6152_v23 = vpop.permute.xlu2 %4173 }
 0x1ab   : > { %8388 = vst [vmem:[#allocation62_spill] sm:$0xff] %v6152_v23 }
 0x1ac   : > { %v6129_v40 = vpop.permute.xlu0 %4133 }
 0x1ad   : > { %8384 = vst [vmem:[#allocation58_spill] sm:$0xff] %v6129_v40  ;;  %v1781_v40 = vsel %vm1779_vm5, %v1727_v34, 0 }
 0x1ae   : > { %1788 = vmatpush.bf16.msra.mxu0 %v1781_v40  ;;  %3644 = vmatpush.bf16.msra.mxu2 %v1781_v40 }
 0x1b0   : > { %v6133_v2 = vpop.permute.xlu1 %4138 }
 0x1b1   : > { %8386 = vst [vmem:[#allocation60_spill] sm:$0xff] %v6133_v2 }
 0x1b2   : > { %1789 = vmatpush.bf16.msra.mxu0 %v3641_v32  ;;  %3645 = vmatpush.bf16.msra.mxu2 %v3641_v32  ;;  %v6163_v16 = vpop.permute.xlu2 %4188  ;;  %v3671_v32 = vunpack.i.h.bf16 %v5736_v58  ;;  %v4951_v58 = vld [vmem:[#allocation2] sm:$0xff] }
 0x1b4   : > { %v6135_v17 = vpop.permute.xlu0 %4148  ;;  %v1428_v44 = vsel %vm226_vm0, %v4949_v39, %v3671_v32  ;;  %v3830_v32 = vunpack.i.l.bf16 %v5850_v22  ;;  %v3911_v22 = vunpack.i.h.bf16 %v5960_v43 }
 0x1b6   : > { %1790 = vmatpush.bf16.msra.mxu0 %v3640_v36  ;;  %3646 = vmatpush.bf16.msra.mxu2 %v3640_v36  ;;  %v3696_v36 = vunpack.i.h.bf16 %v5706_v24 }
 0x1b8   : > { %v6142_v26 = vpop.permute.xlu1 %4153 }
 0x1ba   : > { %v6175_v23 = vpop.permute.xlu2 %4203 }
 0x1bb   : > { %8392 = vst [vmem:[#allocation66_spill] sm:$0xff] %v6175_v23  ;;  %v4952_v23 = vld [vmem:[#allocation2 + $0x60] sm:$0xff] }
 0x1bc   : > { %v6144_v21 = vpop.permute.xlu0 %4163 }
 0x1c0   : > { %v6150_v2 = vpop.permute.xlu1 %4168 }
 0x1c1   : > { %8387 = vst [vmem:[#allocation61_spill] sm:$0xff] %v6150_v2 }
 0x1c4   : > { %v6154_v41 = vpop.permute.xlu0 %4178 }
 0x1c5   : > { %8389 = vst [vmem:[#allocation63_spill] sm:$0xff] %v6154_v41  ;;  %v3691_v41 = vunpack.i.h.bf16 %v5686_v0  ;;  %v1427_v0 = vsel %vm226_vm0, %v4951_v58, %v3670_v10  ;;  %v4954_v10 = vld [vmem:[#allocation2 + $0xc8] sm:$0xff]  ;;  %v3910_v58 = vunpack.i.l.bf16 %v5960_v43  ;;  %v4151_v43 = vunpack.i.h.bf16 %v6135_v17 }
 0x1c7   : > { %v6181_v13 = vsel %vm226_vm0, %v4950_v50, %v3691_v41  ;;  %v4953_v50 = vld [vmem:[#allocation2 + $0x80] sm:$0xff] }
 0x1c8   : > { %v6159_v34 = vpop.permute.xlu1 %4183  ;;  %v6194_v41 = vsel %vm226_vm0, %v4953_v50, %v3696_v36  ;;  %v3990_v36 = vunpack.i.l.bf16 %v6035_v4  ;;  %v1460_v50 = vsel %vm1459_vm7, %v1427_v0, %v3750_v33  ;;  %v3681_v33 = vunpack.i.h.bf16 %v5762_v8 }
 0x1c9   : > { %8390 = vst [vmem:[#allocation64_spill] sm:$0xff] %v6159_v34  ;;  %v3711_v34 = vunpack.i.h.bf16 %v5726_v53  ;;  %v6189_v53 = vsel %vm226_vm0, %v4952_v23, %v3690_v60  ;;  %v4955_v60 = vld [vmem:[#allocation2 + $0xc0] sm:$0xff] }
 0x1ca   : > { %8394 = vst [vmem:[#allocation68_spill] sm:$0xff] %v6194_v41  ;;  %v6203_v23 = vsel %vm226_vm0, %v4955_v60, %v3710_v51  ;;  %v4070_v41 = vunpack.i.l.bf16 %v6080_v30  ;;  %v4071_v51 = vunpack.i.h.bf16 %v6080_v30 }
 0x1cc   : > { %v6161_v40 = vpop.permute.xlu0 %4193 }
 0x1d0   : > { %v6165_v56 = vpop.permute.xlu1 %4198 }
 0x1d4   : > { %v6167_v52 = vpop.permute.xlu0 %4208 }
 0x1d5   : > { %8391 = vst [vmem:[#allocation65_spill] sm:$0xff] %v6167_v52  ;;  %v3751_v52 = vunpack.i.h.bf16 %v5828_v14  ;;  %v6197_v14 = vsel %vm226_vm0, %v4954_v10, %v3711_v34  ;;  %v3991_v10 = vunpack.i.h.bf16 %v6035_v4 }
 0x1d7   : > { %v1461_v39 = vsel %vm1459_vm7, %v1428_v44, %v3751_v52  ;;  %v4150_v44 = vunpack.i.l.bf16 %v6135_v17 }
 0x1d8   : > { %v6186_v5 = vpop.permute.xlu1 %4213  ;;  %v1494_v34 = vsel %vm1492_vm6, %v1461_v39, %v3831_v42  ;;  %v3680_v42 = vunpack.i.l.bf16 %v5762_v8  ;;  %v3676_v39 = vunpack.i.h.bf16 %v5764_v38 }
 0x1d9   : > { %8393 = vst [vmem:[#allocation67_spill] sm:$0xff] %v6186_v5  ;;  %v1527_v4 = vsel %vm1525_vm8, %v1494_v34, %v3911_v22  ;;  %v3755_v22 = vunpack.i.l.bf16 %v5784_v31 }
 0x1da   : > { %v1560_v30 = vsel %vm1558_vm10, %v1527_v4, %v3991_v10  ;;  %v3756_v10 = vunpack.i.h.bf16 %v5784_v31 }
 0x1db   : > { %v1593_v17 = vsel %vm1591_vm9, %v1560_v30, %v4071_v51  ;;  %v8397_v51 = vld [vmem:[#allocation12_spill] sm:$0xff] }
 0x1dc   : > { %v6200_v5 = vpop.permute.xlu0 %4223 }
 0x1dd   : > { %8395 = vst [vmem:[#allocation69_spill] sm:$0xff] %v6200_v5  ;;  %v1493_v5 = vsel %vm1492_vm6, %v1460_v50, %v3830_v32  ;;  %v3675_v32 = vunpack.i.l.bf16 %v5764_v38  ;;  %v1626_v38 = vsel %vm1624_vm11, %v1593_v17, %v4151_v43  ;;  %v4959_v17 = vld [vmem:[#allocation2 + $0x18] sm:$0xff] }
 0x1de   : > { %v1526_v52 = vsel %vm1525_vm8, %v1493_v5, %v3910_v58  ;;  %v6225_v58 = vpop.permute.xlu2 %4218 }
 0x1df   : > { %v1559_v0 = vsel %vm1558_vm10, %v1526_v52, %v3990_v36  ;;  %8396 = vst [vmem:[#allocation70_spill] sm:$0xff] %v6225_v58 }
 0x1e0   : > { %v1592_v5 = vsel %vm1591_vm9, %v1559_v0, %v4070_v41  ;;  %v4229_v60 = vpop.permute.xlu1 %4228  ;;  %v4956_v0 = vld [vmem:[#allocation2 + $0x38] sm:$0xff] }
 0x1e1   : > { %v4231_v50 = vunpack.i.h.bf16 %v4229_v60  ;;  %v4230_v8 = vunpack.i.l.bf16 %v4229_v60  ;;  %v1625_v36 = vsel %vm1624_vm11, %v1592_v5, %v4150_v44  ;;  %v6238_v30 = vsel %vm226_vm0, %v4956_v0, %v3681_v33  ;;  %v8398_v60 = vld [vmem:[#allocation21_spill] sm:$0xff]  ;;  %v4957_v44 = vld [vmem:[#allocation2 + $0x30] sm:$0xff]  ;;  %v8400_v0 = vld [vmem:[#allocation30_spill] sm:$0xff] }
 0x1e2   : > { %v3791_v58 = vunpack.i.h.bf16 %v8398_v60  ;;  %v6242_v43 = vsel %vm226_vm0, %v4957_v44, %v3680_v42  ;;  %v4958_v5 = vld [vmem:[#allocation2 + $0x20] sm:$0xff]  ;;  %v3836_v4 = vunpack.i.h.bf16 %v8400_v0  ;;  %v3995_v44 = vunpack.i.l.bf16 %v5999_v59 }
 0x1e3   : > { %v1658_v41 = vsel %vm1657_vm12, %v1625_v36, %v4230_v8  ;;  %v1659_v52 = vsel %vm1657_vm12, %v1626_v38, %v4231_v50  ;;  %v1430_v31 = vsel %vm226_vm0, %v4958_v5, %v3676_v39  ;;  %v1429_v50 = vsel %vm226_vm0, %v4959_v17, %v3675_v32  ;;  %v8399_v36 = vld [vmem:[#allocation5_spill] sm:$0xff] }
 0x1e4   : > { %v6229_v34 = vpop.permute.xlu0 %4238  ;;  %v1690_v2 = vpack.c.bf16 %v1659_v52, %v1658_v41  ;;  %v3790_v8 = vunpack.i.l.bf16 %v8398_v60  ;;  %v1462_v33 = vsel %vm1459_vm7, %v1429_v50, %v3755_v22  ;;  %v3835_v41 = vunpack.i.l.bf16 %v8400_v0  ;;  %v8401_v52 = vld [vmem:[#allocation4_spill] sm:$0xff]  ;;  %v8402_v5 = vld [vmem:[#allocation13_spill] sm:$0xff] }
 0x1e5   : > { %v1463_v42 = vsel %vm1459_vm7, %v1430_v31, %v3756_v10  ;;  %v3871_v39 = vunpack.i.h.bf16 %v5934_v49  ;;  %v3870_v32 = vunpack.i.l.bf16 %v5934_v49  ;;  %v1477_v50 = vsel %vm1459_vm7, %v6197_v14, %v3791_v58  ;;  %v8403_v10 = vld [vmem:[#allocation23_spill] sm:$0xff] }
 0x1e6   : > { %3596 = vmatmul.msk.bf16.vlgmr.msra.gmra.mxu0 %vm1730_vm13, %v1690_v2  ;;  %v1476_v2 = vsel %vm1459_vm7, %v6203_v23, %v3790_v8  ;;  %v3916_v38 = vunpack.i.h.bf16 %v5976_v28  ;;  %v3915_v49 = vunpack.i.l.bf16 %v5976_v28  ;;  %v1495_v60 = vsel %vm1492_vm6, %v1462_v33, %v3835_v41  ;;  %v4234_v14 = vpop.permute.xlu2 %4233 }
 0x1e7   : > { %v1496_v17 = vsel %vm1492_vm6, %v1463_v42, %v3836_v4  ;;  %v3996_v22 = vunpack.i.h.bf16 %v5999_v59  ;;  %v1509_v35 = vsel %vm1492_vm6, %v1476_v2, %v3870_v32  ;;  %v1510_v23 = vsel %vm1492_vm6, %v1477_v50, %v3871_v39 }
 0x1e8   : > { %v6261_v0 = vpop.permute.xlu1 %4243  ;;  %v4076_v8 = vunpack.i.h.bf16 %v6100_v46  ;;  %v4075_v31 = vunpack.i.l.bf16 %v6100_v46  ;;  %v3951_v28 = vunpack.i.h.bf16 %v5952_v48  ;;  %v3950_v33 = vunpack.i.l.bf16 %v5952_v48 }
 0x1e9   : > { %v4156_v4 = vunpack.i.h.bf16 %v6142_v26  ;;  %v4155_v41 = vunpack.i.l.bf16 %v6142_v26  ;;  %v1528_v59 = vsel %vm1525_vm8, %v1495_v60, %v3915_v49  ;;  %v1529_v42 = vsel %vm1525_vm8, %v1496_v17, %v3916_v38 }
 0x1ea   : > { %v4235_v32 = vunpack.i.l.bf16 %v4234_v14  ;;  %v1561_v39 = vsel %vm1558_vm10, %v1528_v59, %v3995_v44  ;;  %v1562_v50 = vsel %vm1558_vm10, %v1529_v42, %v3996_v22  ;;  %v4031_v46 = vunpack.i.h.bf16 %v6064_v12  ;;  %v8405_v59 = vld [vmem:[#allocation28_spill] sm:$0xff] }
 0x1eb   : > { %v4030_v2 = vunpack.i.l.bf16 %v6064_v12  ;;  %v1594_v48 = vsel %vm1591_vm9, %v1561_v39, %v4075_v31  ;;  %v1595_v25 = vsel %vm1591_vm9, %v1562_v50, %v4076_v8  ;;  %v4111_v26 = vunpack.i.h.bf16 %v6121_v63 }
 0x1ec   : > { %v6272_v58 = vpop.permute.xlu0 %4253  ;;  %v4110_v60 = vunpack.i.l.bf16 %v6121_v63  ;;  %v4191_v38 = vunpack.i.h.bf16 %v6163_v16  ;;  %v4190_v17 = vunpack.i.l.bf16 %v6163_v16  ;;  %v1627_v44 = vsel %vm1624_vm11, %v1594_v48, %v4155_v41 }
 0x1ed   : > { %8404 = vst [vmem:[#allocation12_spill] sm:$0xff] %v6272_v58  ;;  %v4236_v58 = vunpack.i.h.bf16 %v4234_v14  ;;  %v1628_v22 = vsel %vm1624_vm11, %v1595_v25, %v4156_v4  ;;  %v1542_v49 = vsel %vm1525_vm8, %v1509_v35, %v3950_v33  ;;  %v1543_v12 = vsel %vm1525_vm8, %v1510_v23, %v3951_v28 }
 0x1ee   : > { %v1660_v31 = vsel %vm1657_vm12, %v1627_v44, %v4235_v32  ;;  %v3795_v8 = vunpack.i.l.bf16 %v8403_v10  ;;  %v3876_v63 = vunpack.i.h.bf16 %v8405_v59  ;;  %v1575_v42 = vsel %vm1558_vm10, %v1542_v49, %v4030_v2 }
 0x1ef   : > { %v1661_v14 = vsel %vm1657_vm12, %v1628_v22, %v4236_v58  ;;  %v1576_v16 = vsel %vm1558_vm10, %v1543_v12, %v4031_v46  ;;  %v1608_v25 = vsel %vm1591_vm9, %v1575_v42, %v4110_v60  ;;  %v3875_v33 = vunpack.i.l.bf16 %v8405_v59  ;;  %v4961_v12 = vld [vmem:[#allocation2 + $0xd8] sm:$0xff] }
 0x1f0   : > { %v6304_v39 = vpop.permute.xlu1 %4258  ;;  %v1609_v35 = vsel %vm1591_vm9, %v1576_v16, %v4111_v26  ;;  %v1691_v58 = vpack.c.bf16 %v1661_v14, %v1660_v31  ;;  %v1641_v4 = vsel %vm1624_vm11, %v1608_v25, %v4190_v17  ;;  %v3841_v50 = vunpack.i.h.bf16 %v5908_v19  ;;  %v4960_v17 = vld [vmem:[#allocation2 + $0xe0] sm:$0xff] }
 0x1f1   : > { %v1642_v32 = vsel %vm1624_vm11, %v1609_v35, %v4191_v38  ;;  %v3840_v46 = vunpack.i.l.bf16 %v5908_v19  ;;  %v3685_v60 = vunpack.i.l.bf16 %v8399_v36  ;;  %v3921_v26 = vunpack.i.h.bf16 %v5928_v11 }
 0x1f2   : > { %v3920_v44 = vunpack.i.l.bf16 %v5928_v11  ;;  %v8406_v38 = vunpack.i.h.bf16 %v8401_v52  ;;  %v8407_v19 = vunpack.i.l.bf16 %v8401_v52  ;;  %v3956_v14 = vunpack.i.h.bf16 %v6001_v6 }
 0x1f3   : > { %v3955_v59 = vunpack.i.l.bf16 %v6001_v6  ;;  %v8408_v42 = vunpack.i.h.bf16 %v8402_v5  ;;  %v8409_v16 = vunpack.i.l.bf16 %v8402_v5  ;;  %v8410_v52 = vunpack.i.h.bf16 %v8403_v10 }
 0x1f4   : > { %v4269_v41 = vpop.permute.xlu0 %4268  ;;  %v1446_v49 = vsel %vm226_vm0, %v4960_v17, %v8406_v38  ;;  %v1445_v31 = vsel %vm226_vm0, %v4961_v12, %v8407_v19  ;;  %v4001_v10 = vunpack.i.h.bf16 %v6039_v61  ;;  %v4240_v17 = vunpack.i.l.bf16 %v6229_v34 }
 0x1f5   : > { %v4271_v23 = vunpack.i.h.bf16 %v4269_v41  ;;  %v4270_v28 = vunpack.i.l.bf16 %v4269_v41  ;;  %v1465_v11 = vsel %vm1459_vm7, %v6238_v30, %v8408_v42  ;;  %v1464_v41 = vsel %vm1459_vm7, %v6242_v43, %v8409_v16 }
 0x1f6   : > { %3597 = vmatmul.msk.bf16.gmra.mxu0 %vm1730_vm13, %v1691_v58  ;;  %v1478_v25 = vsel %vm1459_vm7, %v1445_v31, %v3795_v8  ;;  %v1479_v35 = vsel %vm1459_vm7, %v1446_v49, %v8410_v52  ;;  %v1497_v30 = vsel %vm1492_vm6, %v1464_v41, %v3840_v46  ;;  %v1498_v5 = vsel %vm1492_vm6, %v1465_v11, %v3841_v50  ;;  %v4962_v41 = vld [vmem:[#allocation2 + $0x50] sm:$0xff] }
 0x1f7   : > { %v1674_v2 = vsel %vm1657_vm12, %v1641_v4, %v4270_v28  ;;  %v1675_v48 = vsel %vm1657_vm12, %v1642_v32, %v4271_v23  ;;  %v6339_v23 = vpop.permute.xlu2 %4248  ;;  %v1511_v6 = vsel %vm1492_vm6, %v1478_v25, %v3875_v33  ;;  %v1512_v28 = vsel %vm1492_vm6, %v1479_v35, %v3876_v63  ;;  %v8412_v35 = vld [vmem:[#allocation8_spill] sm:$0xff] }
 0x1f8   : > { %v1698_v22 = vpack.c.bf16 %v1675_v48, %v1674_v2  ;;  %v1530_v43 = vsel %vm1525_vm8, %v1497_v30, %v3920_v44  ;;  %v1531_v8 = vsel %vm1525_vm8, %v1498_v5, %v3921_v26  ;;  %v4000_v58 = vunpack.i.l.bf16 %v6039_v61  ;;  %v4274_v26 = vpop.permute.xlu1 %4273 }
 0x1f9   : > { %v1544_v4 = vsel %vm1525_vm8, %v1511_v6, %v3955_v59  ;;  %v1545_v32 = vsel %vm1525_vm8, %v1512_v28, %v3956_v14  ;;  %v4081_v33 = vunpack.i.h.bf16 %v6110_v55  ;;  %v4080_v63 = vunpack.i.l.bf16 %v6110_v55 }
 0x1fa   : > { %3604 = vmatmul.msk.bf16.vlgmr.msra.gmra.mxu2 %vm1730_vm13, %v1698_v22  ;;  %v4036_v46 = vunpack.i.h.bf16 %v6074_v3  ;;  %v4035_v50 = vunpack.i.l.bf16 %v6074_v3  ;;  %v4161_v2 = vunpack.i.h.bf16 %v6140_v7  ;;  %v4160_v48 = vunpack.i.l.bf16 %v6140_v7 }
 0x1fb   : > { %v4116_v44 = vunpack.i.h.bf16 %v6117_v47  ;;  %v4115_v61 = vunpack.i.l.bf16 %v6117_v47  ;;  %v4241_v22 = vunpack.i.h.bf16 %v6229_v34  ;;  %v1563_v38 = vsel %vm1558_vm10, %v1530_v43, %v4000_v58 }
 0x1fc   : > { %v1564_v55 = vsel %vm1558_vm10, %v1531_v8, %v4001_v10  ;;  %v4196_v49 = vunpack.i.h.bf16 %v6161_v40  ;;  %v4195_v3 = vunpack.i.l.bf16 %v6161_v40  ;;  %v1596_v12 = vsel %vm1591_vm9, %v1563_v38, %v4080_v63  ;;  %v8413_v8 = vld [vmem:[#allocation16_spill] sm:$0xff] }
 0x1fd   : > { %v1597_v7 = vsel %vm1591_vm9, %v1564_v55, %v4081_v33  ;;  %v4276_v19 = vunpack.i.h.bf16 %v4274_v26  ;;  %v4275_v31 = vunpack.i.l.bf16 %v4274_v26  ;;  %v1577_v47 = vsel %vm1558_vm10, %v1544_v4, %v4035_v50  ;;  %v8414_v33 = vld [vmem:[#allocation18_spill] sm:$0xff] }
 0x1fe   : > { %v1578_v14 = vsel %vm1558_vm10, %v1545_v32, %v4036_v46  ;;  %v1629_v34 = vsel %vm1624_vm11, %v1596_v12, %v4160_v48  ;;  %v1630_v59 = vsel %vm1624_vm11, %v1597_v7, %v4161_v2  ;;  %v1610_v42 = vsel %vm1591_vm9, %v1577_v47, %v4115_v61  ;;  %v8415_v2 = vld [vmem:[#allocation22_spill] sm:$0xff]  ;;  %v4965_v7 = vld [vmem:[#allocation2 + $0xf0] sm:$0xff] }
 0x1ff   : > { %v1611_v11 = vsel %vm1591_vm9, %v1578_v14, %v4116_v44  ;;  %v1662_v40 = vsel %vm1657_vm12, %v1629_v34, %v4240_v17  ;;  %v1663_v16 = vsel %vm1657_vm12, %v1630_v59, %v4241_v22  ;;  %v8411_v25 = vunpack.i.h.bf16 %v8399_v36  ;;  %v6380_v28 = vpop.permute.xlu2 %4263  ;;  %v4963_v22 = vld [vmem:[#allocation2 + $0x48] sm:$0xff] }
 0x200   : > { %v3721_v6 = vunpack.i.h.bf16 %v8412_v35  ;;  %v1643_v30 = vsel %vm1624_vm11, %v1610_v42, %v4195_v3  ;;  %v1644_v5 = vsel %vm1624_vm11, %v1611_v11, %v4196_v49  ;;  %v3720_v43 = vunpack.i.l.bf16 %v8412_v35  ;;  %v4964_v3 = vld [vmem:[#allocation2 + $0xf8] sm:$0xff] }
 0x201   : > { %v1434_v52 = vsel %vm226_vm0, %v4962_v41, %v8411_v25  ;;  %v3801_v10 = vunpack.i.h.bf16 %v8413_v8  ;;  %v1676_v58 = vsel %vm1657_vm12, %v1643_v30, %v4275_v31  ;;  %v1677_v4 = vsel %vm1657_vm12, %v1644_v5, %v4276_v19 }
 0x202   : > { %v3800_v32 = vunpack.i.l.bf16 %v8413_v8  ;;  %v3766_v63 = vunpack.i.h.bf16 %v8414_v33  ;;  %v3765_v46 = vunpack.i.l.bf16 %v8414_v33  ;;  %v1692_v50 = vpack.c.bf16 %v1663_v16, %v1662_v40 }
 0x203   : > { %v3846_v48 = vunpack.i.h.bf16 %v8415_v2  ;;  %v3845_v26 = vunpack.i.l.bf16 %v8415_v2  ;;  %v3881_v44 = vunpack.i.h.bf16 %v5936_v62  ;;  %v3880_v61 = vunpack.i.l.bf16 %v5936_v62 }
 0x204   : > { %v1433_v17 = vsel %vm226_vm0, %v4963_v22, %v3685_v60  ;;  %v3926_v38 = vunpack.i.h.bf16 %v5978_v37  ;;  %v3925_v55 = vunpack.i.l.bf16 %v5978_v37  ;;  %v1699_v49 = vpack.c.bf16 %v1677_v4, %v1676_v58  ;;  %v4966_v22 = vld [vmem:[#allocation2 + $0x78] sm:$0xff] }
 0x205   : > { %v1448_v12 = vsel %vm226_vm0, %v4964_v3, %v3721_v6  ;;  %v1447_v19 = vsel %vm226_vm0, %v4965_v7, %v3720_v43  ;;  %v3961_v62 = vunpack.i.h.bf16 %v6009_v9  ;;  %v3960_v31 = vunpack.i.l.bf16 %v6009_v9 }
 0x206   : > { %3598 = vmatmul.msk.bf16.gmra.mxu0 %vm1730_vm13, %v1692_v50  ;;  %v1481_v36 = vsel %vm1459_vm7, %v1448_v12, %v3801_v10  ;;  %v1480_v60 = vsel %vm1459_vm7, %v1447_v19, %v3800_v32  ;;  %v1466_v47 = vsel %vm1459_vm7, %v1433_v17, %v3765_v46  ;;  %v1467_v37 = vsel %vm1459_vm7, %v1434_v52, %v3766_v63  ;;  %v4967_v12 = vld [vmem:[#allocation2 + $0x110] sm:$0xff] }
 0x207   : > { %v1500_v14 = vsel %vm1492_vm6, %v1467_v37, %v3846_v48  ;;  %v1499_v34 = vsel %vm1492_vm6, %v1466_v47, %v3845_v26  ;;  %v1514_v59 = vsel %vm1492_vm6, %v1481_v36, %v3881_v44  ;;  %v1513_v42 = vsel %vm1492_vm6, %v1480_v60, %v3880_v61  ;;  %v4279_v8 = vpop.permute.xlu2 %4278  ;;  %v8419_v47 = vld [vmem:[#allocation24_spill] sm:$0xff] }
 0x208   : > { %v1533_v9 = vsel %vm1525_vm8, %v1500_v14, %v3926_v38  ;;  %v1532_v11 = vsel %vm1525_vm8, %v1499_v34, %v3925_v55  ;;  %v4006_v40 = vunpack.i.h.bf16 %v6048_v27  ;;  %v4005_v16 = vunpack.i.l.bf16 %v6048_v27 }
 0x209   : > { %v1546_v41 = vsel %vm1525_vm8, %v1513_v42, %v3960_v31  ;;  %v1547_v25 = vsel %vm1525_vm8, %v1514_v59, %v3961_v62  ;;  %v4086_v52 = vunpack.i.h.bf16 %v6092_v54  ;;  %v4085_v35 = vunpack.i.l.bf16 %v6092_v54  ;;  %v8418_v62 = vld [vmem:[#allocation3_spill] sm:$0xff] }
 0x20a   : > { %3605 = vmatmul.msk.bf16.gmra.mxu2 %vm1730_vm13, %v1699_v49  ;;  %v4041_v6 = vunpack.i.h.bf16 %v6045_v29  ;;  %v4040_v30 = vunpack.i.l.bf16 %v6045_v29  ;;  %v4166_v5 = vunpack.i.h.bf16 %v6144_v21  ;;  %v4165_v43 = vunpack.i.l.bf16 %v6144_v21 }
 0x20b   : > { %v4121_v10 = vunpack.i.h.bf16 %v6123_v20  ;;  %v4120_v27 = vunpack.i.l.bf16 %v6123_v20  ;;  %v4246_v58 = vunpack.i.h.bf16 %v6261_v0  ;;  %v4245_v4 = vunpack.i.l.bf16 %v6261_v0 }
 0x20c   : > { %v1565_v32 = vsel %vm1558_vm10, %v1532_v11, %v4005_v16  ;;  %v1566_v54 = vsel %vm1558_vm10, %v1533_v9, %v4006_v40  ;;  %v4201_v33 = vunpack.i.h.bf16 %v6165_v56  ;;  %v4200_v29 = vunpack.i.l.bf16 %v6165_v56  ;;  %v4968_v11 = vld [vmem:[#allocation2 + $0x108] sm:$0xff] }
 0x20d   : > { %v1598_v63 = vsel %vm1591_vm9, %v1565_v32, %v4085_v35  ;;  %v1599_v21 = vsel %vm1591_vm9, %v1566_v54, %v4086_v52  ;;  %v4281_v46 = vunpack.i.h.bf16 %v4279_v8  ;;  %v4280_v50 = vunpack.i.l.bf16 %v4279_v8  ;;  %v8420_v52 = vld [vmem:[#allocation14_spill] sm:$0xff] }
 0x20e   : > { %v1579_v20 = vsel %vm1558_vm10, %v1546_v41, %v4040_v30  ;;  %v1580_v2 = vsel %vm1558_vm10, %v1547_v25, %v4041_v6  ;;  %v1631_v0 = vsel %vm1624_vm11, %v1598_v63, %v4165_v43  ;;  %v1632_v48 = vsel %vm1624_vm11, %v1599_v21, %v4166_v5  ;;  %v8422_v21 = vld [vmem:[#allocation48_spill] sm:$0xff] }
 0x20f   : > { %v1612_v26 = vsel %vm1591_vm9, %v1579_v20, %v4120_v27  ;;  %v1613_v44 = vsel %vm1591_vm9, %v1580_v2, %v4121_v10  ;;  %v1664_v56 = vsel %vm1657_vm12, %v1631_v0, %v4245_v4  ;;  %v1665_v61 = vsel %vm1657_vm12, %v1632_v48, %v4246_v58  ;;  %v8423_v20 = vld [vmem:[#allocation61_spill] sm:$0xff]  ;;  %v4284_v48 = vpop.permute.xlu0 %4283 }
 0x210   : > { %v8416_v17 = vunpack.i.l.bf16 %v5706_v24  ;;  %v3725_v55 = vunpack.i.l.bf16 %v8397_v51  ;;  %v1645_v49 = vsel %vm1624_vm11, %v1612_v26, %v4200_v29  ;;  %v1646_v3 = vsel %vm1624_vm11, %v1613_v44, %v4201_v33  ;;  %v8421_v33 = vld [vmem:[#allocation53_spill] sm:$0xff] }
 0x211   : > { %v8417_v7 = vunpack.i.h.bf16 %v8397_v51  ;;  %v3771_v31 = vunpack.i.h.bf16 %v8418_v62  ;;  %v1678_v36 = vsel %vm1657_vm12, %v1645_v49, %v4280_v50  ;;  %v1679_v24 = vsel %vm1657_vm12, %v1646_v3, %v4281_v46  ;;  %v8424_v26 = vld [vmem:[#allocation57_spill] sm:$0xff] }
 0x212   : > { %v6447_v38 = vsel %vm226_vm0, %v4966_v22, %v8416_v17  ;;  %v3770_v60 = vunpack.i.l.bf16 %v8418_v62  ;;  %v3806_v37 = vunpack.i.h.bf16 %v8419_v47  ;;  %v3805_v14 = vunpack.i.l.bf16 %v8419_v47 }
 0x213   : > { %v1450_v19 = vsel %vm226_vm0, %v4967_v12, %v8417_v7  ;;  %v1693_v34 = vpack.c.bf16 %v1665_v61, %v1664_v56  ;;  %v3851_v59 = vunpack.i.h.bf16 %v5910_v1  ;;  %v3850_v42 = vunpack.i.l.bf16 %v5910_v1 }
 0x214   : > { %v3886_v51 = vunpack.i.h.bf16 %v5946_v57  ;;  %v3885_v9 = vunpack.i.l.bf16 %v5946_v57  ;;  %v1449_v40 = vsel %vm226_vm0, %v4968_v11, %v3725_v55  ;;  %v3966_v16 = vunpack.i.h.bf16 %v5970_v45  ;;  %v8425_v55 = vld [vmem:[#allocation66_spill] sm:$0xff] }
 0x215   : > { %v3965_v41 = vunpack.i.l.bf16 %v5970_v45  ;;  %v1700_v25 = vpack.c.bf16 %v1679_v24, %v1678_v36  ;;  %v3741_v35 = vunpack.i.h.bf16 %v8420_v52  ;;  %v3740_v6 = vunpack.i.l.bf16 %v8420_v52 }
 0x216   : > { %3599 = vmatmul.msk.bf16.gmra.mxu0 %vm1730_vm13, %v1693_v34  ;;  %v3931_v1 = vunpack.i.h.bf16 %v5985_v15  ;;  %v3930_v30 = vunpack.i.l.bf16 %v5985_v15  ;;  %v1469_v57 = vsel %vm1459_vm7, %v6181_v13, %v3771_v31  ;;  %v1468_v5 = vsel %vm1459_vm7, %v6189_v53, %v3770_v60  ;;  %v8426_v34 = vld [vmem:[#allocation15_spill] sm:$0xff] }
 0x217   : > { %v1483_v43 = vsel %vm1459_vm7, %v1450_v19, %v3806_v37  ;;  %v1482_v45 = vsel %vm1459_vm7, %v1449_v40, %v3805_v14  ;;  %v1502_v8 = vsel %vm1492_vm6, %v1469_v57, %v3851_v59  ;;  %v1501_v10 = vsel %vm1492_vm6, %v1468_v5, %v3850_v42  ;;  %v8427_v42 = vld [vmem:[#allocation6_spill] sm:$0xff] }
 0x218   : > { %v1515_v27 = vsel %vm1492_vm6, %v1482_v45, %v3885_v9  ;;  %v1516_v15 = vsel %vm1492_vm6, %v1483_v43, %v3886_v51  ;;  %v4011_v53 = vunpack.i.h.bf16 %v6015_v18  ;;  %v4010_v4 = vunpack.i.l.bf16 %v6015_v18  ;;  %v8429_v57 = vld [vmem:[#allocation26_spill] sm:$0xff] }
 0x219   : > { %v1548_v58 = vsel %vm1525_vm8, %v1515_v27, %v3965_v41  ;;  %v1549_v13 = vsel %vm1525_vm8, %v1516_v15, %v3966_v16  ;;  %v1534_v32 = vsel %vm1525_vm8, %v1501_v10, %v3930_v30  ;;  %v1535_v54 = vsel %vm1525_vm8, %v1502_v8, %v3931_v1  ;;  %v8428_v16 = vld [vmem:[#allocation19_spill] sm:$0xff]  ;;  %v8431_v15 = vld [vmem:[#allocation33_spill] sm:$0xff] }
 0x21a   : > { %3606 = vmatmul.msk.bf16.gmra.mxu2 %vm1730_vm13, %v1700_v25  ;;  %v4091_v29 = vunpack.i.h.bf16 %v8421_v33  ;;  %v4090_v63 = vunpack.i.l.bf16 %v8421_v33  ;;  %v4046_v46 = vunpack.i.h.bf16 %v8422_v21  ;;  %v4045_v50 = vunpack.i.l.bf16 %v8422_v21  ;;  %v8430_v8 = vld [vmem:[#allocation31_spill] sm:$0xff]  ;;  %v4970_v21 = vld [vmem:[#allocation2 + $0x120] sm:$0xff] }
 0x21b   : > { %v4171_v2 = vunpack.i.h.bf16 %v8423_v20  ;;  %v4170_v0 = vunpack.i.l.bf16 %v8423_v20  ;;  %v4126_v44 = vunpack.i.h.bf16 %v8424_v26  ;;  %v4125_v18 = vunpack.i.l.bf16 %v8424_v26 }
 0x21c   : > { %v4251_v56 = vunpack.i.h.bf16 %v6339_v23  ;;  %v4250_v61 = vunpack.i.l.bf16 %v6339_v23  ;;  %v1567_v22 = vsel %vm1558_vm10, %v1534_v32, %v4010_v4  ;;  %v1568_v17 = vsel %vm1558_vm10, %v1535_v54, %v4011_v53  ;;  %v8432_v4 = vld [vmem:[#allocation35_spill] sm:$0xff] }
 0x21d   : > { %v4206_v49 = vunpack.i.h.bf16 %v8425_v55  ;;  %v4205_v3 = vunpack.i.l.bf16 %v8425_v55  ;;  %v1600_v12 = vsel %vm1591_vm9, %v1567_v22, %v4090_v63  ;;  %v1601_v7 = vsel %vm1591_vm9, %v1568_v17, %v4091_v29  ;;  %v4969_v29 = vld [vmem:[#allocation2 + $0x128] sm:$0xff] }
 0x21e   : > { %v4286_v19 = vunpack.i.h.bf16 %v4284_v48  ;;  %v4285_v62 = vunpack.i.l.bf16 %v4284_v48  ;;  %v1581_v31 = vsel %vm1558_vm10, %v1548_v58, %v4045_v50  ;;  %v1582_v36 = vsel %vm1558_vm10, %v1549_v13, %v4046_v46  ;;  %v8433_v50 = vld [vmem:[#allocation41_spill] sm:$0xff] }
 0x21f   : > { %v1633_v23 = vsel %vm1624_vm11, %v1600_v12, %v4170_v0  ;;  %v1634_v24 = vsel %vm1624_vm11, %v1601_v7, %v4171_v2  ;;  %v1614_v60 = vsel %vm1591_vm9, %v1581_v31, %v4125_v18  ;;  %v1615_v47 = vsel %vm1591_vm9, %v1582_v36, %v4126_v44  ;;  %v8434_v0 = vld [vmem:[#allocation68_spill] sm:$0xff] }
 0x220   : > { %v1666_v37 = vsel %vm1657_vm12, %v1633_v23, %v4250_v61  ;;  %v1667_v14 = vsel %vm1657_vm12, %v1634_v24, %v4251_v56  ;;  %v3701_v59 = vunpack.i.h.bf16 %v8426_v34  ;;  %v3731_v51 = vunpack.i.h.bf16 %v8427_v42  ;;  %v8437_v23 = vld [vmem:[#allocation49_spill] sm:$0xff] }
 0x221   : > { %v1647_v9 = vsel %vm1624_vm11, %v1614_v60, %v4205_v3  ;;  %v1648_v11 = vsel %vm1624_vm11, %v1615_v47, %v4206_v49  ;;  %v3730_v40 = vunpack.i.l.bf16 %v8427_v42  ;;  %v3776_v41 = vunpack.i.h.bf16 %v8428_v16  ;;  %v8435_v3 = vld [vmem:[#allocation45_spill] sm:$0xff]  ;;  %v8438_v47 = vld [vmem:[#allocation62_spill] sm:$0xff]  ;;  %v4289_v42 = vpop.permute.xlu1 %4288 }
 0x222   : > { %v1680_v25 = vsel %vm1657_vm12, %v1647_v9, %v4285_v62  ;;  %v1681_v1 = vsel %vm1657_vm12, %v1648_v11, %v4286_v19  ;;  %v3775_v30 = vunpack.i.l.bf16 %v8428_v16  ;;  %v3811_v5 = vunpack.i.h.bf16 %v8429_v57  ;;  %v8436_v62 = vld [vmem:[#allocation54_spill] sm:$0xff] }
 0x223   : > { %v3810_v43 = vunpack.i.l.bf16 %v8429_v57  ;;  %v1694_v45 = vpack.c.bf16 %v1667_v14, %v1666_v37  ;;  %v3891_v10 = vunpack.i.h.bf16 %v8430_v8  ;;  %v3890_v27 = vunpack.i.l.bf16 %v8430_v8 }
 0x224   : > { %v3856_v58 = vunpack.i.h.bf16 %v8431_v15  ;;  %v3855_v13 = vunpack.i.l.bf16 %v8431_v15  ;;  %v3700_v53 = vunpack.i.l.bf16 %v8426_v34  ;;  %v3936_v32 = vunpack.i.h.bf16 %v8432_v4 }
 0x225   : > { %v3935_v54 = vunpack.i.l.bf16 %v8432_v4  ;;  %v1701_v33 = vpack.c.bf16 %v1681_v1, %v1680_v25  ;;  %v1452_v63 = vsel %vm226_vm0, %v4969_v29, %v3731_v51  ;;  %v1451_v46 = vsel %vm226_vm0, %v4970_v21, %v3730_v40  ;;  %v8439_v51 = vld [vmem:[#allocation56_spill] sm:$0xff]  ;;  %v8442_v21 = vld [vmem:[#allocation11_spill] sm:$0xff] }
 0x226   : > { %3600 = vmatmul.msk.bf16.gmra.mxu0 %vm1730_vm13, %v1694_v45  ;;  %v3971_v20 = vunpack.i.h.bf16 %v8433_v50  ;;  %v3970_v2 = vunpack.i.l.bf16 %v8433_v50  ;;  %v1471_v48 = vsel %vm1459_vm7, %v8434_v0, %v3776_v41  ;;  %v1470_v26 = vsel %vm1459_vm7, %v6447_v38, %v3775_v30  ;;  %v8440_v40 = vld [vmem:[#allocation12_spill] sm:$0xff]  ;;  %v8441_v30 = vld [vmem:[#allocation65_spill] sm:$0xff] }
 0x227   : > { %v1484_v44 = vsel %vm1459_vm7, %v1451_v46, %v3810_v43  ;;  %v1485_v18 = vsel %vm1459_vm7, %v1452_v63, %v3811_v5  ;;  %v1503_v22 = vsel %vm1492_vm6, %v1470_v26, %v3855_v13  ;;  %v1504_v17 = vsel %vm1492_vm6, %v1471_v48, %v3856_v58  ;;  %v4971_v29 = vld [vmem:[#allocation2 + $0x98] sm:$0xff]  ;;  %v8443_v0 = vld [vmem:[#allocation17_spill] sm:$0xff] }
 0x228   : > { %v1517_v56 = vsel %vm1492_vm6, %v1484_v44, %v3890_v27  ;;  %v1518_v61 = vsel %vm1492_vm6, %v1485_v18, %v3891_v10  ;;  %v1536_v55 = vsel %vm1525_vm8, %v1503_v22, %v3935_v54  ;;  %v1537_v49 = vsel %vm1525_vm8, %v1504_v17, %v3936_v32  ;;  %v8445_v17 = vld [vmem:[#allocation25_spill] sm:$0xff] }
 0x229   : > { %v4016_v38 = vunpack.i.h.bf16 %v8435_v3  ;;  %v4015_v12 = vunpack.i.l.bf16 %v8435_v3  ;;  %v1550_v7 = vsel %vm1525_vm8, %v1517_v56, %v3970_v2  ;;  %v1551_v19 = vsel %vm1525_vm8, %v1518_v61, %v3971_v20  ;;  %v8444_v56 = vld [vmem:[#allocation20_spill] sm:$0xff] }
 0x22a   : > { %3607 = vmatmul.msk.bf16.gmra.mxu2 %vm1730_vm13, %v1701_v33  ;;  %v4096_v31 = vunpack.i.h.bf16 %v8436_v62  ;;  %v4095_v36 = vunpack.i.l.bf16 %v8436_v62  ;;  %v4051_v24 = vunpack.i.h.bf16 %v8437_v23  ;;  %v4050_v60 = vunpack.i.l.bf16 %v8437_v23  ;;  %v8446_v3 = vld [vmem:[#allocation36_spill] sm:$0xff]  ;;  %v8447_v62 = vld [vmem:[#allocation39_spill] sm:$0xff] }
 0x22b   : > { %v4176_v37 = vunpack.i.h.bf16 %v8438_v47  ;;  %v4175_v14 = vunpack.i.l.bf16 %v8438_v47  ;;  %v4131_v9 = vunpack.i.h.bf16 %v8439_v51  ;;  %v4130_v11 = vunpack.i.l.bf16 %v8439_v51  ;;  %v4974_v47 = vld [vmem:[#allocation2 + $0x138] sm:$0xff] }
 0x22c   : > { %v4256_v16 = vunpack.i.h.bf16 %v8440_v40  ;;  %v4255_v41 = vunpack.i.l.bf16 %v8440_v40  ;;  %v1569_v25 = vsel %vm1558_vm10, %v1536_v55, %v4015_v12  ;;  %v1570_v1 = vsel %vm1558_vm10, %v1537_v49, %v4016_v38 }
 0x22d   : > { %v4211_v57 = vunpack.i.h.bf16 %v8441_v30  ;;  %v4210_v5 = vunpack.i.l.bf16 %v8441_v30  ;;  %v1602_v43 = vsel %vm1591_vm9, %v1569_v25, %v4095_v36  ;;  %v1603_v45 = vsel %vm1591_vm9, %v1570_v1, %v4096_v31 }
 0x22e   : > { %v4291_v8 = vunpack.i.h.bf16 %v4289_v42  ;;  %v4290_v10 = vunpack.i.l.bf16 %v4289_v42  ;;  %v1583_v27 = vsel %vm1558_vm10, %v1550_v7, %v4050_v60  ;;  %v1584_v15 = vsel %vm1558_vm10, %v1551_v19, %v4051_v24  ;;  %v4972_v7 = vld [vmem:[#allocation2 + $0x90] sm:$0xff]  ;;  %v4973_v24 = vld [vmem:[#allocation2 + $0x140] sm:$0xff] }
 0x22f   : > { %v1635_v58 = vsel %vm1624_vm11, %v1602_v43, %v4175_v14  ;;  %v1636_v13 = vsel %vm1624_vm11, %v1603_v45, %v4176_v37  ;;  %v1616_v4 = vsel %vm1591_vm9, %v1583_v27, %v4130_v11  ;;  %v1617_v32 = vsel %vm1591_vm9, %v1584_v15, %v4131_v9  ;;  %v8448_v14 = vld [vmem:[#allocation42_spill] sm:$0xff] }
 0x230   : > { %v1668_v54 = vsel %vm1657_vm12, %v1635_v58, %v4255_v41  ;;  %v1669_v33 = vsel %vm1657_vm12, %v1636_v13, %v4256_v16  ;;  %v1440_v63 = vsel %vm226_vm0, %v4971_v29, %v3701_v59  ;;  %v3736_v46 = vunpack.i.h.bf16 %v8442_v21  ;;  %v8451_v58 = vld [vmem:[#allocation47_spill] sm:$0xff]  ;;  %v4294_v29 = vpop.permute.xlu2 %4293 }
 0x231   : > { %v1649_v50 = vsel %vm1624_vm11, %v1616_v4, %v4210_v5  ;;  %v1650_v20 = vsel %vm1624_vm11, %v1617_v32, %v4211_v57  ;;  %v3735_v2 = vunpack.i.l.bf16 %v8442_v21  ;;  %v3816_v48 = vunpack.i.h.bf16 %v8443_v0  ;;  %v8449_v57 = vld [vmem:[#allocation46_spill] sm:$0xff]  ;;  %v8452_v32 = vld [vmem:[#allocation63_spill] sm:$0xff] }
 0x232   : > { %v1682_v26 = vsel %vm1657_vm12, %v1649_v50, %v4290_v10  ;;  %v1683_v44 = vsel %vm1657_vm12, %v1650_v20, %v4291_v8  ;;  %v3815_v18 = vunpack.i.l.bf16 %v8443_v0  ;;  %v3781_v61 = vunpack.i.h.bf16 %v8444_v56  ;;  %v8450_v10 = vld [vmem:[#allocation52_spill] sm:$0xff] }
 0x233   : > { %v3780_v59 = vunpack.i.l.bf16 %v8444_v56  ;;  %v1695_v22 = vpack.c.bf16 %v1669_v33, %v1668_v54  ;;  %v3861_v55 = vunpack.i.h.bf16 %v8445_v17  ;;  %v3860_v49 = vunpack.i.l.bf16 %v8445_v17 }
 0x234   : > { %v3896_v38 = vunpack.i.h.bf16 %v8446_v3  ;;  %v3895_v12 = vunpack.i.l.bf16 %v8446_v3  ;;  %v1439_v19 = vsel %vm226_vm0, %v4972_v7, %v3700_v53  ;;  %v3941_v31 = vunpack.i.h.bf16 %v8447_v62  ;;  %v4975_v7 = vld [vmem:[#allocation2 + $0x158] sm:$0xff] }
 0x235   : > { %v3940_v36 = vunpack.i.l.bf16 %v8447_v62  ;;  %v1702_v23 = vpack.c.bf16 %v1683_v44, %v1682_v26  ;;  %v1454_v60 = vsel %vm226_vm0, %v4973_v24, %v3736_v46  ;;  %v1453_v37 = vsel %vm226_vm0, %v4974_v47, %v3735_v2  ;;  %v8455_v62 = vld [vmem:[#allocation7_spill] sm:$0xff] }
 0x236   : > { %3601 = vmatmul.msk.bf16.gmra.mxu0 %vm1730_vm13, %v1695_v22  ;;  %v3976_v42 = vunpack.i.h.bf16 %v8448_v14  ;;  %v3975_v51 = vunpack.i.l.bf16 %v8448_v14  ;;  %v1487_v34 = vsel %vm1459_vm7, %v1454_v60, %v3816_v48  ;;  %v1486_v53 = vsel %vm1459_vm7, %v1453_v37, %v3815_v18  ;;  %v8454_v48 = vld [vmem:[#allocation67_spill] sm:$0xff]  ;;  %v8456_v60 = vld [vmem:[#allocation10_spill] sm:$0xff] }
 0x237   : > { %v1472_v9 = vsel %vm1459_vm7, %v1439_v19, %v3780_v59  ;;  %v1473_v11 = vsel %vm1459_vm7, %v1440_v63, %v3781_v61  ;;  %v1520_v41 = vsel %vm1492_vm6, %v1487_v34, %v3896_v38  ;;  %v1519_v25 = vsel %vm1492_vm6, %v1486_v53, %v3895_v12  ;;  %v8453_v63 = vld [vmem:[#allocation58_spill] sm:$0xff] }
 0x238   : > { %v1505_v40 = vsel %vm1492_vm6, %v1472_v9, %v3860_v49  ;;  %v1506_v16 = vsel %vm1492_vm6, %v1473_v11, %v3861_v55  ;;  %v4021_v5 = vunpack.i.h.bf16 %v8449_v57  ;;  %v4020_v43 = vunpack.i.l.bf16 %v8449_v57  ;;  %v8458_v9 = vld [vmem:[#allocation34_spill] sm:$0xff] }
 0x239   : > { %v1538_v1 = vsel %vm1525_vm8, %v1505_v40, %v3940_v36  ;;  %v1539_v30 = vsel %vm1525_vm8, %v1506_v16, %v3941_v31  ;;  %v1552_v45 = vsel %vm1525_vm8, %v1519_v25, %v3975_v51  ;;  %v1553_v8 = vsel %vm1525_vm8, %v1520_v41, %v3976_v42  ;;  %v8457_v51 = vld [vmem:[#allocation27_spill] sm:$0xff]  ;;  %v8459_v16 = vld [vmem:[#allocation37_spill] sm:$0xff]  ;;  %v8460_v57 = vld [vmem:[#allocation38_spill] sm:$0xff] }
 0x23a   : > { %3608 = vmatmul.msk.bf16.gmra.mxu2 %vm1730_vm13, %v1702_v23  ;;  %v4101_v27 = vunpack.i.h.bf16 %v8450_v10  ;;  %v4100_v15 = vunpack.i.l.bf16 %v8450_v10  ;;  %v4056_v13 = vunpack.i.h.bf16 %v8451_v58  ;;  %v4055_v4 = vunpack.i.l.bf16 %v8451_v58  ;;  %v8461_v58 = vld [vmem:[#allocation40_spill] sm:$0xff] }
 0x23b   : > { %v4181_v54 = vunpack.i.h.bf16 %v8452_v32  ;;  %v4180_v33 = vunpack.i.l.bf16 %v8452_v32  ;;  %v4136_v21 = vunpack.i.h.bf16 %v8453_v63  ;;  %v4135_v46 = vunpack.i.l.bf16 %v8453_v63 }
 0x23c   : > { %v4261_v50 = vunpack.i.h.bf16 %v6304_v39  ;;  %v4260_v20 = vunpack.i.l.bf16 %v6304_v39  ;;  %v1571_v2 = vsel %vm1558_vm10, %v1538_v1, %v4020_v43  ;;  %v1572_v0 = vsel %vm1558_vm10, %v1539_v30, %v4021_v5  ;;  %v4976_v1 = vld [vmem:[#allocation2 + $0x150] sm:$0xff] }
 0x23d   : > { %v4216_v26 = vunpack.i.h.bf16 %v8454_v48  ;;  %v4215_v44 = vunpack.i.l.bf16 %v8454_v48  ;;  %v1604_v18 = vsel %vm1591_vm9, %v1571_v2, %v4100_v15  ;;  %v1605_v56 = vsel %vm1591_vm9, %v1572_v0, %v4101_v27  ;;  %v4978_v27 = vld [vmem:[#allocation2 + $0xa8] sm:$0xff] }
 0x23e   : > { %v4296_v61 = vunpack.i.h.bf16 %v4294_v29  ;;  %v4295_v59 = vunpack.i.l.bf16 %v4294_v29  ;;  %v1585_v22 = vsel %vm1558_vm10, %v1552_v45, %v4055_v4  ;;  %v1586_v17 = vsel %vm1558_vm10, %v1553_v8, %v4056_v13  ;;  %v4977_v8 = vld [vmem:[#allocation2 + $0xb0] sm:$0xff] }
 0x23f   : > { %v1637_v39 = vsel %vm1624_vm11, %v1604_v18, %v4180_v33  ;;  %v1638_v55 = vsel %vm1624_vm11, %v1605_v56, %v4181_v54  ;;  %v1618_v49 = vsel %vm1591_vm9, %v1585_v22, %v4135_v46  ;;  %v1619_v3 = vsel %vm1591_vm9, %v1586_v17, %v4136_v21  ;;  %v8465_v17 = vld [vmem:[#allocation64_spill] sm:$0xff] }
 0x240   : > { %v1670_v38 = vsel %vm1657_vm12, %v1637_v39, %v4260_v20  ;;  %v1671_v12 = vsel %vm1657_vm12, %v1638_v55, %v4261_v50  ;;  %v1456_v19 = vsel %vm226_vm0, %v4975_v7, %v3741_v35  ;;  %v3706_v31 = vunpack.i.h.bf16 %v8455_v62  ;;  %v8462_v20 = vld [vmem:[#allocation44_spill] sm:$0xff] }
 0x241   : > { %v1651_v36 = vsel %vm1624_vm11, %v1618_v49, %v4215_v44  ;;  %v1652_v23 = vsel %vm1624_vm11, %v1619_v3, %v4216_v26  ;;  %v3705_v24 = vunpack.i.l.bf16 %v8455_v62  ;;  %v3786_v47 = vunpack.i.h.bf16 %v8456_v60  ;;  %v8463_v44 = vld [vmem:[#allocation55_spill] sm:$0xff]  ;;  %v4299_v49 = vpop.permute.xlu0 %4298  ;;  %v8466_v3 = vld [vmem:[#allocation60_spill] sm:$0xff] }
 0x242   : > { %v1684_v37 = vsel %vm1657_vm12, %v1651_v36, %v4295_v59  ;;  %v1685_v14 = vsel %vm1657_vm12, %v1652_v23, %v4296_v61  ;;  %v3785_v42 = vunpack.i.l.bf16 %v8456_v60  ;;  %v3821_v34 = vunpack.i.h.bf16 %v8457_v51  ;;  %v8464_v61 = vld [vmem:[#allocation50_spill] sm:$0xff] }
 0x243   : > { %v3820_v35 = vunpack.i.l.bf16 %v8457_v51  ;;  %v1696_v53 = vpack.c.bf16 %v1671_v12, %v1670_v38  ;;  %v3866_v11 = vunpack.i.h.bf16 %v8458_v9  ;;  %v3865_v40 = vunpack.i.l.bf16 %v8458_v9  ;;  %v8467_v36 = vld [vmem:[#allocation70_spill] sm:$0xff] }
 0x244   : > { %v3901_v41 = vunpack.i.h.bf16 %v8459_v16  ;;  %v3900_v25 = vunpack.i.l.bf16 %v8459_v16  ;;  %v1455_v30 = vsel %vm226_vm0, %v4976_v1, %v3740_v6  ;;  %v3981_v5 = vunpack.i.h.bf16 %v8460_v57 }
 0x245   : > { %v3980_v43 = vunpack.i.l.bf16 %v8460_v57  ;;  %v1703_v45 = vpack.c.bf16 %v1685_v14, %v1684_v37  ;;  %v1442_v10 = vsel %vm226_vm0, %v4977_v8, %v3706_v31  ;;  %v1441_v15 = vsel %vm226_vm0, %v4978_v27, %v3705_v24  ;;  %v8468_v57 = vld [vmem:[#allocation9_spill] sm:$0xff]  ;;  %v8470_v27 = vld [vmem:[#allocation32_spill] sm:$0xff] }
 0x246   : > { %3602 = vmatmul.msk.bf16.gmra.mxu0 %vm1730_vm13, %v1696_v53  ;;  %v3946_v13 = vunpack.i.h.bf16 %v8461_v58  ;;  %v3945_v4 = vunpack.i.l.bf16 %v8461_v58  ;;  %v1475_v52 = vsel %vm1459_vm7, %v1442_v10, %v3786_v47  ;;  %v1474_v6 = vsel %vm1459_vm7, %v1441_v15, %v3785_v42 }
 0x247   : > { %v1489_v32 = vsel %vm1459_vm7, %v1456_v19, %v3821_v34  ;;  %v1488_v54 = vsel %vm1459_vm7, %v1455_v30, %v3820_v35  ;;  %v1508_v33 = vsel %vm1492_vm6, %v1475_v52, %v3866_v11  ;;  %v1507_v29 = vsel %vm1492_vm6, %v1474_v6, %v3865_v40  ;;  %v4979_v6 = vld [vmem:[#allocation2 + $0x170] sm:$0xff] }
 0x248   : > { %v1521_v63 = vsel %vm1492_vm6, %v1488_v54, %v3900_v25  ;;  %v1522_v21 = vsel %vm1492_vm6, %v1489_v32, %v3901_v41  ;;  %v4026_v2 = vunpack.i.h.bf16 %v8462_v20  ;;  %v4025_v0 = vunpack.i.l.bf16 %v8462_v20  ;;  %v4980_v54 = vld [vmem:[#allocation2 + $0x168] sm:$0xff] }
 0x249   : > { %v1554_v46 = vsel %vm1525_vm8, %v1521_v63, %v3980_v43  ;;  %v1555_v50 = vsel %vm1525_vm8, %v1522_v21, %v3981_v5  ;;  %v1540_v48 = vsel %vm1525_vm8, %v1507_v29, %v3945_v4  ;;  %v1541_v26 = vsel %vm1525_vm8, %v1508_v33, %v3946_v13  ;;  %v8471_v13 = vld [vmem:[#allocation43_spill] sm:$0xff] }
 0x24a   : > { %3609 = vmatmul.msk.bf16.gmra.mxu2 %vm1730_vm13, %v1703_v45  ;;  %v4106_v18 = vunpack.i.h.bf16 %v8463_v44  ;;  %v4105_v56 = vunpack.i.l.bf16 %v8463_v44  ;;  %v4061_v59 = vunpack.i.h.bf16 %v8464_v61  ;;  %v4060_v22 = vunpack.i.l.bf16 %v8464_v61  ;;  %v8469_v45 = vld [vmem:[#allocation29_spill] sm:$0xff]  ;;  %v8472_v29 = vld [vmem:[#allocation51_spill] sm:$0xff] }
 0x24b   : > { %v4186_v39 = vunpack.i.h.bf16 %v8465_v17  ;;  %v4185_v55 = vunpack.i.l.bf16 %v8465_v17  ;;  %v4141_v38 = vunpack.i.h.bf16 %v8466_v3  ;;  %v4140_v12 = vunpack.i.l.bf16 %v8466_v3  ;;  %v6743_v3 = vld [vmem:[%s8175_s2] ss:$0 sm:$0xff] }
 0x24c   : > { %v4266_v7 = vunpack.i.h.bf16 %v6380_v28  ;;  %v4265_v19 = vunpack.i.l.bf16 %v6380_v28  ;;  %v1573_v62 = vsel %vm1558_vm10, %v1540_v48, %v4025_v0  ;;  %v1574_v31 = vsel %vm1558_vm10, %v1541_v26, %v4026_v2  ;;  %v8473_v2 = vld [vmem:[#allocation59_spill] sm:$0xff] }
 0x24d   : > { %v4221_v23 = vunpack.i.h.bf16 %v8467_v36  ;;  %v4220_v24 = vunpack.i.l.bf16 %v8467_v36  ;;  %v1606_v60 = vsel %vm1591_vm9, %v1573_v62, %v4105_v56  ;;  %v1607_v47 = vsel %vm1591_vm9, %v1574_v31, %v4106_v18  ;;  %v8474_v18 = vld [vmem:[#allocation69_spill] sm:$0xff] }
 0x24e   : > { %v4301_v37 = vunpack.i.h.bf16 %v4299_v49  ;;  %v4300_v14 = vunpack.i.l.bf16 %v4299_v49  ;;  %v1587_v42 = vsel %vm1558_vm10, %v1554_v46, %v4060_v22  ;;  %v1588_v51 = vsel %vm1558_vm10, %v1555_v50, %v4061_v59  ;;  %v4304_v46 = vpop.permute.xlu1 %4303 }
 0x24f   : > { %v1639_v28 = vsel %vm1624_vm11, %v1606_v60, %v4185_v55  ;;  %v1640_v34 = vsel %vm1624_vm11, %v1607_v47, %v4186_v39  ;;  %v1620_v35 = vsel %vm1591_vm9, %v1587_v42, %v4140_v12  ;;  %v1621_v53 = vsel %vm1591_vm9, %v1588_v51, %v4141_v38  ;;  %v6756_v42 = vld [vmem:[#allocation2] sm:$0xff]  ;;  %v6758_v51 = vld [vmem:[#allocation2 + $0x8] sm:$0xff] }
 0x250   : > { %v1672_v9 = vsel %vm1657_vm12, %v1639_v28, %v4265_v19  ;;  %v1673_v11 = vsel %vm1657_vm12, %v1640_v34, %v4266_v7  ;;  %v1653_v40 = vsel %vm1624_vm11, %v1620_v35, %v4220_v24  ;;  %v1654_v16 = vsel %vm1624_vm11, %v1621_v53, %v4221_v23  ;;  %v6760_v28 = vld [vmem:[#allocation2 + $0x10] sm:$0x3] }
 0x251   : > { %v1686_v41 = vsel %vm1657_vm12, %v1653_v40, %v4300_v14  ;;  %v1687_v25 = vsel %vm1657_vm12, %v1654_v16, %v4301_v37  ;;  %v1697_v1 = vpack.c.bf16 %v1673_v11, %v1672_v9  ;;  %v3746_v5 = vunpack.i.h.bf16 %v8468_v57 }
 0x252   : > { %v1704_v30 = vpack.c.bf16 %v1687_v25, %v1686_v41  ;;  %v3745_v43 = vunpack.i.l.bf16 %v8468_v57  ;;  %v3826_v8 = vunpack.i.h.bf16 %v8469_v45  ;;  %v3825_v10 = vunpack.i.l.bf16 %v8469_v45 }
 0x253   : > { %v3906_v15 = vunpack.i.h.bf16 %v8470_v27  ;;  %v3905_v58 = vunpack.i.l.bf16 %v8470_v27  ;;  %v3986_v4 = vunpack.i.h.bf16 %v8471_v13  ;;  %v3985_v52 = vunpack.i.l.bf16 %v8471_v13 }
 0x254   : > { %v1458_v32 = vsel %vm226_vm0, %v4979_v6, %v3746_v5  ;;  %v1457_v33 = vsel %vm226_vm0, %v4980_v54, %v3745_v43  ;;  %v4066_v63 = vunpack.i.h.bf16 %v8472_v29  ;;  %v4065_v21 = vunpack.i.l.bf16 %v8472_v29 }
 0x255   : > { %v1490_v50 = vsel %vm1459_vm7, %v1457_v33, %v3825_v10  ;;  %v1491_v20 = vsel %vm1459_vm7, %v1458_v32, %v3826_v8  ;;  %v4146_v0 = vunpack.i.h.bf16 %v8473_v2  ;;  %v4145_v48 = vunpack.i.l.bf16 %v8473_v2 }
 0x256   : > { %3603 = vmatmul.msk.bf16.gmra.mxu0 %vm1730_vm13, %v1697_v1  ;;  %v1523_v26 = vsel %vm1492_vm6, %v1490_v50, %v3905_v58  ;;  %v1524_v44 = vsel %vm1492_vm6, %v1491_v20, %v3906_v15  ;;  %v4226_v56 = vunpack.i.h.bf16 %v8474_v18  ;;  %v4225_v61 = vunpack.i.l.bf16 %v8474_v18 }
 0x257   : > { %v1556_v59 = vsel %vm1525_vm8, %v1523_v26, %v3985_v52  ;;  %v1557_v22 = vsel %vm1525_vm8, %v1524_v44, %v3986_v4  ;;  %v4306_v17 = vunpack.i.h.bf16 %v4304_v46  ;;  %v4305_v39 = vunpack.i.l.bf16 %v4304_v46 }
 0x258   : > { %v1589_v55 = vsel %vm1558_vm10, %v1556_v59, %v4065_v21  ;;  %v1590_v49 = vsel %vm1558_vm10, %v1557_v22, %v4066_v63  ;;  %v2038_v34 = vrot.slane %v6756_v42, 1  ;;  %v2039_v35 = vrot.slane %v6758_v51, 1 }
 0x259   : > { %v1622_v38 = vsel %vm1591_vm9, %v1589_v55, %v4145_v48  ;;  %v1623_v12 = vsel %vm1591_vm9, %v1590_v49, %v4146_v0  ;;  %v2041_v53 = vrot.slane %v6760_v28, 1 }
 0x25a   : > { %3610 = vmatmul.msk.bf16.gmra.mxu2 %vm1730_vm13, %v1704_v30  ;;  %v1655_v7 = vsel %vm1624_vm11, %v1622_v38, %v4225_v61  ;;  %v1656_v19 = vsel %vm1624_vm11, %v1623_v12, %v4226_v56  ;;  %v2040_v11 = vsel %vm471_vm3, %v2038_v34, %v2039_v35 }
 0x25b   : > { %v1688_v31 = vsel %vm1657_vm12, %v1655_v7, %v4305_v39  ;;  %v1689_v36 = vsel %vm1657_vm12, %v1656_v19, %v4306_v17  ;;  %v2042_v40 = vsel %vm471_vm3, %v2039_v35, %v2041_v53 }
 0x25c   : > { %v1705_v60 = vpack.c.bf16 %v1689_v36, %v1688_v31  ;;  %v4307_v25 = vpack.i.bf16 %v2042_v40, %v2040_v11 }
 0x25e   : > { %4308 = vrot.lane.b32.xlu2 %v4307_v25, %s5020_s20 }
 0x263   : > { %v1792_v62 = vpop.f32.mrf.mxu0 }
 0x264   : > { %v1793_v23 = vadd.f32 %v6743_v3, %v1792_v62 }
 0x266   : > { %v1872_v24 = vmax.f32 %v1793_v23, 0.0 }
 0x268   : > { %1904 = vst.msk [vmem:[#allocation2 + $0x19] sm:$0xff] %vm226_vm0, %v1872_v24 }
 0x26a   : > { %3611 = vmatmul.msk.bf16.gmra.mxu2 %vm1730_vm13, %v1705_v60 }
 0x26b   : > { %v1794_v47 = vpop.f32.mrf.mxu0 }
 0x26c   : > { %v1795_v37 = vadd.f32 %v6743_v3, %v1794_v47 }
 0x26e   : > { %v1873_v14 = vmax.f32 %v1795_v37, 0.0 }
 0x26f   : > { %v6768_v41 = vld [vmem:[#allocation2 + $0x18] sm:$0xff] }
 0x270   : > { %1905 = vst.msk [vmem:[#allocation2 + $0x21] sm:$0xff] %vm226_vm0, %v1873_v14  ;;  %v2043_v5 = vrot.slane %v6768_v41, 1  ;;  %v2219_v43 = vrot.slane %v6768_v41, 2 }
 0x273   : > { %v1797_v9 = vpop.f32.mrf.mxu0 }
 0x274   : > { %v1798_v16 = vadd.f32 %v6743_v3, %v1797_v9 }
 0x276   : > { %v1874_v1 = vmax.f32 %v1798_v16, 0.0 }
 0x277   : > { %v6771_v30 = vld [vmem:[#allocation2 + $0x20] sm:$0xff]  ;;  %v1941_v57 = vld [vmem:[#allocation2 + $0x28] sm:$0x3] }
 0x278   : > { %1906 = vst.msk [vmem:[#allocation2 + $0x31] sm:$0xff] %vm226_vm0, %v1874_v1  ;;  %v2044_v45 = vrot.slane %v6771_v30, 1  ;;  %v2046_v8 = vrot.slane %v1941_v57, 1  ;;  %v2220_v10 = vrot.slane %v6771_v30, 2  ;;  %v2222_v27 = vrot.slane %v1941_v57, 2 }
 0x27a   : > { %v2045_v15 = vsel %vm471_vm3, %v2043_v5, %v2044_v45  ;;  %v2047_v58 = vsel %vm471_vm3, %v2044_v45, %v2046_v8  ;;  %v2221_v13 = vsel %vm648_vm4, %v2219_v43, %v2220_v10  ;;  %v2223_v4 = vsel %vm648_vm4, %v2220_v10, %v2222_v27 }
 0x27b   : > { %v1799_v6 = vpop.f32.mrf.mxu0  ;;  %v6782_v32 = vpack.i.bf16 %v2047_v58, %v2045_v15  ;;  %v6784_v54 = vpack.i.bf16 %v2223_v4, %v2221_v13 }
 0x27c   : > { %v1800_v29 = vadd.f32 %v6743_v3, %v1799_v6 }
 0x27d   : > { %v1832_v52 = vpop.f32.mrf.mxu2  ;;  %8475 = vst [vmem:[#allocation21_spill] sm:$0xff] %v6784_v54  ;;  %4313 = vrot.lane.b32.xlu0 %v6782_v32, %s5020_s20 }
 0x27e   : > { %v1833_v33 = vadd.f32 %v6743_v3, %v1832_v52  ;;  %v1875_v21 = vmax.f32 %v1800_v29, 0.0 }
 0x27f   : > { %v6794_v0 = vld [vmem:[#allocation2 + $0x30] sm:$0xff] }
 0x280   : > { %v1888_v63 = vmax.f32 %v1833_v33, 0.0  ;;  %1907 = vst.msk [vmem:[#allocation2 + $0x39] sm:$0xff] %vm226_vm0, %v1875_v21  ;;  %v2048_v56 = vrot.slane %v6794_v0, 1  ;;  %v2224_v61 = vrot.slane %v6794_v0, 2 }
 0x282   : > { %1920 = vst.msk [vmem:[#allocation2 + $0xd9] sm:$0xff] %vm226_vm0, %v1888_v63 }
 0x283   : > { %v1802_v50 = vpop.f32.mrf.mxu0 }
 0x284   : > { %v1803_v2 = vadd.f32 %v6743_v3, %v1802_v50 }
 0x285   : > { %v1834_v46 = vpop.f32.mrf.mxu2 }
 0x286   : > { %v1835_v20 = vadd.f32 %v6743_v3, %v1834_v46  ;;  %v1876_v26 = vmax.f32 %v1803_v2, 0.0 }
 0x287   : > { %v6797_v44 = vld [vmem:[#allocation2 + $0x38] sm:$0xff]  ;;  %v1944_v18 = vld [vmem:[#allocation2 + $0x40] sm:$0x3] }
 0x288   : > { %v1889_v48 = vmax.f32 %v1835_v20, 0.0  ;;  %1908 = vst.msk [vmem:[#allocation2 + $0x49] sm:$0xff] %vm226_vm0, %v1876_v26  ;;  %v2049_v59 = vrot.slane %v6797_v44, 1  ;;  %v2051_v22 = vrot.slane %v1944_v18, 1  ;;  %v2225_v17 = vrot.slane %v6797_v44, 2 }
 0x289   : > { %v2227_v39 = vrot.slane %v1944_v18, 2  ;;  %v6812_v23 = vld [vmem:[#allocation2 + $0xd8] sm:$0xff] }
 0x28a   : > { %1921 = vst.msk [vmem:[#allocation2 + $0xe1] sm:$0xff] %vm226_vm0, %v1889_v48  ;;  %v2050_v38 = vsel %vm471_vm3, %v2048_v56, %v2049_v59  ;;  %v2052_v12 = vsel %vm471_vm3, %v2049_v59, %v2051_v22  ;;  %v2226_v7 = vsel %vm648_vm4, %v2224_v61, %v2225_v17  ;;  %v2083_v34 = vrot.slane %v6812_v23, 1 }
 0x28b   : > { %v1804_v49 = vpop.f32.mrf.mxu0  ;;  %v2228_v19 = vsel %vm648_vm4, %v2225_v17, %v2227_v39  ;;  %v6810_v36 = vpack.i.bf16 %v2052_v12, %v2050_v38  ;;  %v2259_v35 = vrot.slane %v6812_v23, 2 }
 0x28c   : > { %v1805_v31 = vadd.f32 %v6743_v3, %v1804_v49  ;;  %v6814_v24 = vpack.i.bf16 %v2228_v19, %v2226_v7 }
 0x28d   : > { %v1837_v55 = vpop.f32.mrf.mxu2  ;;  %8476 = vst [vmem:[#allocation5_spill] sm:$0xff] %v6810_v36  ;;  %4318 = vrot.lane.b32.xlu1 %v6810_v36, %s5020_s20 }
 0x28e   : > { %v1838_v62 = vadd.f32 %v6743_v3, %v1837_v55  ;;  %8477 = vst [vmem:[#allocation30_spill] sm:$0xff] %v6814_v24  ;;  %v1877_v47 = vmax.f32 %v1805_v31, 0.0 }
 0x28f   : > { %v6836_v15 = vld [vmem:[#allocation2 + $0x48] sm:$0xff] }
 0x290   : > { %v1890_v60 = vmax.f32 %v1838_v62, 0.0  ;;  %1909 = vst.msk [vmem:[#allocation2 + $0x51] sm:$0xff] %vm226_vm0, %v1877_v47  ;;  %v2053_v6 = vrot.slane %v6836_v15, 1  ;;  %v2229_v33 = vrot.slane %v6836_v15, 2 }
 0x291   : > { %v6818_v37 = vld [vmem:[#allocation2 + $0xe0] sm:$0xff]  ;;  %v1965_v14 = vld [vmem:[#allocation2 + $0xe8] sm:$0x3] }
 0x292   : > { %1922 = vst.msk [vmem:[#allocation2 + $0xf1] sm:$0xff] %vm226_vm0, %v1890_v60  ;;  %v2084_v53 = vrot.slane %v6818_v37, 1  ;;  %v2086_v9 = vrot.slane %v1965_v14, 1  ;;  %v2262_v11 = vrot.slane %v1965_v14, 2  ;;  %v2260_v40 = vrot.slane %v6818_v37, 2 }
 0x293   : > { %v1807_v43 = vpop.f32.mrf.mxu0 }
 0x294   : > { %v2085_v16 = vsel %vm471_vm3, %v2083_v34, %v2084_v53  ;;  %v2087_v25 = vsel %vm471_vm3, %v2084_v53, %v2086_v9  ;;  %v2261_v1 = vsel %vm648_vm4, %v2259_v35, %v2260_v40  ;;  %v2263_v57 = vsel %vm648_vm4, %v2260_v40, %v2262_v11 }
 0x295   : > { %v1839_v5 = vpop.f32.mrf.mxu2  ;;  %v6830_v45 = vpack.i.bf16 %v2087_v25, %v2085_v16  ;;  %v6832_v8 = vpack.i.bf16 %v2263_v57, %v2261_v1  ;;  %v1808_v27 = vadd.f32 %v6743_v3, %v1807_v43 }
 0x296   : > { %v1840_v10 = vadd.f32 %v6743_v3, %v1839_v5 }
 0x297   : > { %8478 = vst [vmem:[#allocation4_spill] sm:$0xff] %v6830_v45  ;;  %v1878_v13 = vmax.f32 %v1808_v27, 0.0  ;;  %v6839_v4 = vld [vmem:[#allocation2 + $0x50] sm:$0xff]  ;;  %v1947_v52 = vld [vmem:[#allocation2 + $0x58] sm:$0x3] }
 0x298   : > { %8479 = vst [vmem:[#allocation13_spill] sm:$0xff] %v6832_v8  ;;  %v1891_v58 = vmax.f32 %v1840_v10, 0.0  ;;  %v2054_v29 = vrot.slane %v6839_v4, 1  ;;  %v2056_v63 = vrot.slane %v1947_v52, 1  ;;  %v2232_v21 = vrot.slane %v1947_v52, 2 }
 0x299   : > { %1910 = vst.msk [vmem:[#allocation2 + $0x61] sm:$0xff] %vm226_vm0, %v1878_v13  ;;  %v2230_v46 = vrot.slane %v6839_v4, 2  ;;  %v6854_v22 = vld [vmem:[#allocation2 + $0xf0] sm:$0xff] }
 0x29a   : > { %1923 = vst.msk [vmem:[#allocation2 + $0xf9] sm:$0xff] %vm226_vm0, %v1891_v58  ;;  %v2055_v2 = vsel %vm471_vm3, %v2053_v6, %v2054_v29  ;;  %v2057_v48 = vsel %vm471_vm3, %v2054_v29, %v2056_v63  ;;  %v2088_v12 = vrot.slane %v6854_v22, 1  ;;  %v2264_v7 = vrot.slane %v6854_v22, 2 }
 0x29b   : > { %v1809_v20 = vpop.f32.mrf.mxu0  ;;  %v2231_v26 = vsel %vm648_vm4, %v2229_v33, %v2230_v46  ;;  %v2233_v18 = vsel %vm648_vm4, %v2230_v46, %v2232_v21  ;;  %v6852_v59 = vpack.i.bf16 %v2057_v48, %v2055_v2 }
 0x29c   : > { %v1810_v61 = vadd.f32 %v6743_v3, %v1809_v20  ;;  %v6856_v17 = vpack.i.bf16 %v2233_v18, %v2231_v26 }
 0x29d   : > { %v1842_v50 = vpop.f32.mrf.mxu2  ;;  %8480 = vst [vmem:[#allocation23_spill] sm:$0xff] %v6852_v59  ;;  %4323 = vrot.lane.b32.xlu2 %v6852_v59, %s5020_s20 }
 0x29e   : > { %v1843_v56 = vadd.f32 %v6743_v3, %v1842_v50  ;;  %8481 = vst [vmem:[#allocation28_spill] sm:$0xff] %v6856_v17  ;;  %v1879_v55 = vmax.f32 %v1810_v61, 0.0 }
 0x2a0   : > { %v1892_v39 = vmax.f32 %v1843_v56, 0.0  ;;  %1911 = vst.msk [vmem:[#allocation2 + $0x69] sm:$0xff] %vm226_vm0, %v1879_v55  ;;  %v6878_v1 = vld [vmem:[#allocation2 + $0x60] sm:$0xff] }
 0x2a1   : > { %v6860_v49 = vld [vmem:[#allocation2 + $0xf8] sm:$0xff]  ;;  %v1968_v38 = vld [vmem:[#allocation2 + $0x100] sm:$0x3]  ;;  %v2058_v27 = vrot.slane %v6878_v1, 1  ;;  %v2234_v58 = vrot.slane %v6878_v1, 2 }
 0x2a2   : > { %1924 = vst.msk [vmem:[#allocation2 + $0x109] sm:$0xff] %vm226_vm0, %v1892_v39  ;;  %v2089_v19 = vrot.slane %v6860_v49, 1  ;;  %v2091_v62 = vrot.slane %v1968_v38, 1  ;;  %v2267_v31 = vrot.slane %v1968_v38, 2  ;;  %v2265_v60 = vrot.slane %v6860_v49, 2 }
 0x2a3   : > { %v1812_v9 = vpop.f32.mrf.mxu0 }
 0x2a4   : > { %v2090_v47 = vsel %vm471_vm3, %v2088_v12, %v2089_v19  ;;  %v2092_v14 = vsel %vm471_vm3, %v2089_v19, %v2091_v62  ;;  %v2266_v34 = vsel %vm648_vm4, %v2264_v7, %v2265_v60  ;;  %v2268_v35 = vsel %vm648_vm4, %v2265_v60, %v2267_v31 }
 0x2a5   : > { %v1844_v53 = vpop.f32.mrf.mxu2  ;;  %v6872_v11 = vpack.i.bf16 %v2092_v14, %v2090_v47  ;;  %v6874_v40 = vpack.i.bf16 %v2268_v35, %v2266_v34  ;;  %v1813_v25 = vadd.f32 %v6743_v3, %v1812_v9  ;;  %4333 = vrot.lane.b32.xlu2 %v6830_v45, %s5020_s20 }
 0x2a6   : > { %v1845_v16 = vadd.f32 %v6743_v3, %v1844_v53 }
 0x2a7   : > { %v1880_v5 = vmax.f32 %v1813_v25, 0.0  ;;  %v6883_v43 = vld [vmem:[#allocation2 + $0x68] sm:$0xff]  ;;  %v1950_v10 = vld [vmem:[#allocation2 + $0x70] sm:$0x3] }
 0x2a8   : > { %v1893_v57 = vmax.f32 %v1845_v16, 0.0  ;;  %v2059_v13 = vrot.slane %v6883_v43, 1  ;;  %v2061_v52 = vrot.slane %v1950_v10, 1  ;;  %v2235_v6 = vrot.slane %v6883_v43, 2 }
 0x2a9   : > { %1912 = vst.msk [vmem:[#allocation2 + $0x79] sm:$0xff] %vm226_vm0, %v1880_v5  ;;  %v2237_v33 = vrot.slane %v1950_v10, 2  ;;  %v6898_v18 = vld [vmem:[#allocation2 + $0x108] sm:$0xff] }
 0x2aa   : > { %1925 = vst.msk [vmem:[#allocation2 + $0x111] sm:$0xff] %vm226_vm0, %v1893_v57  ;;  %v2060_v21 = vsel %vm471_vm3, %v2058_v27, %v2059_v13  ;;  %v2062_v46 = vsel %vm471_vm3, %v2059_v13, %v2061_v52  ;;  %v2236_v50 = vsel %vm648_vm4, %v2234_v58, %v2235_v6  ;;  %v2093_v12 = vrot.slane %v6898_v18, 1 }
 0x2ab   : > { %v1814_v63 = vpop.f32.mrf.mxu0  ;;  %v2238_v20 = vsel %vm648_vm4, %v2235_v6, %v2237_v33  ;;  %v6896_v26 = vpack.i.bf16 %v2062_v46, %v2060_v21  ;;  %v2269_v7 = vrot.slane %v6898_v18, 2 }
 0x2ac   : > { %v1815_v48 = vadd.f32 %v6743_v3, %v1814_v63  ;;  %v6900_v56 = vpack.i.bf16 %v2238_v20, %v2236_v50 }
 0x2ad   : > { %v1847_v29 = vpop.f32.mrf.mxu2  ;;  %8482 = vst [vmem:[#allocation8_spill] sm:$0xff] %v6896_v26  ;;  %4328 = vrot.lane.b32.xlu0 %v6896_v26, %s5020_s20 }
 0x2ae   : > { %v1848_v2 = vadd.f32 %v6743_v3, %v1847_v29  ;;  %8483 = vst [vmem:[#allocation16_spill] sm:$0xff] %v6900_v56  ;;  %v1881_v39 = vmax.f32 %v1815_v48, 0.0 }
 0x2b0   : > { %v1894_v61 = vmax.f32 %v1848_v2, 0.0  ;;  %1913 = vst.msk [vmem:[#allocation2 + $0x81] sm:$0xff] %vm226_vm0, %v1881_v39  ;;  %v6924_v58 = vld [vmem:[#allocation2 + $0x78] sm:$0xff] }
 0x2b1   : > { %v6904_v55 = vld [vmem:[#allocation2 + $0x110] sm:$0xff]  ;;  %v1971_v38 = vld [vmem:[#allocation2 + $0x118] sm:$0x3]  ;;  %v2063_v6 = vrot.slane %v6924_v58, 1  ;;  %v2239_v48 = vrot.slane %v6924_v58, 2 }
 0x2b2   : > { %1926 = vst.msk [vmem:[#allocation2 + $0x121] sm:$0xff] %vm226_vm0, %v1894_v61  ;;  %v2094_v19 = vrot.slane %v6904_v55, 1  ;;  %v2096_v62 = vrot.slane %v1971_v38, 1  ;;  %v2272_v31 = vrot.slane %v1971_v38, 2  ;;  %v2270_v60 = vrot.slane %v6904_v55, 2 }
 0x2b3   : > { %v1817_v9 = vpop.f32.mrf.mxu0 }
 0x2b4   : > { %v2095_v47 = vsel %vm471_vm3, %v2093_v12, %v2094_v19  ;;  %v2097_v14 = vsel %vm471_vm3, %v2094_v19, %v2096_v62  ;;  %v2271_v34 = vsel %vm648_vm4, %v2269_v7, %v2270_v60  ;;  %v2273_v35 = vsel %vm648_vm4, %v2270_v60, %v2272_v31 }
 0x2b5   : > { %v1849_v53 = vpop.f32.mrf.mxu2  ;;  %v6916_v16 = vpack.i.bf16 %v2097_v14, %v2095_v47  ;;  %v6918_v25 = vpack.i.bf16 %v2273_v35, %v2271_v34  ;;  %v1818_v5 = vadd.f32 %v6743_v3, %v1817_v9  ;;  %4338 = vrot.lane.b32.xlu0 %v6872_v11, %s5020_s20 }
 0x2b6   : > { %v1850_v57 = vadd.f32 %v6743_v3, %v1849_v53 }
 0x2b7   : > { %8484 = vst [vmem:[#allocation18_spill] sm:$0xff] %v6916_v16  ;;  %v1882_v27 = vmax.f32 %v1818_v5, 0.0  ;;  %v6927_v13 = vld [vmem:[#allocation2 + $0x80] sm:$0xff]  ;;  %v1953_v52 = vld [vmem:[#allocation2 + $0x88] sm:$0x3] }
 0x2b8   : > { %v1895_v10 = vmax.f32 %v1850_v57, 0.0  ;;  %v2064_v33 = vrot.slane %v6927_v13, 1  ;;  %v2066_v29 = vrot.slane %v1953_v52, 1  ;;  %v2240_v63 = vrot.slane %v6927_v13, 2 }
 0x2b9   : > { %1914 = vst.msk [vmem:[#allocation2 + $0x91] sm:$0xff] %vm226_vm0, %v1882_v27  ;;  %v2242_v21 = vrot.slane %v1953_v52, 2  ;;  %v6940_v12 = vld [vmem:[#allocation2 + $0x120] sm:$0xff] }
 0x2ba   : > { %1927 = vst.msk [vmem:[#allocation2 + $0x129] sm:$0xff] %vm226_vm0, %v1895_v10  ;;  %v2065_v20 = vsel %vm471_vm3, %v2063_v6, %v2064_v33  ;;  %v2067_v2 = vsel %vm471_vm3, %v2064_v33, %v2066_v29  ;;  %v2241_v7 = vsel %vm648_vm4, %v2239_v48, %v2240_v63  ;;  %v2098_v34 = vrot.slane %v6940_v12, 1 }
 0x2bb   : > { %v1819_v50 = vpop.f32.mrf.mxu0  ;;  %v6938_v38 = vpack.i.bf16 %v2067_v2, %v2065_v20  ;;  %v2243_v19 = vsel %vm648_vm4, %v2240_v63, %v2242_v21  ;;  %v2274_v35 = vrot.slane %v6940_v12, 2 }
 0x2bc   : > { %v1820_v39 = vadd.f32 %v6743_v3, %v1819_v50  ;;  %v6946_v60 = vpack.i.bf16 %v2243_v19, %v2241_v7 }
 0x2bd   : > { %v1852_v46 = vpop.f32.mrf.mxu2  ;;  %8485 = vst [vmem:[#allocation22_spill] sm:$0xff] %v6938_v38  ;;  %4343 = vrot.lane.b32.xlu1 %v6938_v38, %s5020_s20 }
 0x2be   : > { %v1853_v61 = vadd.f32 %v6743_v3, %v1852_v46  ;;  %v1883_v31 = vmax.f32 %v1820_v39, 0.0  ;;  %8486 = vst [vmem:[#allocation3_spill] sm:$0xff] %v6946_v60 }
 0x2c0   : > { %v1896_v62 = vmax.f32 %v1853_v61, 0.0  ;;  %1915 = vst.msk [vmem:[#allocation2 + $0x99] sm:$0xff] %vm226_vm0, %v1883_v31  ;;  %v6968_v20 = vld [vmem:[#allocation2 + $0x90] sm:$0xff] }
 0x2c1   : > { %v6948_v47 = vld [vmem:[#allocation2 + $0x128] sm:$0xff]  ;;  %v1974_v14 = vld [vmem:[#allocation2 + $0x130] sm:$0x3]  ;;  %v2068_v7 = vrot.slane %v6968_v20, 1  ;;  %v2244_v19 = vrot.slane %v6968_v20, 2 }
 0x2c2   : > { %1928 = vst.msk [vmem:[#allocation2 + $0x139] sm:$0xff] %vm226_vm0, %v1896_v62  ;;  %v2099_v53 = vrot.slane %v6948_v47, 1  ;;  %v2101_v9 = vrot.slane %v1974_v14, 1  ;;  %v2277_v57 = vrot.slane %v1974_v14, 2  ;;  %v2275_v5 = vrot.slane %v6948_v47, 2 }
 0x2c3   : > { %v1822_v29 = vpop.f32.mrf.mxu0 }
 0x2c4   : > { %v2100_v10 = vsel %vm471_vm3, %v2098_v34, %v2099_v53  ;;  %v2102_v27 = vsel %vm471_vm3, %v2099_v53, %v2101_v9  ;;  %v2276_v52 = vsel %vm648_vm4, %v2274_v35, %v2275_v5  ;;  %v2278_v6 = vsel %vm648_vm4, %v2275_v5, %v2277_v57 }
 0x2c5   : > { %v1854_v33 = vpop.f32.mrf.mxu2  ;;  %v6960_v63 = vpack.i.bf16 %v2102_v27, %v2100_v10  ;;  %v6962_v21 = vpack.i.bf16 %v2278_v6, %v2276_v52  ;;  %v1823_v50 = vadd.f32 %v6743_v3, %v1822_v29  ;;  %4348 = vrot.lane.b32.xlu1 %v6916_v16, %s5020_s20 }
 0x2c6   : > { %v1855_v46 = vadd.f32 %v6743_v3, %v1854_v33 }
 0x2c7   : > { %8487 = vst [vmem:[#allocation24_spill] sm:$0xff] %v6960_v63  ;;  %4353 = vrot.lane.b32.xlu2 %v6960_v63, %s5020_s20  ;;  %v1884_v48 = vmax.f32 %v1823_v50, 0.0  ;;  %v6973_v61 = vld [vmem:[#allocation2 + $0x98] sm:$0xff]  ;;  %v1956_v39 = vld [vmem:[#allocation2 + $0xa0] sm:$0x3] }
 0x2c8   : > { %v1897_v2 = vmax.f32 %v1855_v46, 0.0  ;;  %v2069_v62 = vrot.slane %v6973_v61, 1  ;;  %v2071_v31 = vrot.slane %v1956_v39, 1  ;;  %v2247_v14 = vrot.slane %v1956_v39, 2 }
 0x2c9   : > { %1916 = vst.msk [vmem:[#allocation2 + $0xa9] sm:$0xff] %vm226_vm0, %v1884_v48  ;;  %v2245_v34 = vrot.slane %v6973_v61, 2  ;;  %v6988_v33 = vld [vmem:[#allocation2 + $0x138] sm:$0xff] }
 0x2ca   : > { %1929 = vst.msk [vmem:[#allocation2 + $0x141] sm:$0xff] %vm226_vm0, %v1897_v2  ;;  %v2070_v9 = vsel %vm471_vm3, %v2068_v7, %v2069_v62  ;;  %v2072_v57 = vsel %vm471_vm3, %v2069_v62, %v2071_v31  ;;  %v2214_v2 = vrot.slane %v6756_v42, 2  ;;  %v2103_v7 = vrot.slane %v6988_v33, 1 }
 0x2cb   : > { %v1824_v53 = vpop.f32.mrf.mxu0  ;;  %v2246_v5 = vsel %vm648_vm4, %v2244_v19, %v2245_v34  ;;  %v2248_v10 = vsel %vm648_vm4, %v2245_v34, %v2247_v14  ;;  %v6986_v6 = vpack.i.bf16 %v2072_v57, %v2070_v9  ;;  %v2215_v19 = vrot.slane %v6758_v51, 2 }
 0x2cc   : > { %v1825_v52 = vadd.f32 %v6743_v3, %v1824_v53  ;;  %v6990_v29 = vpack.i.bf16 %v2248_v10, %v2246_v5  ;;  %v2279_v62 = vrot.slane %v6988_v33, 2  ;;  %v2217_v42 = vrot.slane %v6760_v28, 2 }
 0x2cd   : > { %v1857_v35 = vpop.f32.mrf.mxu2  ;;  %8488 = vst [vmem:[#allocation14_spill] sm:$0xff] %v6986_v6  ;;  %4368 = vrot.lane.b32.xlu1 %v6784_v54, %s5021_s25 }
 0x2ce   : > { %v1858_v27 = vadd.f32 %v6743_v3, %v1857_v35  ;;  %v1885_v50 = vmax.f32 %v1825_v52, 0.0  ;;  %v2218_v28 = vsel %vm648_vm4, %v2215_v19, %v2217_v42 }
 0x2cf   : > { %4373 = vrot.lane.b32.xlu2 %v6986_v6, %s5020_s20 }
 0x2d0   : > { %v1898_v46 = vmax.f32 %v1858_v27, 0.0  ;;  %1917 = vst.msk [vmem:[#allocation2 + $0xb1] sm:$0xff] %vm226_vm0, %v1885_v50  ;;  %v2216_v50 = vsel %vm648_vm4, %v2214_v2, %v2215_v19 }
 0x2d1   : > { %v6997_v48 = vld [vmem:[#allocation2 + $0x140] sm:$0xff]  ;;  %v1977_v39 = vld [vmem:[#allocation2 + $0x148] sm:$0x3] }
 0x2d2   : > { %1930 = vst.msk [vmem:[#allocation2 + $0x151] sm:$0xff] %vm226_vm0, %v1898_v46  ;;  %v2104_v31 = vrot.slane %v6997_v48, 1  ;;  %v2106_v14 = vrot.slane %v1977_v39, 1  ;;  %v2282_v34 = vrot.slane %v1977_v39, 2  ;;  %v2280_v35 = vrot.slane %v6997_v48, 2  ;;  %v7019_v39 = vld [vmem:[#allocation2 + $0xa8] sm:$0xff] }
 0x2d3   : > { %v1827_v10 = vpop.f32.mrf.mxu0 }
 0x2d4   : > { %v2105_v53 = vsel %vm471_vm3, %v2103_v7, %v2104_v31  ;;  %v2107_v9 = vsel %vm471_vm3, %v2104_v31, %v2106_v14  ;;  %v2281_v51 = vsel %vm648_vm4, %v2279_v62, %v2280_v35  ;;  %v2283_v57 = vsel %vm648_vm4, %v2280_v35, %v2282_v34 }
 0x2d5   : > { %v1859_v5 = vpop.f32.mrf.mxu2  ;;  %v7011_v27 = vpack.i.bf16 %v2107_v9, %v2105_v53  ;;  %v1828_v46 = vadd.f32 %v6743_v3, %v1827_v10  ;;  %v7021_v7 = vpack.i.bf16 %v2283_v57, %v2281_v51  ;;  %v4362_v14 = vpack.i.bf16 %v2218_v28, %v2216_v50 }
 0x2d6   : > { %v1860_v52 = vadd.f32 %v6743_v3, %v1859_v5  ;;  %v2073_v35 = vrot.slane %v7019_v39, 1  ;;  %v2249_v53 = vrot.slane %v7019_v39, 2 }
 0x2d7   : > { %8489 = vst [vmem:[#allocation53_spill] sm:$0xff] %v7011_v27  ;;  %4358 = vrot.lane.b32.xlu0 %v7011_v27, %s5020_s20  ;;  %v1886_v31 = vmax.f32 %v1828_v46, 0.0  ;;  %4378 = vrot.lane.b32.xlu2 %v6814_v24, %s5021_s25  ;;  %v7026_v34 = vld [vmem:[#allocation2 + $0xb0] sm:$0xff]  ;;  %v1959_v2 = vld [vmem:[#allocation2 + $0xb8] sm:$0x3] }
 0x2d8   : > { %v1899_v62 = vmax.f32 %v1860_v52, 0.0  ;;  %v2074_v19 = vrot.slane %v7026_v34, 1  ;;  %v2076_v42 = vrot.slane %v1959_v2, 1  ;;  %v2252_v9 = vrot.slane %v1959_v2, 2 }
 0x2d9   : > { %1918 = vst.msk [vmem:[#allocation2 + $0xc1] sm:$0xff] %vm226_vm0, %v1886_v31  ;;  %v2250_v51 = vrot.slane %v7026_v34, 2  ;;  %v7039_v31 = vld [vmem:[#allocation2 + $0x150] sm:$0xff] }
 0x2da   : > { %1931 = vst.msk [vmem:[#allocation2 + $0x159] sm:$0xff] %vm226_vm0, %v1899_v62  ;;  %v2075_v10 = vsel %vm471_vm3, %v2073_v35, %v2074_v19  ;;  %v2077_v52 = vsel %vm471_vm3, %v2074_v19, %v2076_v42  ;;  %v2108_v42 = vrot.slane %v7039_v31, 1 }
 0x2db   : > { %v1829_v5 = vpop.f32.mrf.mxu0  ;;  %v2251_v46 = vsel %vm648_vm4, %v2249_v53, %v2250_v51  ;;  %v2253_v50 = vsel %vm648_vm4, %v2250_v51, %v2252_v9  ;;  %v7042_v2 = vpack.i.bf16 %v2077_v52, %v2075_v10  ;;  %v2284_v9 = vrot.slane %v7039_v31, 2 }
 0x2dc   : > { %v1830_v62 = vadd.f32 %v6743_v3, %v1829_v5  ;;  %v7044_v24 = vpack.i.bf16 %v2253_v50, %v2251_v46 }
 0x2dd   : > { %v1862_v57 = vpop.f32.mrf.mxu2  ;;  %8490 = vst [vmem:[#allocation48_spill] sm:$0xff] %v7042_v2 }
 0x2de   : > { %v1863_v28 = vadd.f32 %v6743_v3, %v1862_v57  ;;  %v1887_v35 = vmax.f32 %v1830_v62, 0.0 }
 0x2df   : > { %4363 = vrot.lane.b32.xlu0 %v4362_v14, %s5021_s25  ;;  %4403 = vrot.lane.b32.xlu2 %v6946_v60, %s5021_s25 }
 0x2e0   : > { %v1900_v54 = vmax.f32 %v1863_v28, 0.0  ;;  %1919 = vst.msk [vmem:[#allocation2 + $0xc9] sm:$0xff] %vm226_vm0, %v1887_v35  ;;  %v7069_v35 = vld [vmem:[#allocation2 + $0xc0] sm:$0xff] }
 0x2e1   : > { %v7048_v53 = vld [vmem:[#allocation2 + $0x158] sm:$0xff]  ;;  %v1980_v19 = vld [vmem:[#allocation2 + $0x160] sm:$0x3] }
 0x2e2   : > { %1932 = vst.msk [vmem:[#allocation2 + $0x169] sm:$0xff] %vm226_vm0, %v1900_v54  ;;  %v2109_v14 = vrot.slane %v7048_v53, 1  ;;  %v2111_v51 = vrot.slane %v1980_v19, 1  ;;  %v2287_v57 = vrot.slane %v1980_v19, 2  ;;  %v2285_v5 = vrot.slane %v7048_v53, 2 }
 0x2e4   : > { %v2110_v10 = vsel %vm471_vm3, %v2108_v42, %v2109_v14  ;;  %v2112_v52 = vsel %vm471_vm3, %v2109_v14, %v2111_v51  ;;  %v2286_v46 = vsel %vm648_vm4, %v2284_v9, %v2285_v5  ;;  %v2288_v50 = vsel %vm648_vm4, %v2285_v5, %v2287_v57 }
 0x2e5   : > { %v1864_v28 = vpop.f32.mrf.mxu2  ;;  %v7060_v62 = vpack.i.bf16 %v2112_v52, %v2110_v10  ;;  %v7062_v54 = vpack.i.bf16 %v2288_v50, %v2286_v46  ;;  %v2254_v14 = vrot.slane %v7069_v35, 2  ;;  %v2078_v51 = vrot.slane %v7069_v35, 1 }
 0x2e6   : > { %v1865_v60 = vadd.f32 %v6743_v3, %v1864_v28 }
 0x2e7   : > { %8491 = vst [vmem:[#allocation61_spill] sm:$0xff] %v7060_v62  ;;  %4388 = vrot.lane.b32.xlu0 %v7042_v2, %s5020_s20  ;;  %4383 = vrot.lane.b32.xlu1 %v7060_v62, %s5020_s20  ;;  %v7072_v42 = vld [vmem:[#allocation2 + $0xc8] sm:$0xff]  ;;  %v1962_v9 = vld [vmem:[#allocation2 + $0xd0] sm:$0x3] }
 0x2e8   : > { %v1901_v19 = vmax.f32 %v1865_v60, 0.0  ;;  %v2255_v57 = vrot.slane %v7072_v42, 2  ;;  %v2257_v5 = vrot.slane %v1962_v9, 2  ;;  %v2079_v10 = vrot.slane %v7072_v42, 1 }
 0x2e9   : > { %v2081_v52 = vrot.slane %v1962_v9, 1  ;;  %v7089_v9 = vld [vmem:[#allocation2 + $0x168] sm:$0xff] }
 0x2ea   : > { %1933 = vst.msk [vmem:[#allocation2 + $0x171] sm:$0xff] %vm226_vm0, %v1901_v19  ;;  %v2256_v50 = vsel %vm648_vm4, %v2254_v14, %v2255_v57  ;;  %v2258_v60 = vsel %vm648_vm4, %v2255_v57, %v2257_v5  ;;  %v2080_v28 = vsel %vm471_vm3, %v2078_v51, %v2079_v10  ;;  %v2113_v5 = vrot.slane %v7089_v9, 1 }
 0x2eb   : > { %v2082_v19 = vsel %vm471_vm3, %v2079_v10, %v2081_v52  ;;  %v7091_v27 = vpack.i.bf16 %v2258_v60, %v2256_v50 }
 0x2ec   : > { %v7083_v62 = vpack.i.bf16 %v2082_v19, %v2080_v28 }
 0x2ed   : > { %v1867_v46 = vpop.f32.mrf.mxu2  ;;  %8493 = vst [vmem:[#allocation66_spill] sm:$0xff] %v7091_v27 }
 0x2ee   : > { %v1868_v63 = vadd.f32 %v6743_v3, %v1867_v46  ;;  %8492 = vst [vmem:[#allocation57_spill] sm:$0xff] %v7083_v62  ;;  %v2289_v46 = vrot.slane %v7089_v9, 2 }
 0x2ef   : > { %4393 = vrot.lane.b32.xlu0 %v6856_v17, %s5021_s25  ;;  %4398 = vrot.lane.b32.xlu1 %v6900_v56, %s5021_s25 }
 0x2f0   : > { %v1902_v14 = vmax.f32 %v1868_v63, 0.0 }
 0x2f1   : > { %v7093_v57 = vld [vmem:[#allocation2 + $0x170] sm:$0xff]  ;;  %v1983_v51 = vld [vmem:[#allocation2 + $0x178] sm:$0x3] }
 0x2f2   : > { %1934 = vst.msk [vmem:[#allocation2 + $0x181] sm:$0xff] %vm226_vm0, %v1902_v14  ;;  %v2114_v10 = vrot.slane %v7093_v57, 1  ;;  %v2116_v52 = vrot.slane %v1983_v51, 1  ;;  %v2290_v28 = vrot.slane %v7093_v57, 2  ;;  %v2292_v19 = vrot.slane %v1983_v51, 2 }
 0x2f4   : > { %v2115_v56 = vsel %vm471_vm3, %v2113_v5, %v2114_v10  ;;  %v2117_v50 = vsel %vm471_vm3, %v2114_v10, %v2116_v52  ;;  %v2291_v17 = vsel %vm648_vm4, %v2289_v46, %v2290_v28  ;;  %v2293_v14 = vsel %vm648_vm4, %v2290_v28, %v2292_v19 }
 0x2f5   : > { %v1869_v63 = vpop.f32.mrf.mxu2  ;;  %v7102_v60 = vpack.i.bf16 %v2117_v50, %v2115_v56  ;;  %v7107_v16 = vpack.i.bf16 %v2293_v14, %v2291_v17  ;;  %v7126_v14 = vpop.permute.xlu2 %4308 }
 0x2f6   : > { %v1870_v45 = vadd.f32 %v6743_v3, %v1869_v63 }
 0x2f7   : > { %8494 = vst [vmem:[#allocation15_spill] sm:$0xff] %v7107_v16  ;;  %4408 = vrot.lane.b32.xlu0 %v6990_v29, %s5021_s25  ;;  %4423 = vrot.lane.b32.xlu2 %v7102_v60, %s5020_s20 }
 0x2f8   : > { %v1903_v51 = vmax.f32 %v1870_v45, 0.0  ;;  %4413 = vrot.lane.b32.xlu1 %v7044_v24, %s5021_s25 }
 0x2f9   : > { %v1984_v3 = vld [vmem:[#allocation2 + $0x180] sm:$0xff] }
 0x2fa   : > { %1935 = vst.msk [vmem:[#allocation2 + $0x189] sm:$0xff] %vm226_vm0, %v1903_v51  ;;  %v2489_v5 = vrot.slane %v1984_v3, 1  ;;  %v2590_v46 = vrot.slane %v1984_v3, 2 }
 0x2ff   : > { %4418 = vrot.lane.b32.xlu0 %v6832_v8, %s5021_s25  ;;  %4438 = vrot.lane.b32.xlu2 %v7091_v27, %s5021_s25 }
 0x300   : > { %4428 = vrot.lane.b32.xlu1 %v7083_v62, %s5020_s20 }
 0x301   : > { %v1985_v17 = vld [vmem:[#allocation2 + $0x188] sm:$0xff]  ;;  %v1986_v56 = vld [vmem:[#allocation2 + $0x190] sm:$0x3] }
 0x302   : > { %v2490_v10 = vrot.slane %v1985_v17, 1  ;;  %v2492_v45 = vrot.slane %v1986_v56, 1  ;;  %v7122_v52 = vpack.i.bf16 %v1985_v17, %v1984_v3  ;;  %v2591_v50 = vrot.slane %v1985_v17, 2  ;;  %v7140_v17 = vpop.permute.xlu2 %4323 }
 0x303   : > { %v2593_v63 = vrot.slane %v1986_v56, 2  ;;  %v4477_v56 = vpack.i.bf16 %v6839_v4, %v6836_v15 }
 0x304   : > { %8495 = vst [vmem:[#allocation6_spill] sm:$0xff] %v7122_v52  ;;  %v2491_v28 = vsel %vm471_vm3, %v2489_v5, %v2490_v10  ;;  %v2493_v19 = vsel %vm471_vm3, %v2490_v10, %v2492_v45  ;;  %v2592_v51 = vsel %vm648_vm4, %v2590_v46, %v2591_v50  ;;  %v4467_v5 = vpack.i.bf16 %v6771_v30, %v6768_v41 }
 0x305   : > { %v2594_v27 = vsel %vm648_vm4, %v2591_v50, %v2593_v63  ;;  %v7130_v8 = vpack.i.bf16 %v2493_v19, %v2491_v28  ;;  %v4492_v45 = vpack.i.bf16 %v6973_v61, %v6968_v20  ;;  %v4487_v46 = vpack.i.bf16 %v6927_v13, %v6924_v58  ;;  %v4319_v63 = vpop.permute.xlu1 %4318 }
 0x306   : > { %v7136_v3 = vpack.i.bf16 %v2594_v27, %v2592_v51  ;;  %v4472_v27 = vpack.i.bf16 %v6797_v44, %v6794_v0  ;;  %v4482_v28 = vpack.i.bf16 %v6883_v43, %v6878_v1  ;;  %v4507_v30 = vpack.i.bf16 %v6818_v37, %v6812_v23 }
 0x307   : > { %4448 = vrot.lane.b32.xlu0 %v6962_v21, %s5021_s25  ;;  %4443 = vrot.lane.b32.xlu2 %v6918_v25, %s5021_s25  ;;  %v4502_v19 = vpack.i.bf16 %v7072_v42, %v7069_v35  ;;  %v4497_v50 = vpack.i.bf16 %v7026_v34, %v7019_v39  ;;  %v4517_v23 = vpack.i.bf16 %v6904_v55, %v6898_v18 }
 0x308   : > { %8496 = vst [vmem:[#allocation19_spill] sm:$0xff] %v7136_v3  ;;  %4433 = vrot.lane.b32.xlu1 %v6874_v40, %s5021_s25  ;;  %v4512_v37 = vpack.i.bf16 %v6860_v49, %v6854_v22 }
 0x30a   : > { %v7157_v10 = vpop.permute.xlu2 %4333 }
 0x30f   : > { %4463 = vrot.lane.b32.xlu0 %v7107_v16, %s5021_s25  ;;  %4458 = vrot.lane.b32.xlu2 %v7062_v54, %s5021_s25 }
 0x310   : > { %4453 = vrot.lane.b32.xlu1 %v7021_v7, %s5021_s25 }
 0x317   : > { %4478 = vrot.lane.b32.xlu0 %v4477_v56, %s5022_s26  ;;  %4473 = vrot.lane.b32.xlu2 %v4472_v27, %s5022_s26  ;;  %v4522_v56 = vpack.i.bf16 %v6948_v47, %v6940_v12  ;;  %v4314_v27 = vpop.permute.xlu0 %4313 }
 0x318   : > { %4468 = vrot.lane.b32.xlu1 %v4467_v5, %s5022_s26  ;;  %v4321_v5 = vunpack.i.h.bf16 %v4319_v63 }
 0x31f   : > { %4493 = vrot.lane.b32.xlu0 %v4492_v45, %s5022_s26  ;;  %4488 = vrot.lane.b32.xlu2 %v4487_v46, %s5022_s26  ;;  %v4320_v45 = vunpack.i.l.bf16 %v4319_v63  ;;  %v7202_v63 = vpack.i.bf16 %v7093_v57, %v7089_v9 }
 0x320   : > { %4483 = vrot.lane.b32.xlu1 %v4482_v28, %s5022_s26 }
 0x321   : > { %v7168_v41 = vpop.permute.xlu2 %4353  ;;  %v2996_v3 = vsel %vm226_vm0, %v6794_v0, %v4320_v45  ;;  %8497 = vst [vmem:[#allocation26_spill] sm:$0xff] %v7202_v63 }
 0x327   : > { %4508 = vrot.lane.b32.xlu0 %v4507_v30, %s5022_s26  ;;  %4503 = vrot.lane.b32.xlu2 %v4502_v19, %s5022_s26 }
 0x328   : > { %4498 = vrot.lane.b32.xlu1 %v4497_v50, %s5022_s26  ;;  %v2997_v50 = vsel %vm226_vm0, %v6797_v44, %v4321_v5  ;;  %v7208_v44 = vpop.permute.xlu0 %4328 }
 0x329   : > { %v7179_v51 = vpop.permute.xlu2 %4373 }
 0x32f   : > { %4523 = vrot.lane.b32.xlu0 %v4522_v56, %s5022_s26  ;;  %4518 = vrot.lane.b32.xlu2 %v4517_v23, %s5022_s26  ;;  %v4344_v28 = vpop.permute.xlu1 %4343  ;;  %v4532_v56 = vpack.i.bf16 %v7048_v53, %v7039_v31  ;;  %v4527_v23 = vpack.i.bf16 %v6997_v48, %v6988_v33 }
 0x330   : > { %4513 = vrot.lane.b32.xlu1 %v4512_v37, %s5022_s26  ;;  %v4346_v0 = vunpack.i.h.bf16 %v4344_v28 }
 0x331   : > { %v4379_v46 = vpop.permute.xlu2 %4378 }
 0x332   : > { %v4381_v30 = vunpack.i.h.bf16 %v4379_v46  ;;  %v4380_v19 = vunpack.i.l.bf16 %v4379_v46 }
 0x334   : > { %v7195_v22 = vsel %vm1459_vm7, %v2996_v3, %v4380_v19  ;;  %v7198_v49 = vsel %vm1459_vm7, %v2997_v50, %v4381_v30  ;;  %v4345_v3 = vunpack.i.l.bf16 %v4344_v28  ;;  %v3003_v30 = vsel %vm226_vm0, %v6927_v13, %v4346_v0  ;;  %v7232_v13 = vpop.permute.xlu0 %4338 }
 0x335   : > { %v4316_v28 = vunpack.i.h.bf16 %v4314_v27 }
 0x336   : > { %v3002_v19 = vsel %vm226_vm0, %v6924_v58, %v4345_v3 }
 0x337   : > { %4538 = vrot.lane.b32.xlu0 %v7202_v63, %s5022_s26  ;;  %4533 = vrot.lane.b32.xlu2 %v4532_v56, %s5022_s26  ;;  %v7214_v5 = vpop.permute.xlu1 %4348  ;;  %v8501_v63 = vld [vmem:[#allocation53_spill] sm:$0xff] }
 0x338   : > { %4528 = vrot.lane.b32.xlu1 %v4527_v23, %s5022_s26  ;;  %v4315_v23 = vunpack.i.l.bf16 %v4314_v27 }
 0x339   : > { %v4404_v37 = vpop.permute.xlu2 %4403 }
 0x33a   : > { %v4406_v45 = vunpack.i.h.bf16 %v4404_v37  ;;  %v4405_v46 = vunpack.i.l.bf16 %v4404_v37  ;;  %v4981_v37 = vld [vmem:[#allocation2 + $0x20] sm:$0xff] }
 0x33c   : > { %v7221_v50 = vsel %vm1459_vm7, %v3002_v19, %v4405_v46  ;;  %v7224_v56 = vsel %vm1459_vm7, %v3003_v30, %v4406_v45  ;;  %v2995_v45 = vsel %vm226_vm0, %v4981_v37, %v4316_v28  ;;  %v4982_v46 = vld [vmem:[#allocation2 + $0x18] sm:$0xff]  ;;  %v4311_v28 = vunpack.i.h.bf16 %v7126_v14 }
 0x33d   : > { %8498 = vst [vmem:[#allocation31_spill] sm:$0xff] %v7224_v56  ;;  %v2994_v30 = vsel %vm226_vm0, %v4982_v46, %v4315_v23  ;;  %v4310_v23 = vunpack.i.l.bf16 %v7126_v14 }
 0x33f   : > { %4548 = vrot.lane.b32.xlu2 %v6782_v32, %s5023_s27  ;;  %4553 = vrot.lane.b32.xlu0 %v6810_v36, %s5023_s27  ;;  %v4369_v58 = vpop.permute.xlu1 %4368 }
 0x340   : > { %4543 = vrot.lane.b32.xlu1 %v7122_v52, %s5022_s26  ;;  %v4371_v0 = vunpack.i.h.bf16 %v4369_v58  ;;  %v4370_v3 = vunpack.i.l.bf16 %v4369_v58 }
 0x342   : > { %v7237_v32 = vsel %vm1459_vm7, %v2995_v45, %v4371_v0  ;;  %v7240_v19 = vsel %vm1459_vm7, %v2994_v30, %v4370_v3  ;;  %v4983_v45 = vld [vmem:[#allocation2 + $0x8] sm:$0xff]  ;;  %v4984_v30 = vld [vmem:[#allocation2] sm:$0xff] }
 0x343   : > { %v2993_v46 = vsel %vm226_vm0, %v4983_v45, %v4311_v28  ;;  %v2992_v14 = vsel %vm226_vm0, %v4984_v30, %v4310_v23  ;;  %v4326_v23 = vunpack.i.h.bf16 %v7140_v17  ;;  %v4351_v30 = vunpack.i.h.bf16 %v7214_v5 }
 0x347   : > { %4563 = vrot.lane.b32.xlu2 %v6896_v26, %s5023_s27  ;;  %4568 = vrot.lane.b32.xlu0 %v6938_v38, %s5023_s27  ;;  %v8503_v38 = vld [vmem:[#allocation24_spill] sm:$0xff]  ;;  %v4375_v26 = vunpack.i.l.bf16 %v7179_v51 }
 0x348   : > { %4558 = vrot.lane.b32.xlu1 %v6852_v59, %s5023_s27 }
 0x349   : > { %v7248_v27 = vpop.permute.xlu0 %4358 }
 0x34f   : > { %4578 = vrot.lane.b32.xlu2 %v7042_v2, %s5023_s27  ;;  %4583 = vrot.lane.b32.xlu0 %v7083_v62, %s5023_s27  ;;  %v8499_v62 = vld [vmem:[#allocation18_spill] sm:$0xff] }
 0x350   : > { %4573 = vrot.lane.b32.xlu1 %v6986_v6, %s5023_s27  ;;  %v2999_v6 = vsel %vm226_vm0, %v6839_v4, %v4326_v23 }
 0x351   : > { %v4364_v58 = vpop.permute.xlu0 %4363  ;;  %v7258_v0 = vpop.permute.xlu2 %4423 }
 0x352   : > { %v4366_v3 = vunpack.i.h.bf16 %v4364_v58  ;;  %v4365_v37 = vunpack.i.l.bf16 %v4364_v58  ;;  %v8500_v58 = vld [vmem:[#allocation4_spill] sm:$0xff] }
 0x354   : > { %v7263_v52 = vsel %vm1459_vm7, %v2993_v46, %v4366_v3  ;;  %v7266_v16 = vsel %vm1459_vm7, %v2992_v14, %v4365_v37  ;;  %v4325_v3 = vunpack.i.l.bf16 %v7140_v17  ;;  %v4331_v37 = vunpack.i.h.bf16 %v7208_v44 }
 0x355   : > { %v4330_v46 = vunpack.i.l.bf16 %v7208_v44  ;;  %v4350_v14 = vunpack.i.l.bf16 %v7214_v5 }
 0x356   : > { %v2998_v17 = vsel %vm226_vm0, %v6836_v15, %v4325_v3  ;;  %v3001_v44 = vsel %vm226_vm0, %v6883_v43, %v4331_v37  ;;  %v3015_v3 = vsel %vm226_vm0, %v6904_v55, %v4351_v30 }
 0x357   : > { %4593 = vrot.lane.b32.xlu2 %v6872_v11, %s5023_s27  ;;  %4598 = vrot.lane.b32.xlu0 %v8499_v62, %s5023_s27  ;;  %v3000_v5 = vsel %vm226_vm0, %v6878_v1, %v4330_v46  ;;  %v3014_v43 = vsel %vm226_vm0, %v6898_v18, %v4350_v14 }
 0x358   : > { %4588 = vrot.lane.b32.xlu1 %v8500_v58, %s5023_s27  ;;  %v8502_v58 = vld [vmem:[#allocation61_spill] sm:$0xff] }
 0x359   : > { %v4389_v2 = vpop.permute.xlu0 %4388  ;;  %v7274_v28 = vpop.permute.xlu2 %4438 }
 0x35a   : > { %v4384_v45 = vpop.permute.xlu1 %4383  ;;  %v4390_v56 = vunpack.i.l.bf16 %v4389_v2 }
 0x35b   : > { %v4386_v30 = vunpack.i.h.bf16 %v4384_v45  ;;  %v4385_v14 = vunpack.i.l.bf16 %v4384_v45 }
 0x35f   : > { %4608 = vrot.lane.b32.xlu2 %v8501_v63, %s5023_s27  ;;  %4613 = vrot.lane.b32.xlu0 %v8502_v58, %s5023_s27  ;;  %v4376_v63 = vunpack.i.h.bf16 %v7179_v51 }
 0x360   : > { %4603 = vrot.lane.b32.xlu1 %v8503_v38, %s5023_s27 }
 0x361   : > { %v4394_v58 = vpop.permute.xlu0 %4393  ;;  %v4444_v59 = vpop.permute.xlu2 %4443 }
 0x362   : > { %v4396_v62 = vunpack.i.h.bf16 %v4394_v58  ;;  %v4395_v4 = vunpack.i.l.bf16 %v4394_v58  ;;  %v4446_v23 = vunpack.i.h.bf16 %v4444_v59  ;;  %v4445_v36 = vunpack.i.l.bf16 %v4444_v59  ;;  %v4399_v15 = vpop.permute.xlu1 %4398 }
 0x363   : > { %v4401_v37 = vunpack.i.h.bf16 %v4399_v15  ;;  %v4400_v38 = vunpack.i.l.bf16 %v4399_v15  ;;  %v4391_v58 = vunpack.i.h.bf16 %v4389_v2  ;;  %v3004_v2 = vsel %vm226_vm0, %v6968_v20, %v4375_v26 }
 0x364   : > { %v7303_v1 = vsel %vm1459_vm7, %v2998_v17, %v4395_v4  ;;  %v7306_v51 = vsel %vm1459_vm7, %v2999_v6, %v4396_v62  ;;  %v7309_v46 = vsel %vm1459_vm7, %v3014_v43, %v4445_v36  ;;  %v7312_v59 = vsel %vm1459_vm7, %v3015_v3, %v4446_v23  ;;  %v8504_v6 = vld [vmem:[#allocation21_spill] sm:$0xff] }
 0x365   : > { %v7315_v55 = vsel %vm1459_vm7, %v3001_v44, %v4401_v37  ;;  %v7318_v18 = vsel %vm1459_vm7, %v3000_v5, %v4400_v38  ;;  %v3005_v36 = vsel %vm226_vm0, %v6973_v61, %v4376_v63  ;;  %v3007_v38 = vsel %vm226_vm0, %v7026_v34, %v4391_v58  ;;  %v8505_v58 = vld [vmem:[#allocation28_spill] sm:$0xff] }
 0x366   : > { %v3006_v62 = vsel %vm226_vm0, %v7019_v39, %v4390_v56  ;;  %v3021_v3 = vsel %vm226_vm0, %v7048_v53, %v4386_v30  ;;  %v3020_v61 = vsel %vm226_vm0, %v7039_v31, %v4385_v14  ;;  %v4336_v43 = vunpack.i.h.bf16 %v7157_v10  ;;  %v8506_v30 = vld [vmem:[#allocation16_spill] sm:$0xff]  ;;  %v8507_v14 = vld [vmem:[#allocation30_spill] sm:$0xff] }
 0x367   : > { %4623 = vrot.lane.b32.xlu2 %v7130_v8, %s5023_s27  ;;  %4628 = vrot.lane.b32.xlu0 %v8504_v6, %s5024_s28  ;;  %v4335_v53 = vunpack.i.l.bf16 %v7157_v10  ;;  %v7364_v6 = vld [vmem:[#allocation2 + $0xe0] sm:$0xff] }
 0x368   : > { %4618 = vrot.lane.b32.xlu1 %v7102_v60, %s5023_s27  ;;  %8508 = vst [vmem:[#allocation33_spill] sm:$0xff] %v7364_v6  ;;  %v3011_v10 = vsel %vm226_vm0, %v7364_v6, %v4336_v43 }
 0x369   : > { %v4409_v45 = vpop.permute.xlu0 %4408  ;;  %v4459_v17 = vpop.permute.xlu2 %4458 }
 0x36a   : > { %v4411_v44 = vunpack.i.h.bf16 %v4409_v45  ;;  %v4410_v5 = vunpack.i.l.bf16 %v4409_v45  ;;  %v4461_v4 = vunpack.i.h.bf16 %v4459_v17  ;;  %v4460_v23 = vunpack.i.l.bf16 %v4459_v17  ;;  %v4414_v15 = vpop.permute.xlu1 %4413 }
 0x36b   : > { %v4416_v26 = vunpack.i.h.bf16 %v4414_v15  ;;  %v4415_v20 = vunpack.i.l.bf16 %v4414_v15  ;;  %v4440_v15 = vunpack.i.l.bf16 %v7274_v28 }
 0x36c   : > { %v7339_v34 = vsel %vm1459_vm7, %v3004_v2, %v4410_v5  ;;  %v7342_v39 = vsel %vm1459_vm7, %v3005_v36, %v4411_v44  ;;  %v7345_v63 = vsel %vm1459_vm7, %v3020_v61, %v4460_v23  ;;  %v7348_v56 = vsel %vm1459_vm7, %v3021_v3, %v4461_v4  ;;  %v7368_v36 = vld [vmem:[#allocation2 + $0xd8] sm:$0xff] }
 0x36d   : > { %v7353_v31 = vsel %vm1459_vm7, %v3007_v38, %v4416_v26  ;;  %v7356_v37 = vsel %vm1459_vm7, %v3006_v62, %v4415_v20  ;;  %8509 = vst [vmem:[#allocation35_spill] sm:$0xff] %v7368_v36  ;;  %v3010_v2 = vsel %vm226_vm0, %v7368_v36, %v4335_v53  ;;  %v4441_v23 = vunpack.i.h.bf16 %v7274_v28 }
 0x36e   : > { %v4355_v28 = vunpack.i.l.bf16 %v7168_v41 }
 0x36f   : > { %4638 = vrot.lane.b32.xlu2 %v8505_v58, %s5024_s28  ;;  %4643 = vrot.lane.b32.xlu0 %v8506_v30, %s5024_s28 }
 0x370   : > { %4633 = vrot.lane.b32.xlu1 %v8507_v14, %s5024_s28 }
 0x371   : > { %v4419_v38 = vpop.permute.xlu0 %4418  ;;  %v4474_v62 = vpop.permute.xlu2 %4473 }
 0x372   : > { %v4421_v45 = vunpack.i.h.bf16 %v4419_v38  ;;  %v4420_v17 = vunpack.i.l.bf16 %v4419_v38  ;;  %v4476_v44 = vunpack.i.h.bf16 %v4474_v62  ;;  %v4475_v5 = vunpack.i.l.bf16 %v4474_v62  ;;  %v4429_v4 = vpop.permute.xlu1 %4428 }
 0x373   : > { %v4431_v3 = vunpack.i.h.bf16 %v4429_v4  ;;  %v4430_v61 = vunpack.i.l.bf16 %v4429_v4  ;;  %v4356_v38 = vunpack.i.h.bf16 %v7168_v41  ;;  %v3016_v41 = vsel %vm226_vm0, %v6940_v12, %v4355_v28 }
 0x374   : > { %v7375_v26 = vsel %vm1459_vm7, %v3010_v2, %v4420_v17  ;;  %v7378_v20 = vsel %vm1459_vm7, %v3011_v10, %v4421_v45  ;;  %v7382_v43 = vsel %vm1492_vm6, %v7240_v19, %v4475_v5  ;;  %v7386_v53 = vsel %vm1492_vm6, %v7237_v32, %v4476_v44 }
 0x375   : > { %v3009_v62 = vsel %vm226_vm0, %v7072_v42, %v4431_v3  ;;  %v3008_v2 = vsel %vm226_vm0, %v7069_v35, %v4430_v61  ;;  %v4341_v45 = vunpack.i.h.bf16 %v7232_v13  ;;  %v4340_v32 = vunpack.i.l.bf16 %v7232_v13  ;;  %v8510_v42 = vld [vmem:[#allocation3_spill] sm:$0xff]  ;;  %v4987_v3 = vld [vmem:[#allocation2 + $0xf8] sm:$0xff] }
 0x376   : > { %v7395_v10 = vsel %vm1459_vm7, %v3008_v2, %v4440_v15  ;;  %v7398_v19 = vsel %vm1459_vm7, %v3009_v62, %v4441_v23  ;;  %v3017_v35 = vsel %vm226_vm0, %v6948_v47, %v4356_v38  ;;  %v4988_v62 = vld [vmem:[#allocation2 + $0xf0] sm:$0xff] }
 0x377   : > { %4653 = vrot.lane.b32.xlu2 %v6990_v29, %s5024_s28  ;;  %4658 = vrot.lane.b32.xlu0 %v7044_v24, %s5024_s28  ;;  %v3013_v61 = vsel %vm226_vm0, %v4987_v3, %v4341_v45  ;;  %v3012_v2 = vsel %vm226_vm0, %v4988_v62, %v4340_v32  ;;  %v4361_v45 = vunpack.i.h.bf16 %v7248_v27  ;;  %v4360_v32 = vunpack.i.l.bf16 %v7248_v27 }
 0x378   : > { %4648 = vrot.lane.b32.xlu1 %v8510_v42, %s5024_s28 }
 0x379   : > { %v4449_v17 = vpop.permute.xlu0 %4448  ;;  %v4489_v44 = vpop.permute.xlu2 %4488  ;;  %v3019_v27 = vsel %vm226_vm0, %v6997_v48, %v4361_v45 }
 0x37a   : > { %v4451_v5 = vunpack.i.h.bf16 %v4449_v17  ;;  %v4450_v4 = vunpack.i.l.bf16 %v4449_v17  ;;  %v4491_v13 = vunpack.i.h.bf16 %v4489_v44  ;;  %v4490_v23 = vunpack.i.l.bf16 %v4489_v44  ;;  %v4434_v15 = vpop.permute.xlu1 %4433 }
 0x37b   : > { %v4436_v6 = vunpack.i.h.bf16 %v4434_v15  ;;  %v4435_v36 = vunpack.i.l.bf16 %v4434_v15  ;;  %v4426_v44 = vunpack.i.h.bf16 %v7258_v0 }
 0x37c   : > { %v7415_v47 = vsel %vm1459_vm7, %v3016_v41, %v4450_v4  ;;  %v7418_v12 = vsel %vm1459_vm7, %v3017_v35, %v4451_v5  ;;  %v7422_v38 = vsel %vm1492_vm6, %v7318_v18, %v4490_v23  ;;  %v7426_v28 = vsel %vm1492_vm6, %v7315_v55, %v4491_v13  ;;  %v8511_v5 = vld [vmem:[#allocation13_spill] sm:$0xff]  ;;  %v8512_v55 = vld [vmem:[#allocation66_spill] sm:$0xff] }
 0x37d   : > { %v3045_v17 = vsel %vm1459_vm7, %v3013_v61, %v4436_v6  ;;  %v3044_v41 = vsel %vm1459_vm7, %v3012_v2, %v4435_v36  ;;  %v4425_v35 = vunpack.i.l.bf16 %v7258_v0  ;;  %v3018_v18 = vsel %vm226_vm0, %v6988_v33, %v4360_v32 }
 0x37e   : > { %v3023_v61 = vsel %vm226_vm0, %v7093_v57, %v4426_v44 }
 0x37f   : > { %4668 = vrot.lane.b32.xlu2 %v8511_v5, %s5024_s28  ;;  %4673 = vrot.lane.b32.xlu0 %v6874_v40, %s5024_s28  ;;  %v3022_v2 = vsel %vm226_vm0, %v7089_v9, %v4425_v35 }
 0x380   : > { %4663 = vrot.lane.b32.xlu1 %v8512_v55, %s5024_s28 }
 0x381   : > { %v4464_v6 = vpop.permute.xlu0 %4463  ;;  %v4504_v36 = vpop.permute.xlu2 %4503 }
 0x382   : > { %v4466_v4 = vunpack.i.h.bf16 %v4464_v6  ;;  %v4465_v13 = vunpack.i.l.bf16 %v4464_v6  ;;  %v4506_v0 = vunpack.i.h.bf16 %v4504_v36  ;;  %v4505_v23 = vunpack.i.l.bf16 %v4504_v36  ;;  %v4454_v15 = vpop.permute.xlu1 %4453 }
 0x383   : > { %v4456_v5 = vunpack.i.h.bf16 %v4454_v15  ;;  %v4455_v55 = vunpack.i.l.bf16 %v4454_v15 }
 0x384   : > { %v7449_v48 = vsel %vm1459_vm7, %v3022_v2, %v4465_v13  ;;  %v7452_v33 = vsel %vm1459_vm7, %v3023_v61, %v4466_v4  ;;  %v7456_v45 = vsel %vm1492_vm6, %v7356_v37, %v4505_v23  ;;  %v7460_v32 = vsel %vm1492_vm6, %v7353_v31, %v4506_v0 }
 0x385   : > { %v3051_v57 = vsel %vm1459_vm7, %v3019_v27, %v4456_v5  ;;  %v3050_v9 = vsel %vm1459_vm7, %v3018_v18, %v4455_v55  ;;  %v4697_v61 = vpack.i.bf16 %v4987_v3, %v4988_v62  ;;  %v8513_v3 = vld [vmem:[#allocation31_spill] sm:$0xff] }
 0x387   : > { %4683 = vrot.lane.b32.xlu2 %v6962_v21, %s5024_s28  ;;  %4688 = vrot.lane.b32.xlu0 %v7021_v7, %s5024_s28 }
 0x388   : > { %4678 = vrot.lane.b32.xlu1 %v6918_v25, %s5024_s28 }
 0x389   : > { %v4479_v44 = vpop.permute.xlu0 %4478  ;;  %v4519_v37 = vpop.permute.xlu2 %4518 }
 0x38a   : > { %v4481_v35 = vunpack.i.h.bf16 %v4479_v44  ;;  %v4480_v6 = vunpack.i.l.bf16 %v4479_v44  ;;  %v4521_v36 = vunpack.i.h.bf16 %v4519_v37  ;;  %v4520_v31 = vunpack.i.l.bf16 %v4519_v37  ;;  %v4469_v4 = vpop.permute.xlu1 %4468 }
 0x38b   : > { %v4471_v13 = vunpack.i.h.bf16 %v4469_v4  ;;  %v4470_v5 = vunpack.i.l.bf16 %v4469_v4  ;;  %v4989_v4 = vld [vmem:[#allocation2 + $0x30] sm:$0xff] }
 0x38c   : > { %v7472_v55 = vsel %vm1492_vm6, %v7195_v22, %v4480_v6  ;;  %v7476_v27 = vsel %vm1492_vm6, %v7198_v49, %v4481_v35  ;;  %v7479_v18 = vsel %vm1492_vm6, %v3044_v41, %v4520_v31  ;;  %v7482_v0 = vsel %vm1492_vm6, %v3045_v17, %v4521_v36 }
 0x38d   : > { %v3057_v23 = vsel %vm1492_vm6, %v7263_v52, %v4471_v13  ;;  %v3056_v15 = vsel %vm1492_vm6, %v7266_v16, %v4470_v5  ;;  %v4990_v13 = vld [vmem:[#allocation2 + $0x38] sm:$0xff]  ;;  %v8514_v5 = vld [vmem:[#allocation5_spill] sm:$0xff] }
 0x38f   : > { %4698 = vrot.lane.b32.xlu2 %v4697_v61, %s5025_s29  ;;  %4703 = vrot.lane.b32.xlu0 %v6872_v11, %s5026_s30 }
 0x390   : > { %4693 = vrot.lane.b32.xlu1 %v7062_v54, %s5024_s28 }
 0x391   : > { %v4494_v22 = vpop.permute.xlu0 %4493  ;;  %v4534_v49 = vpop.permute.xlu2 %4533 }
 0x392   : > { %v4496_v41 = vunpack.i.h.bf16 %v4494_v22  ;;  %v4495_v17 = vunpack.i.l.bf16 %v4494_v22  ;;  %v4536_v2 = vunpack.i.h.bf16 %v4534_v49  ;;  %v4535_v44 = vunpack.i.l.bf16 %v4534_v49  ;;  %v4484_v37 = vpop.permute.xlu1 %4483 }
 0x393   : > { %v4486_v52 = vunpack.i.h.bf16 %v4484_v37  ;;  %v4485_v35 = vunpack.i.l.bf16 %v4484_v37 }
 0x394   : > { %v7495_v16 = vsel %vm1492_vm6, %v7221_v50, %v4495_v17  ;;  %v7499_v62 = vsel %vm1492_vm6, %v8513_v3, %v4496_v41  ;;  %v7502_v11 = vsel %vm1492_vm6, %v3050_v9, %v4535_v44  ;;  %v7505_v6 = vsel %vm1492_vm6, %v3051_v57, %v4536_v2  ;;  %v4991_v3 = vld [vmem:[#allocation2 + $0x108] sm:$0xff] }
 0x395   : > { %v3063_v36 = vsel %vm1492_vm6, %v7306_v51, %v4486_v52  ;;  %v3062_v31 = vsel %vm1492_vm6, %v7303_v1, %v4485_v35  ;;  %v4712_v50 = vpack.i.bf16 %v4990_v13, %v4989_v4  ;;  %v4992_v4 = vld [vmem:[#allocation2 + $0x110] sm:$0xff] }
 0x397   : > { %4713 = vrot.lane.b32.xlu2 %v4712_v50, %s5025_s29  ;;  %4718 = vrot.lane.b32.xlu0 %v8514_v5, %s5026_s30 }
 0x398   : > { %4708 = vrot.lane.b32.xlu1 %v6874_v40, %s5027_s6 }
 0x399   : > { %v4509_v9 = vpop.permute.xlu0 %4508  ;;  %v4549_v57 = vpop.permute.xlu2 %4548 }
 0x39a   : > { %v4511_v61 = vunpack.i.h.bf16 %v4509_v9  ;;  %v4510_v22 = vunpack.i.l.bf16 %v4509_v9  ;;  %v4551_v49 = vunpack.i.h.bf16 %v4549_v57  ;;  %v4550_v51 = vunpack.i.l.bf16 %v4549_v57  ;;  %v4499_v41 = vpop.permute.xlu1 %4498 }
 0x39b   : > { %v4501_v17 = vunpack.i.h.bf16 %v4499_v41  ;;  %v4500_v1 = vunpack.i.l.bf16 %v4499_v41 }
 0x39c   : > { %v7518_v2 = vsel %vm1492_vm6, %v7395_v10, %v4510_v22  ;;  %v7522_v44 = vsel %vm1492_vm6, %v7398_v19, %v4511_v61  ;;  %v7525_v37 = vsel %vm1525_vm8, %v3056_v15, %v4550_v51  ;;  %v7528_v40 = vsel %vm1525_vm8, %v3057_v23, %v4551_v49  ;;  %v8515_v19 = vld [vmem:[#allocation18_spill] sm:$0xff] }
 0x39d   : > { %v3069_v52 = vsel %vm1492_vm6, %v7342_v39, %v4501_v17  ;;  %v3068_v35 = vsel %vm1492_vm6, %v7339_v34, %v4500_v1  ;;  %v4727_v10 = vpack.i.bf16 %v4992_v4, %v4991_v3  ;;  %v4993_v17 = vld [vmem:[#allocation2 + $0x48] sm:$0xff]  ;;  %v4994_v1 = vld [vmem:[#allocation2 + $0x50] sm:$0xff] }
 0x39f   : > { %4728 = vrot.lane.b32.xlu2 %v4727_v10, %s5025_s29  ;;  %4733 = vrot.lane.b32.xlu0 %v8515_v19, %s5026_s30 }
 0x3a0   : > { %4723 = vrot.lane.b32.xlu1 %v8507_v14, %s5027_s6 }
 0x3a1   : > { %v4524_v15 = vpop.permute.xlu0 %4523  ;;  %v4564_v23 = vpop.permute.xlu2 %4563 }
 0x3a2   : > { %v4526_v13 = vunpack.i.h.bf16 %v4524_v15  ;;  %v4525_v50 = vunpack.i.l.bf16 %v4524_v15  ;;  %v4566_v5 = vunpack.i.h.bf16 %v4564_v23  ;;  %v4565_v39 = vunpack.i.l.bf16 %v4564_v23  ;;  %v4514_v9 = vpop.permute.xlu1 %4513 }
 0x3a3   : > { %v4516_v57 = vunpack.i.h.bf16 %v4514_v9  ;;  %v4515_v34 = vunpack.i.l.bf16 %v4514_v9  ;;  %v4995_v9 = vld [vmem:[#allocation2 + $0x120] sm:$0xff] }
 0x3a4   : > { %v7541_v61 = vsel %vm1492_vm6, %v7309_v46, %v4525_v50  ;;  %v7545_v22 = vsel %vm1492_vm6, %v7312_v59, %v4526_v13  ;;  %v7548_v49 = vsel %vm1525_vm8, %v3062_v31, %v4565_v39  ;;  %v7551_v14 = vsel %vm1525_vm8, %v3063_v36, %v4566_v5  ;;  %v8516_v59 = vld [vmem:[#allocation23_spill] sm:$0xff] }
 0x3a5   : > { %v3075_v51 = vsel %vm1492_vm6, %v7378_v20, %v4516_v57  ;;  %v3074_v41 = vsel %vm1492_vm6, %v7375_v26, %v4515_v34  ;;  %v4742_v46 = vpack.i.bf16 %v4994_v1, %v4993_v17  ;;  %v4996_v57 = vld [vmem:[#allocation2 + $0x128] sm:$0xff] }
 0x3a7   : > { %4743 = vrot.lane.b32.xlu2 %v4742_v46, %s5025_s29  ;;  %4748 = vrot.lane.b32.xlu0 %v8516_v59, %s5026_s30 }
 0x3a8   : > { %4738 = vrot.lane.b32.xlu1 %v6918_v25, %s5027_s6 }
 0x3a9   : > { %v4539_v31 = vpop.permute.xlu0 %4538  ;;  %v4579_v36 = vpop.permute.xlu2 %4578 }
 0x3aa   : > { %v4541_v3 = vunpack.i.h.bf16 %v4539_v31  ;;  %v4540_v4 = vunpack.i.l.bf16 %v4539_v31  ;;  %v4581_v10 = vunpack.i.h.bf16 %v4579_v36  ;;  %v4580_v20 = vunpack.i.l.bf16 %v4579_v36  ;;  %v4529_v19 = vpop.permute.xlu1 %4528 }
 0x3ab   : > { %v4531_v15 = vunpack.i.h.bf16 %v4529_v19  ;;  %v4530_v26 = vunpack.i.l.bf16 %v4529_v19 }
 0x3ac   : > { %v7564_v23 = vsel %vm1492_vm6, %v7345_v63, %v4540_v4  ;;  %v7568_v13 = vsel %vm1492_vm6, %v7348_v56, %v4541_v3  ;;  %v7571_v50 = vsel %vm1525_vm8, %v3068_v35, %v4580_v20  ;;  %v7574_v25 = vsel %vm1525_vm8, %v3069_v52, %v4581_v10  ;;  %v8517_v56 = vld [vmem:[#allocation24_spill] sm:$0xff]  ;;  %v4997_v20 = vld [vmem:[#allocation2 + $0x60] sm:$0xff] }
 0x3ad   : > { %v3081_v5 = vsel %vm1492_vm6, %v7418_v12, %v4531_v15  ;;  %v3080_v39 = vsel %vm1492_vm6, %v7415_v47, %v4530_v26  ;;  %v4757_v63 = vpack.i.bf16 %v4996_v57, %v4995_v9 }
 0x3af   : > { %4758 = vrot.lane.b32.xlu2 %v4757_v63, %s5025_s29  ;;  %4763 = vrot.lane.b32.xlu0 %v8517_v56, %s5026_s30 }
 0x3b0   : > { %4753 = vrot.lane.b32.xlu1 %v8505_v58, %s5027_s6 }
 0x3b1   : > { %v4594_v35 = vpop.permute.xlu2 %4593  ;;  %v4554_v52 = vpop.permute.xlu0 %4553 }
 0x3b2   : > { %v4596_v34 = vunpack.i.h.bf16 %v4594_v35  ;;  %v4595_v17 = vunpack.i.l.bf16 %v4594_v35  ;;  %v4556_v1 = vunpack.i.h.bf16 %v4554_v52  ;;  %v4555_v12 = vunpack.i.l.bf16 %v4554_v52  ;;  %v4544_v46 = vpop.permute.xlu1 %4543 }
 0x3b3   : > { %v4546_v59 = vunpack.i.h.bf16 %v4544_v46  ;;  %v4545_v47 = vunpack.i.l.bf16 %v4544_v46 }
 0x3b4   : > { %v7586_v31 = vsel %vm1525_vm8, %v3074_v41, %v4595_v17  ;;  %v7589_v36 = vsel %vm1525_vm8, %v3075_v51, %v4596_v34  ;;  %v7593_v3 = vsel %vm1525_vm8, %v7382_v43, %v4555_v12  ;;  %v7597_v58 = vsel %vm1525_vm8, %v7386_v53, %v4556_v1  ;;  %v4998_v41 = vld [vmem:[#allocation2 + $0x68] sm:$0xff]  ;;  %v8518_v51 = vld [vmem:[#allocation8_spill] sm:$0xff] }
 0x3b5   : > { %v3087_v4 = vsel %vm1492_vm6, %v7452_v33, %v4546_v59  ;;  %v3086_v10 = vsel %vm1492_vm6, %v7449_v48, %v4545_v47  ;;  %v4772_v19 = vpack.i.bf16 %v4998_v41, %v4997_v20  ;;  %v4999_v1 = vld [vmem:[#allocation2 + $0x138] sm:$0xff] }
 0x3b7   : > { %4773 = vrot.lane.b32.xlu2 %v4772_v19, %s5025_s29  ;;  %4778 = vrot.lane.b32.xlu0 %v8518_v51, %s5026_s30 }
 0x3b8   : > { %4768 = vrot.lane.b32.xlu1 %v6962_v21, %s5027_s6 }
 0x3b9   : > { %v4609_v43 = vpop.permute.xlu2 %4608  ;;  %v4569_v53 = vpop.permute.xlu0 %4568 }
 0x3ba   : > { %v4611_v15 = vunpack.i.h.bf16 %v4609_v43  ;;  %v4610_v26 = vunpack.i.l.bf16 %v4609_v43  ;;  %v4571_v9 = vunpack.i.h.bf16 %v4569_v53  ;;  %v4570_v33 = vunpack.i.l.bf16 %v4569_v53  ;;  %v4559_v57 = vpop.permute.xlu1 %4558 }
 0x3bb   : > { %v4561_v63 = vunpack.i.h.bf16 %v4559_v57  ;;  %v4560_v48 = vunpack.i.l.bf16 %v4559_v57 }
 0x3bc   : > { %v7609_v56 = vsel %vm1525_vm8, %v3080_v39, %v4610_v26  ;;  %v7612_v35 = vsel %vm1525_vm8, %v3081_v5, %v4611_v15  ;;  %v7616_v52 = vsel %vm1525_vm8, %v7422_v38, %v4570_v33  ;;  %v7620_v21 = vsel %vm1525_vm8, %v7426_v28, %v4571_v9  ;;  %v5000_v39 = vld [vmem:[#allocation2 + $0x140] sm:$0xff]  ;;  %v5001_v26 = vld [vmem:[#allocation2 + $0x78] sm:$0xff] }
 0x3bd   : > { %v3092_v34 = vsel %vm1525_vm8, %v7472_v55, %v4560_v48  ;;  %v3093_v17 = vsel %vm1525_vm8, %v7476_v27, %v4561_v63  ;;  %v4787_v12 = vpack.i.bf16 %v5000_v39, %v4999_v1  ;;  %v8519_v5 = vld [vmem:[#allocation53_spill] sm:$0xff] }
 0x3bf   : > { %4788 = vrot.lane.b32.xlu2 %v4787_v12, %s5025_s29  ;;  %4793 = vrot.lane.b32.xlu0 %v8519_v5, %s5026_s30  ;;  %v5003_v12 = vld [vmem:[#allocation2 + $0x150] sm:$0xff]  ;;  %v5004_v5 = vld [vmem:[#allocation2 + $0x158] sm:$0xff] }
 0x3c0   : > { %4783 = vrot.lane.b32.xlu1 %v8506_v30, %s5027_s6 }
 0x3c1   : > { %v4624_v38 = vpop.permute.xlu2 %4623  ;;  %v4584_v28 = vpop.permute.xlu0 %4583 }
 0x3c2   : > { %v4626_v46 = vunpack.i.h.bf16 %v4624_v38  ;;  %v4625_v59 = vunpack.i.l.bf16 %v4624_v38  ;;  %v4586_v47 = vunpack.i.h.bf16 %v4584_v28  ;;  %v4585_v55 = vunpack.i.l.bf16 %v4584_v28  ;;  %v4574_v20 = vpop.permute.xlu1 %4573  ;;  %v8521_v28 = vld [vmem:[#allocation61_spill] sm:$0xff] }
 0x3c3   : > { %v4576_v41 = vunpack.i.h.bf16 %v4574_v20  ;;  %v4575_v27 = vunpack.i.l.bf16 %v4574_v20  ;;  %v4817_v38 = vpack.i.bf16 %v5004_v5, %v5003_v12 }
 0x3c4   : > { %v7632_v19 = vsel %vm1525_vm8, %v3086_v10, %v4625_v59  ;;  %v7635_v51 = vsel %vm1525_vm8, %v3087_v4, %v4626_v46  ;;  %v7639_v43 = vsel %vm1525_vm8, %v7456_v45, %v4585_v55  ;;  %v7643_v30 = vsel %vm1525_vm8, %v7460_v32, %v4586_v47  ;;  %v5002_v10 = vld [vmem:[#allocation2 + $0x80] sm:$0xff]  ;;  %v8520_v4 = vld [vmem:[#allocation22_spill] sm:$0xff] }
 0x3c5   : > { %v3098_v53 = vsel %vm1525_vm8, %v7495_v16, %v4575_v27  ;;  %v3099_v15 = vsel %vm1525_vm8, %v7499_v62, %v4576_v41  ;;  %v4802_v9 = vpack.i.bf16 %v5002_v10, %v5001_v26 }
 0x3c7   : > { %4803 = vrot.lane.b32.xlu2 %v4802_v9, %s5025_s29  ;;  %4808 = vrot.lane.b32.xlu0 %v8520_v4, %s5026_s30  ;;  %v5006_v4 = vld [vmem:[#allocation2 + $0x98] sm:$0xff] }
 0x3c8   : > { %4798 = vrot.lane.b32.xlu1 %v7021_v7, %s5027_s6 }
 0x3c9   : > { %v4639_v45 = vpop.permute.xlu2 %4638  ;;  %v4599_v32 = vpop.permute.xlu0 %4598 }
 0x3ca   : > { %v4641_v33 = vunpack.i.h.bf16 %v4639_v45  ;;  %v4640_v57 = vunpack.i.l.bf16 %v4639_v45  ;;  %v4601_v63 = vunpack.i.h.bf16 %v4599_v32  ;;  %v4600_v16 = vunpack.i.l.bf16 %v4599_v32  ;;  %v7654_v48 = vpop.permute.xlu1 %4588 }
 0x3cc   : > { %v7657_v62 = vsel %vm1558_vm10, %v3092_v34, %v4640_v57  ;;  %v7660_v1 = vsel %vm1558_vm10, %v3093_v17, %v4641_v33  ;;  %v7664_v39 = vsel %vm1525_vm8, %v7479_v18, %v4600_v16  ;;  %v7668_v7 = vsel %vm1525_vm8, %v7482_v0, %v4601_v63  ;;  %v8523_v63 = vld [vmem:[#allocation26_spill] sm:$0xff] }
 0x3cf   : > { %4818 = vrot.lane.b32.xlu2 %v4817_v38, %s5025_s29  ;;  %4823 = vrot.lane.b32.xlu0 %v8521_v28, %s5026_s30  ;;  %v5008_v28 = vld [vmem:[#allocation2 + $0xb0] sm:$0xff] }
 0x3d0   : > { %4813 = vrot.lane.b32.xlu1 %v8510_v42, %s5027_s6 }
 0x3d1   : > { %v4654_v34 = vpop.permute.xlu2 %4653  ;;  %v4614_v17 = vpop.permute.xlu0 %4613 }
 0x3d2   : > { %v4656_v46 = vunpack.i.h.bf16 %v4654_v34  ;;  %v4655_v18 = vunpack.i.l.bf16 %v4654_v34  ;;  %v4616_v59 = vunpack.i.h.bf16 %v4614_v17  ;;  %v4615_v47 = vunpack.i.l.bf16 %v4614_v17  ;;  %v4604_v55 = vpop.permute.xlu1 %4603 }
 0x3d3   : > { %v4606_v0 = vunpack.i.h.bf16 %v4604_v55  ;;  %v4605_v20 = vunpack.i.l.bf16 %v4604_v55 }
 0x3d4   : > { %v7676_v41 = vsel %vm1558_vm10, %v3098_v53, %v4655_v18  ;;  %v7679_v27 = vsel %vm1558_vm10, %v3099_v15, %v4656_v46  ;;  %v7683_v26 = vsel %vm1525_vm8, %v7502_v11, %v4615_v47  ;;  %v7687_v42 = vsel %vm1525_vm8, %v7505_v6, %v4616_v59  ;;  %v5005_v53 = vld [vmem:[#allocation2 + $0x90] sm:$0xff]  ;;  %v8522_v11 = vld [vmem:[#allocation14_spill] sm:$0xff]  ;;  %v8524_v46 = vld [vmem:[#allocation48_spill] sm:$0xff] }
 0x3d5   : > { %v7691_v10 = vsel %vm1525_vm8, %v7541_v61, %v4605_v20  ;;  %v7695_v9 = vsel %vm1525_vm8, %v7545_v22, %v4606_v0  ;;  %v4832_v15 = vpack.i.bf16 %v5006_v4, %v5005_v53  ;;  %v8525_v59 = vld [vmem:[#allocation15_spill] sm:$0xff]  ;;  %v3643_v53 = vld [vmem:[%s8176_s3 + $0x8] sm:$0xff] }
 0x3d7   : > { %4833 = vrot.lane.b32.xlu2 %v4832_v15, %s5025_s29  ;;  %4838 = vrot.lane.b32.xlu0 %v8522_v11, %s5026_s30 }
 0x3d8   : > { %4828 = vrot.lane.b32.xlu1 %v7062_v54, %s5027_s6 }
 0x3d9   : > { %v7702_v6 = vpop.permute.xlu2 %4668  ;;  %v7704_v45 = vpop.permute.xlu0 %4628 }
 0x3da   : > { %v4619_v61 = vpop.permute.xlu1 %4618 }
 0x3db   : > { %v4621_v32 = vunpack.i.h.bf16 %v4619_v61  ;;  %v4620_v33 = vunpack.i.l.bf16 %v4619_v61 }
 0x3dd   : > { %v7708_v22 = vsel %vm1525_vm8, %v7564_v23, %v4620_v33  ;;  %v7712_v57 = vsel %vm1525_vm8, %v7568_v13, %v4621_v32  ;;  %v3268_v13 = vld [vmem:[%s8176_s3 + $0x10] sm:$0x3] }
 0x3de   : > { %v3282_v17 = vunpack.c.l.b16 %v3268_v13 }
 0x3df   : > { %4848 = vrot.lane.b32.xlu2 %v8523_v63, %s5025_s29  ;;  %4853 = vrot.lane.b32.xlu0 %v7102_v60, %s5026_s30  ;;  %v3642_v63 = vld [vmem:[%s8176_s3] sm:$0xff] }
 0x3e0   : > { %4843 = vrot.lane.b32.xlu1 %v6990_v29, %s5027_s6  ;;  %v5007_v29 = vld [vmem:[#allocation2 + $0xa8] sm:$0xff]  ;;  %v3285_v18 = vpack.c.b16 %v3282_v17, %v3282_v17  ;;  %v1987_v17 = vld [vmem:[#allocation2 + $0x198] sm:$0xff] }
 0x3e1   : > { %v7720_v54 = vpop.permute.xlu2 %4683  ;;  %v4644_v16 = vpop.permute.xlu0 %4643  ;;  %v4862_v34 = vpack.i.bf16 %v5008_v28, %v5007_v29  ;;  %v5009_v29 = vld [vmem:[#allocation2 + $0xc0] sm:$0xff]  ;;  %v5010_v28 = vld [vmem:[#allocation2 + $0xc8] sm:$0xff] }
 0x3e2   : > { %v4646_v12 = vunpack.i.h.bf16 %v4644_v16  ;;  %v4645_v5 = vunpack.i.l.bf16 %v4644_v16  ;;  %v7722_v23 = vpop.permute.xlu1 %4633  ;;  %v3337_v55 = vsel %vm1779_vm5, %v3285_v18, 0  ;;  %v1989_v18 = vld [vmem:[#allocation2 + $0x1a8] sm:$0x3] }
 0x3e3   : > { %3647 = vmatpush.bf16.msra.mxu3 %v3337_v55  ;;  %3344 = vmatpush.bf16.msra.mxu1 %v3337_v55 }
 0x3e4   : > { %v7729_v38 = vsel %vm1558_vm10, %v7548_v49, %v4645_v5  ;;  %v7733_v60 = vsel %vm1558_vm10, %v7551_v14, %v4646_v12 }
 0x3e7   : > { %4863 = vrot.lane.b32.xlu2 %v4862_v34, %s5025_s29  ;;  %4868 = vrot.lane.b32.xlu0 %v8524_v46, %s5026_s30  ;;  %v8527_v34 = vld [vmem:[#allocation19_spill] sm:$0xff]  ;;  %v1988_v46 = vld [vmem:[#allocation2 + $0x1a0] sm:$0xff] }
 0x3e8   : > { %4858 = vrot.lane.b32.xlu1 %v8525_v59, %s5027_s6  ;;  %3648 = vmatpush.bf16.msra.mxu3 %v3643_v53 }
 0x3e9   : > { %v7740_v47 = vpop.permute.xlu2 %4698  ;;  %v4659_v49 = vpop.permute.xlu0 %4658  ;;  %3345 = vmatpush.bf16.msra.mxu1 %v3643_v53  ;;  %v2891_v53 = vrot.slane %v1987_v17, 2 }
 0x3ea   : > { %v4661_v14 = vunpack.i.h.bf16 %v4659_v49  ;;  %v4660_v0 = vunpack.i.l.bf16 %v4659_v49  ;;  %v4649_v20 = vpop.permute.xlu1 %4648 }
 0x3eb   : > { %v4651_v4 = vunpack.i.h.bf16 %v4649_v20  ;;  %v4650_v15 = vunpack.i.l.bf16 %v4649_v20  ;;  %v2793_v20 = vrot.slane %v1989_v18, 1 }
 0x3ec   : > { %v7748_v11 = vsel %vm1558_vm10, %v7571_v50, %v4660_v0  ;;  %v7752_v61 = vsel %vm1558_vm10, %v7574_v25, %v4661_v14  ;;  %v8526_v50 = vld [vmem:[#allocation6_spill] sm:$0xff]  ;;  %3649 = vmatpush.bf16.msra.mxu3 %v3642_v63  ;;  %v2790_v14 = vrot.slane %v1987_v17, 1  ;;  %v2791_v0 = vrot.slane %v1988_v46, 1 }
 0x3ed   : > { %v7756_v32 = vsel %vm1558_vm10, %v7616_v52, %v4650_v15  ;;  %v7760_v33 = vsel %vm1558_vm10, %v7620_v21, %v4651_v4  ;;  %3346 = vmatpush.bf16.msra.mxu1 %v3642_v63  ;;  %v2892_v15 = vrot.slane %v1988_v46, 2  ;;  %v2894_v63 = vrot.slane %v1989_v18, 2 }
 0x3ef   : > { %4878 = vrot.lane.b32.xlu2 %v8525_v59, %s5024_s28  ;;  %4883 = vrot.lane.b32.xlu0 %v8526_v50, %s5025_s29  ;;  %v8528_v50 = vld [vmem:[#allocation66_spill] sm:$0xff] }
 0x3f0   : > { %4873 = vrot.lane.b32.xlu1 %v7044_v24, %s5027_s6  ;;  %v4897_v24 = vpack.i.bf16 %v5010_v28, %v5009_v29 }
 0x3f1   : > { %v7771_v25 = vpop.permute.xlu2 %4713  ;;  %v7773_v52 = vpop.permute.xlu0 %4673 }
 0x3f2   : > { %v4664_v21 = vpop.permute.xlu1 %4663 }
 0x3f3   : > { %v4666_v16 = vunpack.i.h.bf16 %v4664_v21  ;;  %v4665_v12 = vunpack.i.l.bf16 %v4664_v21  ;;  %v8529_v21 = vld [vmem:[#allocation57_spill] sm:$0xff] }
 0x3f5   : > { %v7777_v5 = vsel %vm1558_vm10, %v7639_v43, %v4665_v12  ;;  %v7781_v13 = vsel %vm1558_vm10, %v7643_v30, %v4666_v16  ;;  %v2792_v16 = vsel %vm471_vm3, %v2790_v14, %v2791_v0  ;;  %v2893_v12 = vsel %vm648_vm4, %v2891_v53, %v2892_v15 }
 0x3f6   : > { %v4670_v53 = vunpack.i.l.bf16 %v7702_v6 }
 0x3f7   : > { %4893 = vrot.lane.b32.xlu2 %v8527_v34, %s5027_s6  ;;  %4898 = vrot.lane.b32.xlu0 %v4897_v24, %s5025_s29 }
 0x3f8   : > { %4888 = vrot.lane.b32.xlu1 %v7130_v8, %s5026_s30 }
 0x3f9   : > { %v7788_v43 = vpop.permute.xlu2 %4728  ;;  %v4689_v59 = vpop.permute.xlu0 %4688 }
 0x3fa   : > { %v4691_v49 = vunpack.i.h.bf16 %v4689_v59  ;;  %v4690_v30 = vunpack.i.l.bf16 %v4689_v59  ;;  %v7790_v55 = vpop.permute.xlu1 %4678 }
 0x3fc   : > { %v7794_v4 = vsel %vm1558_vm10, %v7609_v56, %v4690_v30  ;;  %v7798_v8 = vsel %vm1558_vm10, %v7612_v35, %v4691_v49  ;;  %v2794_v56 = vsel %vm471_vm3, %v2791_v0, %v2793_v20  ;;  %v2895_v35 = vsel %vm648_vm4, %v2892_v15, %v2894_v63 }
 0x3fd   : > { %v4922_v49 = vpack.i.bf16 %v2794_v56, %v2792_v16  ;;  %v4927_v30 = vpack.i.bf16 %v2895_v35, %v2893_v12  ;;  %v4671_v20 = vunpack.i.h.bf16 %v7702_v6  ;;  %v4701_v15 = vunpack.i.h.bf16 %v7740_v47 }
 0x3ff   : > { %4908 = vrot.lane.b32.xlu2 %v8528_v50, %s5027_s6  ;;  %4913 = vrot.lane.b32.xlu0 %v8527_v34, %s5024_s28  ;;  %v4917_v34 = vpack.i.bf16 %v1988_v46, %v1987_v17  ;;  %v4591_v50 = vunpack.i.h.bf16 %v7654_v48  ;;  %v4700_v17 = vunpack.i.l.bf16 %v7740_v47 }
 0x400   : > { %4903 = vrot.lane.b32.xlu1 %v8529_v21, %s5026_s30  ;;  %v4590_v21 = vunpack.i.l.bf16 %v7654_v48 }
 0x401   : > { %v7810_v29 = vpop.permute.xlu2 %4743  ;;  %v4704_v28 = vpop.permute.xlu0 %4703 }
 0x402   : > { %v4694_v24 = vpop.permute.xlu1 %4693  ;;  %v4706_v48 = vunpack.i.h.bf16 %v4704_v28  ;;  %v4705_v46 = vunpack.i.l.bf16 %v4704_v28 }
 0x403   : > { %v4696_v18 = vunpack.i.h.bf16 %v4694_v24  ;;  %v4695_v59 = vunpack.i.l.bf16 %v4694_v24 }
 0x405   : > { %v7816_v14 = vsel %vm1558_vm10, %v7683_v26, %v4695_v59  ;;  %v7820_v0 = vsel %vm1558_vm10, %v7687_v42, %v4696_v18  ;;  %v3104_v26 = vsel %vm1525_vm8, %v7518_v2, %v4590_v21  ;;  %v3105_v42 = vsel %vm1525_vm8, %v7522_v44, %v4591_v50  ;;  %v8531_v50 = vld [vmem:[#allocation33_spill] sm:$0xff] }
 0x406   : > { %v3136_v16 = vsel %vm1558_vm10, %v3104_v26, %v4670_v53  ;;  %v3137_v47 = vsel %vm1558_vm10, %v3105_v42, %v4671_v20  ;;  %v4716_v53 = vunpack.i.h.bf16 %v7771_v25 }
 0x407   : > { %4923 = vrot.lane.b32.xlu2 %v4922_v49, %s5026_s30  ;;  %4928 = vrot.lane.b32.xlu0 %v4927_v30, %s5027_s6  ;;  %v3168_v12 = vsel %vm1591_vm9, %v3136_v16, %v4700_v17  ;;  %v3169_v35 = vsel %vm1591_vm9, %v3137_v47, %v4701_v15  ;;  %v4631_v49 = vunpack.i.h.bf16 %v7704_v45  ;;  %v4630_v30 = vunpack.i.l.bf16 %v7704_v45  ;;  %v8532_v17 = vld [vmem:[#allocation4_spill] sm:$0xff] }
 0x408   : > { %4918 = vrot.lane.b32.xlu1 %v4917_v34, %s5025_s29  ;;  %v3200_v18 = vsel %vm1624_vm11, %v3168_v12, %v4705_v46  ;;  %v3201_v2 = vsel %vm1624_vm11, %v3169_v35, %v4706_v48  ;;  %v8530_v34 = vld [vmem:[#allocation35_spill] sm:$0xff]  ;;  %v4715_v15 = vunpack.i.l.bf16 %v7771_v25  ;;  %v8533_v48 = vld [vmem:[#allocation13_spill] sm:$0xff] }
 0x409   : > { %v7833_v63 = vpop.permute.xlu2 %4758  ;;  %v4719_v6 = vpop.permute.xlu0 %4718  ;;  %v4932_v21 = vpack.i.bf16 %v8531_v50, %v8530_v34  ;;  %v3120_v42 = vsel %vm1558_vm10, %v7525_v37, %v4630_v30  ;;  %v3121_v16 = vsel %vm1558_vm10, %v7528_v40, %v4631_v49  ;;  %v4675_v40 = vunpack.i.l.bf16 %v7773_v52 }
 0x40a   : > { %v4709_v56 = vpop.permute.xlu1 %4708  ;;  %v4721_v46 = vunpack.i.h.bf16 %v4719_v6  ;;  %v4720_v26 = vunpack.i.l.bf16 %v4719_v6  ;;  %v3152_v47 = vsel %vm1591_vm9, %v3120_v42, %v4715_v15  ;;  %v4730_v49 = vunpack.i.l.bf16 %v7788_v43 }
 0x40b   : > { %v4711_v28 = vunpack.i.h.bf16 %v4709_v56  ;;  %v4710_v24 = vunpack.i.l.bf16 %v4709_v56  ;;  %v3153_v56 = vsel %vm1591_vm9, %v3121_v16, %v4716_v53  ;;  %v4636_v42 = vunpack.i.h.bf16 %v7722_v23 }
 0x40d   : > { %v3232_v44 = vsel %vm1657_vm12, %v3200_v18, %v4710_v24  ;;  %v3233_v59 = vsel %vm1657_vm12, %v3201_v2, %v4711_v28  ;;  %v3184_v28 = vsel %vm1624_vm11, %v3152_v47, %v4720_v26  ;;  %v3185_v24 = vsel %vm1624_vm11, %v3153_v56, %v4721_v46 }
 0x40e   : > { %v3256_v20 = vpack.c.bf16 %v3233_v59, %v3232_v44  ;;  %v4676_v2 = vunpack.i.h.bf16 %v7773_v52  ;;  %v4731_v59 = vunpack.i.h.bf16 %v7788_v43  ;;  %v4745_v47 = vunpack.i.l.bf16 %v7810_v29 }
 0x40f   : > { %4938 = vrot.lane.b32.xlu2 %v8532_v17, %s5026_s30  ;;  %4943 = vrot.lane.b32.xlu0 %v8533_v48, %s5027_s6 }
 0x410   : > { %4933 = vrot.lane.b32.xlu1 %v4932_v21, %s5025_s29  ;;  %3628 = vmatmul.msk.bf16.vlgmr.msra.gmra.mxu3 %vm1730_vm13, %v3256_v20  ;;  %v3138_v21 = vsel %vm1558_vm10, %v7586_v31, %v4675_v40  ;;  %v3139_v20 = vsel %vm1558_vm10, %v7589_v36, %v4676_v2  ;;  %v4635_v36 = vunpack.i.l.bf16 %v7722_v23  ;;  %s8042_s29 = scalar_lea.vmem %s8178_s5, %s3638_s21 }
 0x411   : > { %v4734_v45 = vpop.permute.xlu0 %4733  ;;  %v7861_v12 = vpop.permute.xlu2 %4773  ;;  %v3170_v15 = vsel %vm1591_vm9, %v3138_v21, %v4730_v49  ;;  %v3171_v52 = vsel %vm1591_vm9, %v3139_v20, %v4731_v59 }
 0x412   : > { %v4724_v25 = vpop.permute.xlu1 %4723  ;;  %v4736_v30 = vunpack.i.h.bf16 %v4734_v45  ;;  %v4735_v34 = vunpack.i.l.bf16 %v4734_v45 }
 0x413   : > { %v4726_v35 = vunpack.i.h.bf16 %v4724_v25  ;;  %v4725_v6 = vunpack.i.l.bf16 %v4724_v25  ;;  %v4746_v25 = vunpack.i.h.bf16 %v7810_v29 }
 0x414   : > { %v3202_v43 = vsel %vm1624_vm11, %v3170_v15, %v4735_v34  ;;  %v3203_v46 = vsel %vm1624_vm11, %v3171_v52, %v4736_v30  ;;  %v4680_v30 = vunpack.i.l.bf16 %v7790_v55  ;;  %v4761_v34 = vunpack.i.h.bf16 %v7833_v63 }
 0x415   : > { %v3216_v18 = vsel %vm1657_vm12, %v3184_v28, %v4725_v6  ;;  %v3217_v37 = vsel %vm1657_vm12, %v3185_v24, %v4726_v35  ;;  %v3122_v28 = vsel %vm1558_vm10, %v7593_v3, %v4635_v36  ;;  %v3123_v24 = vsel %vm1558_vm10, %v7597_v58, %v4636_v42 }
 0x416   : > { %v3248_v44 = vpack.c.bf16 %v3217_v37, %v3216_v18  ;;  %v3154_v37 = vsel %vm1591_vm9, %v3122_v28, %v4745_v47  ;;  %v3155_v23 = vsel %vm1591_vm9, %v3123_v24, %v4746_v25  ;;  %v4681_v3 = vunpack.i.h.bf16 %v7790_v55 }
 0x417   : > { %v3140_v52 = vsel %vm1558_vm10, %v7664_v39, %v4680_v30  ;;  %v4776_v39 = vunpack.i.h.bf16 %v7861_v12 }
 0x418   : > { %3620 = vmatmul.msk.bf16.vlgmr.msra.gmra.mxu1 %vm1730_vm13, %v3248_v44 }
 0x419   : > { %v4749_v50 = vpop.permute.xlu0 %4748  ;;  %v7880_v26 = vpop.permute.xlu2 %4788  ;;  %v3157_v24 = vsel %vm1591_vm9, %v7660_v1, %v4776_v39 }
 0x41a   : > { %v4739_v53 = vpop.permute.xlu1 %4738  ;;  %v4751_v56 = vunpack.i.h.bf16 %v4749_v50  ;;  %v4750_v35 = vunpack.i.l.bf16 %v4749_v50  ;;  %v4760_v50 = vunpack.i.l.bf16 %v7833_v63 }
 0x41b   : > { %v4741_v17 = vunpack.i.h.bf16 %v4739_v53  ;;  %v4740_v48 = vunpack.i.l.bf16 %v4739_v53 }
 0x41c   : > { %v3186_v29 = vsel %vm1624_vm11, %v3154_v37, %v4750_v35  ;;  %v3187_v44 = vsel %vm1624_vm11, %v3155_v23, %v4751_v56  ;;  %v3172_v55 = vsel %vm1591_vm9, %v3140_v52, %v4760_v50 }
 0x41d   : > { %v3234_v45 = vsel %vm1657_vm12, %v3202_v43, %v4740_v48  ;;  %v3235_v31 = vsel %vm1657_vm12, %v3203_v46, %v4741_v17  ;;  %v3141_v17 = vsel %vm1558_vm10, %v7668_v7, %v4681_v3  ;;  %v4775_v7 = vunpack.i.l.bf16 %v7861_v12 }
 0x41e   : > { %v3257_v16 = vpack.c.bf16 %v3235_v31, %v3234_v45  ;;  %v3173_v43 = vsel %vm1591_vm9, %v3141_v17, %v4761_v34 }
 0x41f   : > { %v3156_v28 = vsel %vm1591_vm9, %v7657_v62, %v4775_v7  ;;  %v4791_v62 = vunpack.i.h.bf16 %v7880_v26 }
 0x420   : > { %3629 = vmatmul.msk.bf16.gmra.mxu3 %vm1730_vm13, %v3257_v16 }
 0x421   : > { %v4764_v6 = vpop.permute.xlu0 %4763  ;;  %v7903_v21 = vpop.permute.xlu2 %4803 }
 0x422   : > { %v4754_v18 = vpop.permute.xlu1 %4753  ;;  %v4766_v20 = vunpack.i.h.bf16 %v4764_v6  ;;  %v4765_v53 = vunpack.i.l.bf16 %v4764_v6 }
 0x423   : > { %v4756_v2 = vunpack.i.h.bf16 %v4754_v18  ;;  %v4755_v40 = vunpack.i.l.bf16 %v4754_v18 }
 0x424   : > { %v3204_v45 = vsel %vm1624_vm11, %v3172_v55, %v4765_v53  ;;  %v3205_v31 = vsel %vm1624_vm11, %v3173_v43, %v4766_v20  ;;  %v4806_v43 = vunpack.i.h.bf16 %v7903_v21 }
 0x425   : > { %v3218_v59 = vsel %vm1657_vm12, %v3186_v29, %v4755_v40  ;;  %v3219_v49 = vsel %vm1657_vm12, %v3187_v44, %v4756_v2  ;;  %v4686_v29 = vunpack.i.h.bf16 %v7720_v54  ;;  %v4685_v44 = vunpack.i.l.bf16 %v7720_v54 }
 0x426   : > { %v3249_v58 = vpack.c.bf16 %v3219_v49, %v3218_v59  ;;  %v4790_v49 = vunpack.i.l.bf16 %v7880_v26 }
 0x427   : > { %v3143_v34 = vsel %vm1558_vm10, %v7695_v9, %v4686_v29  ;;  %v4805_v9 = vunpack.i.l.bf16 %v7903_v21 }
 0x428   : > { %3621 = vmatmul.msk.bf16.gmra.mxu1 %vm1730_vm13, %v3249_v58  ;;  %v3142_v58 = vsel %vm1558_vm10, %v7691_v10, %v4685_v44  ;;  %v3175_v54 = vsel %vm1591_vm9, %v3143_v34, %v4791_v62 }
 0x429   : > { %v4779_v15 = vpop.permute.xlu0 %4778  ;;  %v4819_v56 = vpop.permute.xlu2 %4818  ;;  %v3174_v20 = vsel %vm1591_vm9, %v3142_v58, %v4790_v49 }
 0x42a   : > { %v4769_v48 = vpop.permute.xlu1 %4768  ;;  %v4781_v25 = vunpack.i.h.bf16 %v4779_v15  ;;  %v4780_v47 = vunpack.i.l.bf16 %v4779_v15 }
 0x42b   : > { %v4771_v46 = vunpack.i.h.bf16 %v4769_v48  ;;  %v4770_v63 = vunpack.i.l.bf16 %v4769_v48 }
 0x42c   : > { %v3188_v23 = vsel %vm1624_vm11, %v3156_v28, %v4780_v47  ;;  %v3189_v2 = vsel %vm1624_vm11, %v3157_v24, %v4781_v25  ;;  %v4821_v28 = vunpack.i.h.bf16 %v4819_v56  ;;  %v4820_v24 = vunpack.i.l.bf16 %v4819_v56 }
 0x42d   : > { %v3236_v42 = vsel %vm1657_vm12, %v3204_v45, %v4770_v63  ;;  %v3237_v36 = vsel %vm1657_vm12, %v3205_v31, %v4771_v46 }
 0x42e   : > { %v3258_v16 = vpack.c.bf16 %v3237_v36, %v3236_v42  ;;  %v3158_v42 = vsel %vm1591_vm9, %v7729_v38, %v4805_v9  ;;  %v3159_v36 = vsel %vm1591_vm9, %v7733_v60, %v4806_v43 }
 0x430   : > { %3630 = vmatmul.msk.bf16.gmra.mxu3 %vm1730_vm13, %v3258_v16 }
 0x431   : > { %v4794_v35 = vpop.permute.xlu0 %4793  ;;  %v4834_v53 = vpop.permute.xlu2 %4833 }
 0x432   : > { %v4784_v6 = vpop.permute.xlu1 %4783  ;;  %v4796_v1 = vunpack.i.h.bf16 %v4794_v35  ;;  %v4795_v3 = vunpack.i.l.bf16 %v4794_v35  ;;  %v4836_v49 = vunpack.i.h.bf16 %v4834_v53 }
 0x433   : > { %v4786_v18 = vunpack.i.h.bf16 %v4784_v6  ;;  %v4785_v37 = vunpack.i.l.bf16 %v4784_v6 }
 0x434   : > { %v3206_v26 = vsel %vm1624_vm11, %v3174_v20, %v4795_v3  ;;  %v3207_v17 = vsel %vm1624_vm11, %v3175_v54, %v4796_v1  ;;  %v4835_v1 = vunpack.i.l.bf16 %v4834_v53 }
 0x435   : > { %v3220_v12 = vsel %vm1657_vm12, %v3188_v23, %v4785_v37  ;;  %v3221_v40 = vsel %vm1657_vm12, %v3189_v2, %v4786_v18  ;;  %v3176_v23 = vsel %vm1591_vm9, %v7794_v4, %v4820_v24  ;;  %v3177_v2 = vsel %vm1591_vm9, %v7798_v8, %v4821_v28 }
 0x436   : > { %v3250_v59 = vpack.c.bf16 %v3221_v40, %v3220_v12  ;;  %v3160_v34 = vsel %vm1591_vm9, %v7756_v32, %v4835_v1 }
 0x438   : > { %3622 = vmatmul.msk.bf16.gmra.mxu1 %vm1730_vm13, %v3250_v59 }
 0x439   : > { %v4809_v30 = vpop.permute.xlu0 %4808  ;;  %v4849_v47 = vpop.permute.xlu2 %4848 }
 0x43a   : > { %v4799_v50 = vpop.permute.xlu1 %4798  ;;  %v4811_v46 = vunpack.i.h.bf16 %v4809_v30  ;;  %v4810_v63 = vunpack.i.l.bf16 %v4809_v30 }
 0x43b   : > { %v4801_v15 = vunpack.i.h.bf16 %v4799_v50  ;;  %v4800_v52 = vunpack.i.l.bf16 %v4799_v50  ;;  %v3161_v50 = vsel %vm1591_vm9, %v7760_v33, %v4836_v49 }
 0x43c   : > { %v3190_v7 = vsel %vm1624_vm11, %v3158_v42, %v4810_v63  ;;  %v3191_v25 = vsel %vm1624_vm11, %v3159_v36, %v4811_v46 }
 0x43d   : > { %v3238_v48 = vsel %vm1657_vm12, %v3206_v26, %v4800_v52  ;;  %v3239_v55 = vsel %vm1657_vm12, %v3207_v17, %v4801_v15 }
 0x43e   : > { %v3259_v10 = vpack.c.bf16 %v3239_v55, %v3238_v48  ;;  %v4851_v48 = vunpack.i.h.bf16 %v4849_v47  ;;  %v4850_v55 = vunpack.i.l.bf16 %v4849_v47 }
 0x440   : > { %3631 = vmatmul.msk.bf16.gmra.mxu3 %vm1730_vm13, %v3259_v10  ;;  %v3178_v46 = vsel %vm1591_vm9, %v7816_v14, %v4850_v55  ;;  %v3179_v63 = vsel %vm1591_vm9, %v7820_v0, %v4851_v48 }
 0x441   : > { %v4824_v45 = vpop.permute.xlu0 %4823  ;;  %v4864_v3 = vpop.permute.xlu2 %4863 }
 0x442   : > { %v4814_v31 = vpop.permute.xlu1 %4813  ;;  %v4826_v18 = vunpack.i.h.bf16 %v4824_v45  ;;  %v4825_v37 = vunpack.i.l.bf16 %v4824_v45  ;;  %v4865_v47 = vunpack.i.l.bf16 %v4864_v3 }
 0x443   : > { %v4816_v16 = vunpack.i.h.bf16 %v4814_v31  ;;  %v4815_v39 = vunpack.i.l.bf16 %v4814_v31 }
 0x444   : > { %v3208_v29 = vsel %vm1624_vm11, %v3176_v23, %v4825_v37  ;;  %v3209_v44 = vsel %vm1624_vm11, %v3177_v2, %v4826_v18  ;;  %v3162_v0 = vsel %vm1591_vm9, %v7676_v41, %v4865_v47 }
 0x445   : > { %v3222_v21 = vsel %vm1657_vm12, %v3190_v7, %v4815_v39  ;;  %v3223_v35 = vsel %vm1657_vm12, %v3191_v25, %v4816_v16  ;;  %v4866_v25 = vunpack.i.h.bf16 %v4864_v3 }
 0x446   : > { %v3251_v6 = vpack.c.bf16 %v3223_v35, %v3222_v21 }
 0x447   : > { %v3163_v28 = vsel %vm1591_vm9, %v7679_v27, %v4866_v25 }
 0x448   : > { %3623 = vmatmul.msk.bf16.gmra.mxu1 %vm1730_vm13, %v3251_v6 }
 0x449   : > { %v4839_v38 = vpop.permute.xlu0 %4838  ;;  %v4879_v32 = vpop.permute.xlu2 %4878 }
 0x44a   : > { %v4829_v60 = vpop.permute.xlu1 %4828  ;;  %v4841_v30 = vunpack.i.h.bf16 %v4839_v38  ;;  %v4840_v58 = vunpack.i.l.bf16 %v4839_v38 }
 0x44b   : > { %v4831_v12 = vunpack.i.h.bf16 %v4829_v60  ;;  %v4830_v40 = vunpack.i.l.bf16 %v4829_v60 }
 0x44c   : > { %v3192_v15 = vsel %vm1624_vm11, %v3160_v34, %v4840_v58  ;;  %v3193_v52 = vsel %vm1624_vm11, %v3161_v50, %v4841_v30 }
 0x44d   : > { %v3240_v56 = vsel %vm1657_vm12, %v3208_v29, %v4830_v40  ;;  %v3241_v59 = vsel %vm1657_vm12, %v3209_v44, %v4831_v12  ;;  %v4881_v40 = vunpack.i.h.bf16 %v4879_v32  ;;  %v4880_v29 = vunpack.i.l.bf16 %v4879_v32 }
 0x44e   : > { %v3260_v62 = vpack.c.bf16 %v3241_v59, %v3240_v56 }
 0x44f   : > { %v3148_v59 = vsel %vm1558_vm10, %v7708_v22, %v4880_v29 }
 0x450   : > { %3632 = vmatmul.msk.bf16.gmra.mxu3 %vm1730_vm13, %v3260_v62  ;;  %v3149_v62 = vsel %vm1558_vm10, %v7712_v57, %v4881_v40 }
 0x451   : > { %v4854_v4 = vpop.permute.xlu0 %4853  ;;  %v4894_v24 = vpop.permute.xlu2 %4893 }
 0x452   : > { %v4844_v8 = vpop.permute.xlu1 %4843  ;;  %v4856_v10 = vunpack.i.h.bf16 %v4854_v4  ;;  %v4855_v43 = vunpack.i.l.bf16 %v4854_v4  ;;  %v4896_v3 = vunpack.i.h.bf16 %v4894_v24  ;;  %v4895_v30 = vunpack.i.l.bf16 %v4894_v24 }
 0x453   : > { %v4846_v20 = vunpack.i.h.bf16 %v4844_v8  ;;  %v4845_v54 = vunpack.i.l.bf16 %v4844_v8 }
 0x454   : > { %v3210_v42 = vsel %vm1624_vm11, %v3178_v46, %v4855_v43  ;;  %v3211_v36 = vsel %vm1624_vm11, %v3179_v63, %v4856_v10 }
 0x455   : > { %v3224_v53 = vsel %vm1657_vm12, %v3192_v15, %v4845_v54  ;;  %v3225_v26 = vsel %vm1657_vm12, %v3193_v52, %v4846_v20 }
 0x456   : > { %v3252_v17 = vpack.c.bf16 %v3225_v26, %v3224_v53 }
 0x458   : > { %3624 = vmatmul.msk.bf16.gmra.mxu1 %vm1730_vm13, %v3252_v17 }
 0x459   : > { %v4869_v9 = vpop.permute.xlu0 %4868  ;;  %v4909_v8 = vpop.permute.xlu2 %4908 }
 0x45a   : > { %v4859_v33 = vpop.permute.xlu1 %4858  ;;  %v4871_v21 = vunpack.i.h.bf16 %v4869_v9  ;;  %v4870_v35 = vunpack.i.l.bf16 %v4869_v9  ;;  %v4911_v48 = vunpack.i.h.bf16 %v4909_v8  ;;  %v4910_v55 = vunpack.i.l.bf16 %v4909_v8 }
 0x45b   : > { %v4861_v45 = vunpack.i.h.bf16 %v4859_v33  ;;  %v4860_v31 = vunpack.i.l.bf16 %v4859_v33 }
 0x45c   : > { %v3194_v38 = vsel %vm1624_vm11, %v3162_v0, %v4870_v35  ;;  %v3195_v60 = vsel %vm1624_vm11, %v3163_v28, %v4871_v21 }
 0x45d   : > { %v3242_v16 = vsel %vm1657_vm12, %v3210_v42, %v4860_v31  ;;  %v3243_v39 = vsel %vm1657_vm12, %v3211_v36, %v4861_v45 }
 0x45e   : > { %v3261_v7 = vpack.c.bf16 %v3243_v39, %v3242_v16 }
 0x460   : > { %3633 = vmatmul.msk.bf16.gmra.mxu3 %vm1730_vm13, %v3261_v7 }
 0x461   : > { %v4884_v14 = vpop.permute.xlu0 %4883  ;;  %v4924_v63 = vpop.permute.xlu2 %4923 }
 0x462   : > { %v4874_v6 = vpop.permute.xlu1 %4873  ;;  %v4886_v44 = vunpack.i.h.bf16 %v4884_v14  ;;  %v4885_v56 = vunpack.i.l.bf16 %v4884_v14  ;;  %v4926_v16 = vunpack.i.h.bf16 %v4924_v63 }
 0x463   : > { %v4876_v18 = vunpack.i.h.bf16 %v4874_v6  ;;  %v4875_v37 = vunpack.i.l.bf16 %v4874_v6 }
 0x464   : > { %v3180_v58 = vsel %vm1591_vm9, %v3148_v59, %v4885_v56  ;;  %v3181_v4 = vsel %vm1591_vm9, %v3149_v62, %v4886_v44 }
 0x465   : > { %v3226_v23 = vsel %vm1657_vm12, %v3194_v38, %v4875_v37  ;;  %v3227_v2 = vsel %vm1657_vm12, %v3195_v60, %v4876_v18 }
 0x466   : > { %v3253_v12 = vpack.c.bf16 %v3227_v2, %v3226_v23 }
 0x468   : > { %3625 = vmatmul.msk.bf16.gmra.mxu1 %vm1730_vm13, %v3253_v12 }
 0x469   : > { %v4899_v41 = vpop.permute.xlu0 %4898  ;;  %v4939_v38 = vpop.permute.xlu2 %4938 }
 0x46a   : > { %v4889_v27 = vpop.permute.xlu1 %4888  ;;  %v4901_v15 = vunpack.i.h.bf16 %v4899_v41  ;;  %v4900_v57 = vunpack.i.l.bf16 %v4899_v41  ;;  %v4941_v2 = vunpack.i.h.bf16 %v4939_v38  ;;  %v4940_v12 = vunpack.i.l.bf16 %v4939_v38 }
 0x46b   : > { %v4891_v49 = vunpack.i.h.bf16 %v4889_v27  ;;  %v4890_v1 = vunpack.i.l.bf16 %v4889_v27 }
 0x46c   : > { %v3164_v10 = vsel %vm1591_vm9, %v7748_v11, %v4900_v57  ;;  %v3165_v43 = vsel %vm1591_vm9, %v7752_v61, %v4901_v15  ;;  %v4925_v11 = vunpack.i.l.bf16 %v4924_v63  ;;  %v3429_v15 = vld [vmem:[%s5152_s24 + $0x8] sm:$0xff] }
 0x46d   : > { %v3212_v34 = vsel %vm1624_vm11, %v3180_v58, %v4890_v1  ;;  %v3213_v50 = vsel %vm1624_vm11, %v3181_v4, %v4891_v49  ;;  %v8033_v1 = vld [vmem:[%s8177_s4] ss:$0 sm:$0xff] }
 0x46e   : > { %v3244_v20 = vsel %vm1657_vm12, %v3212_v34, %v4895_v30  ;;  %v3245_v22 = vsel %vm1657_vm12, %v3213_v50, %v4896_v3  ;;  %v3428_v58 = vld [vmem:[%s5152_s24] sm:$0xff] }
 0x46f   : > { %v3262_v54 = vpack.c.bf16 %v3245_v22, %v3244_v20  ;;  %v3445_v20 = vld [vmem:[%s5152_s24 + $0x88] sm:$0xff] }
 0x471   : > { %3634 = vmatmul.msk.bf16.gmra.mxu3 %vm1730_vm13, %v3262_v54  ;;  %v4914_v52 = vpop.permute.xlu0 %4913 }
 0x472   : > { %v4904_v53 = vpop.permute.xlu1 %4903  ;;  %v4916_v31 = vunpack.i.h.bf16 %v4914_v52  ;;  %v4915_v42 = vunpack.i.l.bf16 %v4914_v52 }
 0x473   : > { %v4906_v26 = vunpack.i.h.bf16 %v4904_v53  ;;  %v4905_v17 = vunpack.i.l.bf16 %v4904_v53 }
 0x474   : > { %v3150_v21 = vsel %vm1558_vm10, %v7632_v19, %v4915_v42  ;;  %v3151_v35 = vsel %vm1558_vm10, %v7635_v51, %v4916_v31  ;;  %v3431_v31 = vld [vmem:[%s5152_s24 + $0x18] sm:$0xff] }
 0x475   : > { %v3196_v32 = vsel %vm1624_vm11, %v3164_v10, %v4905_v17  ;;  %v3197_v9 = vsel %vm1624_vm11, %v3165_v43, %v4906_v26  ;;  %v3446_v17 = vld [vmem:[%s5152_s24 + $0x90] sm:$0xff] }
 0x476   : > { %v3228_v33 = vsel %vm1657_vm12, %v3196_v32, %v4910_v55  ;;  %v3229_v46 = vsel %vm1657_vm12, %v3197_v9, %v4911_v48  ;;  %v3430_v10 = vld [vmem:[%s5152_s24 + $0x10] sm:$0xff] }
 0x477   : > { %v3254_v45 = vpack.c.bf16 %v3229_v46, %v3228_v33  ;;  %v3447_v46 = vld [vmem:[%s5152_s24 + $0x98] sm:$0xff] }
 0x479   : > { %3626 = vmatmul.msk.bf16.gmra.mxu1 %vm1730_vm13, %v3254_v45  ;;  %v4929_v36 = vpop.permute.xlu0 %4928 }
 0x47a   : > { %v4919_v39 = vpop.permute.xlu1 %4918  ;;  %v4931_v7 = vunpack.i.h.bf16 %v4929_v36  ;;  %v4930_v61 = vunpack.i.l.bf16 %v4929_v36 }
 0x47b   : > { %v4921_v25 = vunpack.i.h.bf16 %v4919_v39  ;;  %v4920_v47 = vunpack.i.l.bf16 %v4919_v39  ;;  %v3448_v39 = vld [vmem:[%s5152_s24 + $0xa0] sm:$0xff] }
 0x47d   : > { %v3182_v14 = vsel %vm1591_vm9, %v3150_v21, %v4920_v47  ;;  %v3183_v6 = vsel %vm1591_vm9, %v3151_v35, %v4921_v25  ;;  %v3432_v25 = vld [vmem:[%s5152_s24 + $0x20] sm:$0xff] }
 0x47e   : > { %v3214_v0 = vsel %vm1624_vm11, %v3182_v14, %v4925_v11  ;;  %v3215_v28 = vsel %vm1624_vm11, %v3183_v6, %v4926_v16  ;;  %v3449_v6 = vld [vmem:[%s5152_s24 + $0xa8] sm:$0xff] }
 0x47f   : > { %v3246_v24 = vsel %vm1657_vm12, %v3214_v0, %v4930_v61  ;;  %v3247_v18 = vsel %vm1657_vm12, %v3215_v28, %v4931_v7 }
 0x480   : > { %v3263_v37 = vpack.c.bf16 %v3247_v18, %v3246_v24  ;;  %v3433_v24 = vld [vmem:[%s5152_s24 + $0x28] sm:$0xff] }
 0x481   : > { %v4944_v60 = vpop.permute.xlu0 %4943 }
 0x482   : > { %v4934_v23 = vpop.permute.xlu1 %4933  ;;  %3635 = vmatmul.msk.bf16.gmra.mxu3 %vm1730_vm13, %v3263_v37  ;;  %v4946_v40 = vunpack.i.h.bf16 %v4944_v60  ;;  %v4945_v29 = vunpack.i.l.bf16 %v4944_v60 }
 0x483   : > { %v4936_v19 = vunpack.i.h.bf16 %v4934_v23  ;;  %v4935_v51 = vunpack.i.l.bf16 %v4934_v23  ;;  %v3450_v23 = vld [vmem:[%s5152_s24 + $0xb0] sm:$0xff] }
 0x485   : > { %v3166_v44 = vsel %vm1591_vm9, %v7777_v5, %v4935_v51  ;;  %v3167_v56 = vsel %vm1591_vm9, %v7781_v13, %v4936_v19  ;;  %v3444_v13 = vld [vmem:[%s5152_s24 + $0x80] sm:$0xff] }
 0x486   : > { %v3198_v41 = vsel %vm1624_vm11, %v3166_v44, %v4940_v12  ;;  %v3199_v27 = vsel %vm1624_vm11, %v3167_v56, %v4941_v2  ;;  %v3434_v2 = vld [vmem:[%s5152_s24 + $0x30] sm:$0xff]  ;;  %v3451_v56 = vld [vmem:[%s5152_s24 + $0xb8] sm:$0xff] }
 0x487   : > { %v3230_v59 = vsel %vm1657_vm12, %v3198_v41, %v4945_v29  ;;  %v3231_v62 = vsel %vm1657_vm12, %v3199_v27, %v4946_v40 }
 0x488   : > { %v3255_v49 = vpack.c.bf16 %v3231_v62, %v3230_v59  ;;  %v3435_v59 = vld [vmem:[%s5152_s24 + $0x38] sm:$0xff] }
 0x48a   : > { %3627 = vmatmul.msk.bf16.gmra.mxu1 %vm1730_vm13, %v3255_v49 }
 0x493   : > { %v3388_v5 = vpop.f32.mrf.mxu3 }
 0x494   : > { %v3389_v3 = vadd.f32 %v8033_v1, %v3388_v5 }
 0x495   : > { %v3348_v30 = vpop.f32.mrf.mxu1 }
 0x496   : > { %v3476_v4 = vadd.f32 %v3444_v13, %v3389_v3  ;;  %v3349_v8 = vadd.f32 %v8033_v1, %v3348_v30  ;;  %v3452_v3 = vld [vmem:[%s5152_s24 + $0xc0] sm:$0xff] }
 0x498   : > { %3508 = vst.msk [vmem:[%s8042_s29 + $0x80] sm:$0xff] %vm226_vm0, %v3476_v4  ;;  %v3460_v34 = vadd.f32 %v3428_v58, %v3349_v8  ;;  %v3436_v4 = vld [vmem:[%s5152_s24 + $0x40] sm:$0xff] }
 0x49a   : > { %3492 = vst.msk [vmem:[%s8042_s29] sm:$0xff] %vm226_vm0, %v3460_v34 }
 0x49b   : > { %v3390_v50 = vpop.f32.mrf.mxu3 }
 0x49c   : > { %v3391_v22 = vadd.f32 %v8033_v1, %v3390_v50 }
 0x49d   : > { %v3350_v54 = vpop.f32.mrf.mxu1 }
 0x49e   : > { %v3477_v57 = vadd.f32 %v3445_v20, %v3391_v22  ;;  %v3351_v52 = vadd.f32 %v8033_v1, %v3350_v54  ;;  %v3453_v22 = vld [vmem:[%s5152_s24 + $0xc8] sm:$0xff] }
 0x4a0   : > { %3509 = vst.msk [vmem:[%s8042_s29 + $0x88] sm:$0xff] %vm226_vm0, %v3477_v57  ;;  %v3461_v53 = vadd.f32 %v3429_v15, %v3351_v52  ;;  %v3437_v57 = vld [vmem:[%s5152_s24 + $0x48] sm:$0xff] }
 0x4a2   : > { %3493 = vst.msk [vmem:[%s8042_s29 + $0x8] sm:$0xff] %vm226_vm0, %v3461_v53 }
 0x4a3   : > { %v3393_v26 = vpop.f32.mrf.mxu3 }
 0x4a4   : > { %v3394_v48 = vadd.f32 %v8033_v1, %v3393_v26 }
 0x4a5   : > { %v3353_v55 = vpop.f32.mrf.mxu1 }
 0x4a6   : > { %v3478_v43 = vadd.f32 %v3446_v17, %v3394_v48  ;;  %v3354_v32 = vadd.f32 %v8033_v1, %v3353_v55  ;;  %v3454_v48 = vld [vmem:[%s5152_s24 + $0xd0] sm:$0xff] }
 0x4a8   : > { %3510 = vst.msk [vmem:[%s8042_s29 + $0x90] sm:$0xff] %vm226_vm0, %v3478_v43  ;;  %v3462_v9 = vadd.f32 %v3430_v10, %v3354_v32  ;;  %v3438_v43 = vld [vmem:[%s5152_s24 + $0x50] sm:$0xff] }
 0x4aa   : > { %3494 = vst.msk [vmem:[%s8042_s29 + $0x10] sm:$0xff] %vm226_vm0, %v3462_v9 }
 0x4ab   : > { %v3395_v33 = vpop.f32.mrf.mxu3 }
 0x4ac   : > { %v3396_v63 = vadd.f32 %v8033_v1, %v3395_v33 }
 0x4ad   : > { %v3355_v45 = vpop.f32.mrf.mxu1 }
 0x4ae   : > { %v3479_v42 = vadd.f32 %v3447_v46, %v3396_v63  ;;  %v3356_v36 = vadd.f32 %v8033_v1, %v3355_v45  ;;  %v3455_v63 = vld [vmem:[%s5152_s24 + $0xd8] sm:$0xff] }
 0x4b0   : > { %3511 = vst.msk [vmem:[%s8042_s29 + $0x98] sm:$0xff] %vm226_vm0, %v3479_v42  ;;  %v3463_v16 = vadd.f32 %v3431_v31, %v3356_v36  ;;  %v3439_v42 = vld [vmem:[%s5152_s24 + $0x58] sm:$0xff] }
 0x4b2   : > { %3495 = vst.msk [vmem:[%s8042_s29 + $0x18] sm:$0xff] %vm226_vm0, %v3463_v16 }
 0x4b3   : > { %v3398_v11 = vpop.f32.mrf.mxu3 }
 0x4b4   : > { %v3399_v7 = vadd.f32 %v8033_v1, %v3398_v11 }
 0x4b5   : > { %v3358_v61 = vpop.f32.mrf.mxu1 }
 0x4b6   : > { %v3480_v47 = vadd.f32 %v3448_v39, %v3399_v7  ;;  %v3359_v21 = vadd.f32 %v8033_v1, %v3358_v61  ;;  %v3456_v7 = vld [vmem:[%s5152_s24 + $0xe0] sm:$0xff] }
 0x4b8   : > { %3512 = vst.msk [vmem:[%s8042_s29 + $0xa0] sm:$0xff] %vm226_vm0, %v3480_v47  ;;  %v3464_v35 = vadd.f32 %v3432_v25, %v3359_v21  ;;  %v3440_v47 = vld [vmem:[%s5152_s24 + $0x60] sm:$0xff] }
 0x4ba   : > { %3496 = vst.msk [vmem:[%s8042_s29 + $0x20] sm:$0xff] %vm226_vm0, %v3464_v35 }
 0x4bb   : > { %v3400_v14 = vpop.f32.mrf.mxu3 }
 0x4bc   : > { %v3401_v0 = vadd.f32 %v8033_v1, %v3400_v14 }
 0x4bd   : > { %v3360_v28 = vpop.f32.mrf.mxu1 }
 0x4be   : > { %v3481_v18 = vadd.f32 %v3449_v6, %v3401_v0  ;;  %v3361_v37 = vadd.f32 %v8033_v1, %v3360_v28  ;;  %v3457_v0 = vld [vmem:[%s5152_s24 + $0xe8] sm:$0xff] }
 0x4c0   : > { %3513 = vst.msk [vmem:[%s8042_s29 + $0xa8] sm:$0xff] %vm226_vm0, %v3481_v18  ;;  %v3465_v38 = vadd.f32 %v3433_v24, %v3361_v37  ;;  %v3441_v18 = vld [vmem:[%s5152_s24 + $0x68] sm:$0xff] }
 0x4c2   : > { %3497 = vst.msk [vmem:[%s8042_s29 + $0x28] sm:$0xff] %vm226_vm0, %v3465_v38 }
 0x4c3   : > { %v3403_v60 = vpop.f32.mrf.mxu3 }
 0x4c4   : > { %v3404_v19 = vadd.f32 %v8033_v1, %v3403_v60 }
 0x4c5   : > { %v3363_v51 = vpop.f32.mrf.mxu1 }
 0x4c6   : > { %v3482_v12 = vadd.f32 %v3450_v23, %v3404_v19  ;;  %v3364_v40 = vadd.f32 %v8033_v1, %v3363_v51  ;;  %v3458_v19 = vld [vmem:[%s5152_s24 + $0xf0] sm:$0xff] }
 0x4c8   : > { %3514 = vst.msk [vmem:[%s8042_s29 + $0xb0] sm:$0xff] %vm226_vm0, %v3482_v12  ;;  %v3466_v29 = vadd.f32 %v3434_v2, %v3364_v40  ;;  %v3442_v12 = vld [vmem:[%s5152_s24 + $0x70] sm:$0xff] }
 0x4ca   : > { %3498 = vst.msk [vmem:[%s8042_s29 + $0x30] sm:$0xff] %vm226_vm0, %v3466_v29 }
 0x4cb   : > { %v3405_v44 = vpop.f32.mrf.mxu3 }
 0x4cc   : > { %v3406_v41 = vadd.f32 %v8033_v1, %v3405_v44 }
 0x4cd   : > { %v3365_v27 = vpop.f32.mrf.mxu1 }
 0x4ce   : > { %v3483_v62 = vadd.f32 %v3451_v56, %v3406_v41  ;;  %v3366_v49 = vadd.f32 %v8033_v1, %v3365_v27  ;;  %v3459_v41 = vld [vmem:[%s5152_s24 + $0xf8] sm:$0xff] }
 0x4d0   : > { %3515 = vst.msk [vmem:[%s8042_s29 + $0xb8] sm:$0xff] %vm226_vm0, %v3483_v62  ;;  %v3467_v5 = vadd.f32 %v3435_v59, %v3366_v49  ;;  %v3443_v62 = vld [vmem:[%s5152_s24 + $0x78] sm:$0xff] }
 0x4d2   : > { %3499 = vst.msk [vmem:[%s8042_s29 + $0x38] sm:$0xff] %vm226_vm0, %v3467_v5 }
 0x4d3   : > { %v3408_v13 = vpop.f32.mrf.mxu3 }
 0x4d4   : > { %v3409_v30 = vadd.f32 %v8033_v1, %v3408_v13 }
 0x4d5   : > { %v3368_v58 = vpop.f32.mrf.mxu1 }
 0x4d6   : > { %v3484_v8 = vadd.f32 %v3452_v3, %v3409_v30  ;;  %v3369_v34 = vadd.f32 %v8033_v1, %v3368_v58 }
 0x4d8   : > { %3516 = vst.msk [vmem:[%s8042_s29 + $0xc0] sm:$0xff] %vm226_vm0, %v3484_v8  ;;  %v3468_v50 = vadd.f32 %v3436_v4, %v3369_v34 }
 0x4da   : > { %3500 = vst.msk [vmem:[%s8042_s29 + $0x40] sm:$0xff] %vm226_vm0, %v3468_v50 }
 0x4db   : > { %v3410_v20 = vpop.f32.mrf.mxu3 }
 0x4dc   : > { %v3411_v54 = vadd.f32 %v8033_v1, %v3410_v20 }
 0x4dd   : > { %v3370_v15 = vpop.f32.mrf.mxu1 }
 0x4de   : > { %v3485_v52 = vadd.f32 %v3453_v22, %v3411_v54  ;;  %v3371_v53 = vadd.f32 %v8033_v1, %v3370_v15 }
 0x4e0   : > { %3517 = vst.msk [vmem:[%s8042_s29 + $0xc8] sm:$0xff] %vm226_vm0, %v3485_v52  ;;  %v3469_v26 = vadd.f32 %v3437_v57, %v3371_v53 }
 0x4e2   : > { %3501 = vst.msk [vmem:[%s8042_s29 + $0x48] sm:$0xff] %vm226_vm0, %v3469_v26 }
 0x4e3   : > { %v3413_v17 = vpop.f32.mrf.mxu3 }
 0x4e4   : > { %v3414_v55 = vadd.f32 %v8033_v1, %v3413_v17 }
 0x4e5   : > { %v3373_v10 = vpop.f32.mrf.mxu1 }
 0x4e6   : > { %v3486_v32 = vadd.f32 %v3454_v48, %v3414_v55  ;;  %v3374_v9 = vadd.f32 %v8033_v1, %v3373_v10 }
 0x4e8   : > { %3518 = vst.msk [vmem:[%s8042_s29 + $0xd0] sm:$0xff] %vm226_vm0, %v3486_v32  ;;  %v3470_v33 = vadd.f32 %v3438_v43, %v3374_v9 }
 0x4ea   : > { %3502 = vst.msk [vmem:[%s8042_s29 + $0x50] sm:$0xff] %vm226_vm0, %v3470_v33 }
 0x4eb   : > { %v3415_v46 = vpop.f32.mrf.mxu3 }
 0x4ec   : > { %v3416_v45 = vadd.f32 %v8033_v1, %v3415_v46 }
 0x4ed   : > { %v3375_v31 = vpop.f32.mrf.mxu1 }
 0x4ee   : > { %v3487_v36 = vadd.f32 %v3455_v63, %v3416_v45  ;;  %v3376_v16 = vadd.f32 %v8033_v1, %v3375_v31 }
 0x4f0   : > { %3519 = vst.msk [vmem:[%s8042_s29 + $0xd8] sm:$0xff] %vm226_vm0, %v3487_v36  ;;  %v3471_v11 = vadd.f32 %v3439_v42, %v3376_v16 }
 0x4f2   : > { %3503 = vst.msk [vmem:[%s8042_s29 + $0x58] sm:$0xff] %vm226_vm0, %v3471_v11 }
 0x4f4   : > { %v3418_v39 = vpop.f32.mrf.mxu3 }
 0x4f5   : > { %v3419_v61 = vadd.f32 %v8033_v1, %v3418_v39 }
 0x4f6   : > { %v3378_v25 = vpop.f32.mrf.mxu1 }
 0x4f7   : > { %v3488_v21 = vadd.f32 %v3456_v7, %v3419_v61  ;;  %v3379_v35 = vadd.f32 %v8033_v1, %v3378_v25 }
 0x4f9   : > { %3520 = vst.msk [vmem:[%s8042_s29 + $0xe0] sm:$0xff] %vm226_vm0, %v3488_v21  ;;  %v3472_v14 = vadd.f32 %v3440_v47, %v3379_v35 }
 0x4fb   : > { %3504 = vst.msk [vmem:[%s8042_s29 + $0x60] sm:$0xff] %vm226_vm0, %v3472_v14 }
 0x4fc   : > { %v3420_v6 = vpop.f32.mrf.mxu3 }
 0x4fd   : > { %v3421_v28 = vadd.f32 %v8033_v1, %v3420_v6 }
 0x4fe   : > { %v3380_v24 = vpop.f32.mrf.mxu1 }
 0x4ff   : > { %v3489_v37 = vadd.f32 %v3457_v0, %v3421_v28  ;;  %v3381_v38 = vadd.f32 %v8033_v1, %v3380_v24 }
 0x501   : > { %3521 = vst.msk [vmem:[%s8042_s29 + $0xe8] sm:$0xff] %vm226_vm0, %v3489_v37  ;;  %v3473_v60 = vadd.f32 %v3441_v18, %v3381_v38 }
 0x503   : > { %3505 = vst.msk [vmem:[%s8042_s29 + $0x68] sm:$0xff] %vm226_vm0, %v3473_v60 }
 0x505   : > { %v3423_v23 = vpop.f32.mrf.mxu3 }
 0x506   : > { %v3424_v51 = vadd.f32 %v8033_v1, %v3423_v23 }
 0x507   : > { %v3383_v2 = vpop.f32.mrf.mxu1 }
 0x508   : > { %v3490_v40 = vadd.f32 %v3458_v19, %v3424_v51  ;;  %v3384_v29 = vadd.f32 %v8033_v1, %v3383_v2 }
 0x50a   : > { %3522 = vst.msk [vmem:[%s8042_s29 + $0xf0] sm:$0xff] %vm226_vm0, %v3490_v40  ;;  %v3474_v44 = vadd.f32 %v3442_v12, %v3384_v29 }
 0x50c   : > { %3506 = vst.msk [vmem:[%s8042_s29 + $0x70] sm:$0xff] %vm226_vm0, %v3474_v44 }
 0x50d   : > { %v3425_v56 = vpop.f32.mrf.mxu3 }
 0x50e   : > { %v3426_v27 = vadd.f32 %v8033_v1, %v3425_v56 }
 0x50f   : > { %v3385_v59 = vpop.f32.mrf.mxu1 }
 0x510   : > { %v3491_v49 = vadd.f32 %v3459_v41, %v3426_v27  ;;  %v3386_v5 = vadd.f32 %v8033_v1, %v3385_v59 }
 0x512   : > { %3523 = vst.msk [vmem:[%s8042_s29 + $0xf8] sm:$0xff] %vm226_vm0, %v3491_v49  ;;  %v3475_v13 = vadd.f32 %v3443_v62, %v3386_v5 }
 0x514   : > { %3507 = vst.msk [vmem:[%s8042_s29 + $0x78] sm:$0xff] %vm226_vm0, %v3475_v13 }
 0x515 PF: > { %s15_s18 = sadd.s32 1, %s5017_s18  }
 0x516   : > { %p12_p4 = scmp.ge.s32.totalorder %s15_s18, 4  }
 0x518   :  { %14 = sbr.rel (!%p12_p4) target bundleno = 1 (0x1), region = 72 }

</bundles_post_ra>
